<compile_context>
chip_gen: v7x
topology: tpu7x:2x2x1
jax: 0.10.0
libtpu: 0.0.40
codegen_flags: <defaults>
</compile_context>

<pallas_src>
import jax
import jax.numpy as jnp
from jax import lax
from jax.experimental import pallas as pl
from jax.experimental.pallas import tpu as pltpu

KH = KW = 3
C_IN = 3
C_OUT = 6
KHW = KH * KW          # 9
KTAPS = C_IN * KHW     # 27
LANES = 128


def _round_up(x, m):
    return (x + m - 1) // m * m


def _make_conv_kernel(img_w: int):
    """Kernel body for a given image width (tap shift = kh*img_w + kw)."""

    def conv2d_kernel(x_ref, w_ref, b_ref, o_ref):
        # x_ref: (B, C_IN, HWp)           VMEM, spatial flattened -> lane-dense
        # w_ref: (C_OUT*C_IN*KH*KW,) f32  SMEM (plain OIHW flattening)
        # b_ref: (C_OUT,) f32             SMEM
        # o_ref: (B, C_OUT, HWp)          VMEM
        b_imgs = x_ref.shape[0]
        hwp = x_ref.shape[-1]

        xn = x_ref[...].astype(jnp.float32)                # (B, C_IN, HWp), single cast

        # One independent f32 accumulator plane per output channel (6 ILP chains).
        acc = [jnp.zeros((b_imgs, hwp), jnp.float32) for _ in range(C_OUT)]

        for ci in range(C_IN):
            xc = xn[:, ci, :]                              # (B, HWp) channel plane
            for kh in range(KH):
                for kw in range(KW):
                    s = kh * img_w + kw
                    t = kh * KW + kw
                    # xs[b, p] = xc[b, p + s]; wrap-around only hits cropped positions.
                    xs = pltpu.roll(xc, hwp - s, axis=1) if s else xc
                    for co in range(C_OUT):
                        wi = (co * C_IN + ci) * KHW + t
                        # SMEM scalar weight -> free VPU broadcast (no XLU column bcast).
                        acc[co] = acc[co] + w_ref[wi] * xs

        planes = [acc[co] + b_ref[co] for co in range(C_OUT)]
        o_ref[...] = jnp.stack(planes, axis=1).astype(o_ref.dtype)

    return conv2d_kernel


def conv2d_pallas(x_nchw, w_ochw, bias):
    """Conv2d(3, 6, k=3, s=1, p=0) forward.

    x_nchw: (N, C_IN, H, W); w_ochw: (C_OUT, C_IN, KH, KW) (PyTorch layout); bias: (C_OUT,).
    Returns (N, C_OUT, H-2, W-2) in NCHW, matching nn.Conv2d.
    """
    n, c, h, w_img = x_nchw.shape
    assert c == C_IN
    ho, wo = h - KH + 1, w_img - KW + 1
    hw = h * w_img
    hwp = max(_round_up(hw, LANES), LANES)     # lane-dense insurance for non-256 sizes

    # B images per grid step: whole batch for small N (single step), else 8.
    b_imgs = n if n <= 8 else 8
    npad = _round_up(n, b_imgs)

    # Layout glue: reshape + zero-pad only (contiguous, no transposes).
    x3 = x_nchw.reshape(n, C_IN, hw)
    if hwp != hw:
        x3 = jnp.pad(x3, ((0, 0), (0, 0), (0, hwp - hw)))
    if npad != n:
        x3 = jnp.pad(x3, ((0, npad - n), (0, 0), (0, 0)))

    w_flat = w_ochw.reshape(-1).astype(jnp.float32)   # (162,) -> SMEM scalars
    b_flat = bias.reshape(-1).astype(jnp.float32)     # (6,)   -> SMEM scalars

    kernel = _make_conv_kernel(w_img)

    out3 = pl.pallas_call(
        kernel,
        out_shape=jax.ShapeDtypeStruct((npad, C_OUT, hwp), x_nchw.dtype),
        grid=(npad // b_imgs,),
        in_specs=[
            pl.BlockSpec((b_imgs, C_IN, hwp), lambda i: (i, 0, 0)),
            pl.BlockSpec(memory_space=pltpu.MemorySpace.SMEM),
            pl.BlockSpec(memory_space=pltpu.MemorySpace.SMEM),
        ],
        out_specs=pl.BlockSpec((b_imgs, C_OUT, hwp), lambda i: (i, 0, 0)),
        compiler_params=pltpu.CompilerParams(
            dimension_semantics=("parallel",)),
    )(x3, w_flat, b_flat)

    # Crop padding, reshape back to NCHW, crop the valid Ho x Wo window.
    out = out3[:n, :, :hw].reshape(n, C_OUT, h, w_img)[:, :, :ho, :wo]
    return out


if __name__ == "__main__":
    key = jax.random.PRNGKey(0)
    k_x, k_w, k_b = jax.random.split(key, 3)

    # Deterministic init mimicking nn.Conv2d defaults:
    # kaiming_uniform(a=sqrt(5)) -> U(-1/sqrt(fan_in), 1/sqrt(fan_in)), fan_in = 3*3*3.
    fan_in = C_IN * KH * KW
    bound = 1.0 / (fan_in ** 0.5)
    w_ochw = jax.random.uniform(k_w, (C_OUT, C_IN, KH, KW),
                                dtype=jnp.float32, minval=-bound, maxval=bound)
    bias = jax.random.uniform(k_b, (C_OUT,),
                              dtype=jnp.float32, minval=-bound, maxval=bound)

    # Small NCHW input consistent with Conv2d(3, 6, 3): (N=2, C=3, H=16, W=16).
    x = jax.random.normal(k_x, (2, C_IN, 16, 16), dtype=jnp.float32)

    out = conv2d_pallas(x, w_ochw, bias)
    out = jax.block_until_ready(out)
    assert out.shape == (2, C_OUT, 14, 14), out.shape

    # Cross-check against XLA's conv for correctness.
    ref = lax.conv_general_dilated(
        x, w_ochw, window_strides=(1, 1), padding="VALID",
        dimension_numbers=("NCHW", "OIHW", "NCHW"),
    ) + bias.reshape(1, C_OUT, 1, 1)
    assert jnp.allclose(out, ref, atol=1e-5, rtol=1e-5), float(jnp.max(jnp.abs(out - ref)))

    print("KERNEL_OK")
</pallas_src>

<mosaic_0001>
module attributes {stable_mosaic.version = 11 : i64} {
  func.func @conv2d_kernel(%arg0: i32, %arg1: memref<2x3x256xf32, #tpu.memory_space<vmem>>, %arg2: memref<162xf32, #tpu.memory_space<smem>>, %arg3: memref<6xf32, #tpu.memory_space<smem>>, %arg4: memref<2x6x256xf32, #tpu.memory_space<vmem>>) attributes {dimension_semantics = [#tpu.dimension_semantics<parallel>], iteration_bounds = array<i64: 1>, scalar_prefetch = 0 : i64, scratch_operands = 0 : i64, tpu.core_type = #tpu.core_type<tc>, window_params = [{transform_indices = @transform_0, window_bounds = array<i64: 2, 3, 256>}, {transform_indices = @transform_1, window_bounds = array<i64: 162>}, {transform_indices = @transform_2, window_bounds = array<i64: 6>}, {transform_indices = @transform_3, window_bounds = array<i64: 2, 6, 256>}]} {
    %c0 = arith.constant 0 : index
    %c0_0 = arith.constant 0 : index
    %c0_1 = arith.constant 0 : index
    %0 = vector.load %arg1[%c0, %c0_0, %c0_1] : memref<2x3x256xf32, #tpu.memory_space<vmem>>, vector<2x3x256xf32>
    %cst = arith.constant 0.000000e+00 : f32
    %1 = vector.broadcast %cst : f32 to vector<2x256xf32>
    %cst_2 = arith.constant 0.000000e+00 : f32
    %2 = vector.broadcast %cst_2 : f32 to vector<2x256xf32>
    %cst_3 = arith.constant 0.000000e+00 : f32
    %3 = vector.broadcast %cst_3 : f32 to vector<2x256xf32>
    %cst_4 = arith.constant 0.000000e+00 : f32
    %4 = vector.broadcast %cst_4 : f32 to vector<2x256xf32>
    %cst_5 = arith.constant 0.000000e+00 : f32
    %5 = vector.broadcast %cst_5 : f32 to vector<2x256xf32>
    %cst_6 = arith.constant 0.000000e+00 : f32
    %6 = vector.broadcast %cst_6 : f32 to vector<2x256xf32>
    %7 = vector.extract_strided_slice %0 {offsets = [0, 0, 0], sizes = [2, 1, 256], strides = [1, 1, 1]} : vector<2x3x256xf32> to vector<2x1x256xf32>
    %8 = vector.shape_cast %7 : vector<2x1x256xf32> to vector<2x256xf32>
    %c0_7 = arith.constant 0 : index
    %9 = memref.load %arg2[%c0_7] : memref<162xf32, #tpu.memory_space<smem>>
    %10 = vector.broadcast %9 : f32 to vector<2x256xf32>
    %11 = arith.mulf %10, %8 : vector<2x256xf32>
    %12 = arith.addf %1, %11 : vector<2x256xf32>
    %c27 = arith.constant 27 : index
    %13 = memref.load %arg2[%c27] : memref<162xf32, #tpu.memory_space<smem>>
    %14 = vector.broadcast %13 : f32 to vector<2x256xf32>
    %15 = arith.mulf %14, %8 : vector<2x256xf32>
    %16 = arith.addf %2, %15 : vector<2x256xf32>
    %c54 = arith.constant 54 : index
    %17 = memref.load %arg2[%c54] : memref<162xf32, #tpu.memory_space<smem>>
    %18 = vector.broadcast %17 : f32 to vector<2x256xf32>
    %19 = arith.mulf %18, %8 : vector<2x256xf32>
    %20 = arith.addf %3, %19 : vector<2x256xf32>
    %c81 = arith.constant 81 : index
    %21 = memref.load %arg2[%c81] : memref<162xf32, #tpu.memory_space<smem>>
    %22 = vector.broadcast %21 : f32 to vector<2x256xf32>
    %23 = arith.mulf %22, %8 : vector<2x256xf32>
    %24 = arith.addf %4, %23 : vector<2x256xf32>
    %c108 = arith.constant 108 : index
    %25 = memref.load %arg2[%c108] : memref<162xf32, #tpu.memory_space<smem>>
    %26 = vector.broadcast %25 : f32 to vector<2x256xf32>
    %27 = arith.mulf %26, %8 : vector<2x256xf32>
    %28 = arith.addf %5, %27 : vector<2x256xf32>
    %c135 = arith.constant 135 : index
    %29 = memref.load %arg2[%c135] : memref<162xf32, #tpu.memory_space<smem>>
    %30 = vector.broadcast %29 : f32 to vector<2x256xf32>
    %31 = arith.mulf %30, %8 : vector<2x256xf32>
    %32 = arith.addf %6, %31 : vector<2x256xf32>
    %c255_i32 = arith.constant 255 : i32
    %33 = tpu.dynamic_rotate %8 by %c255_i32 dim 1 : vector<2x256xf32>, i32 -> vector<2x256xf32>
    %c1 = arith.constant 1 : index
    %34 = memref.load %arg2[%c1] : memref<162xf32, #tpu.memory_space<smem>>
    %35 = vector.broadcast %34 : f32 to vector<2x256xf32>
    %36 = arith.mulf %35, %33 : vector<2x256xf32>
    %37 = arith.addf %12, %36 : vector<2x256xf32>
    %c28 = arith.constant 28 : index
    %38 = memref.load %arg2[%c28] : memref<162xf32, #tpu.memory_space<smem>>
    %39 = vector.broadcast %38 : f32 to vector<2x256xf32>
    %40 = arith.mulf %39, %33 : vector<2x256xf32>
    %41 = arith.addf %16, %40 : vector<2x256xf32>
    %c55 = arith.constant 55 : index
    %42 = memref.load %arg2[%c55] : memref<162xf32, #tpu.memory_space<smem>>
    %43 = vector.broadcast %42 : f32 to vector<2x256xf32>
    %44 = arith.mulf %43, %33 : vector<2x256xf32>
    %45 = arith.addf %20, %44 : vector<2x256xf32>
    %c82 = arith.constant 82 : index
    %46 = memref.load %arg2[%c82] : memref<162xf32, #tpu.memory_space<smem>>
    %47 = vector.broadcast %46 : f32 to vector<2x256xf32>
    %48 = arith.mulf %47, %33 : vector<2x256xf32>
    %49 = arith.addf %24, %48 : vector<2x256xf32>
    %c109 = arith.constant 109 : index
    %50 = memref.load %arg2[%c109] : memref<162xf32, #tpu.memory_space<smem>>
    %51 = vector.broadcast %50 : f32 to vector<2x256xf32>
    %52 = arith.mulf %51, %33 : vector<2x256xf32>
    %53 = arith.addf %28, %52 : vector<2x256xf32>
    %c136 = arith.constant 136 : index
    %54 = memref.load %arg2[%c136] : memref<162xf32, #tpu.memory_space<smem>>
    %55 = vector.broadcast %54 : f32 to vector<2x256xf32>
    %56 = arith.mulf %55, %33 : vector<2x256xf32>
    %57 = arith.addf %32, %56 : vector<2x256xf32>
    %c254_i32 = arith.constant 254 : i32
    %58 = tpu.dynamic_rotate %8 by %c254_i32 dim 1 : vector<2x256xf32>, i32 -> vector<2x256xf32>
    %c2 = arith.constant 2 : index
    %59 = memref.load %arg2[%c2] : memref<162xf32, #tpu.memory_space<smem>>
    %60 = vector.broadcast %59 : f32 to vector<2x256xf32>
    %61 = arith.mulf %60, %58 : vector<2x256xf32>
    %62 = arith.addf %37, %61 : vector<2x256xf32>
    %c29 = arith.constant 29 : index
    %63 = memref.load %arg2[%c29] : memref<162xf32, #tpu.memory_space<smem>>
    %64 = vector.broadcast %63 : f32 to vector<2x256xf32>
    %65 = arith.mulf %64, %58 : vector<2x256xf32>
    %66 = arith.addf %41, %65 : vector<2x256xf32>
    %c56 = arith.constant 56 : index
    %67 = memref.load %arg2[%c56] : memref<162xf32, #tpu.memory_space<smem>>
    %68 = vector.broadcast %67 : f32 to vector<2x256xf32>
    %69 = arith.mulf %68, %58 : vector<2x256xf32>
    %70 = arith.addf %45, %69 : vector<2x256xf32>
    %c83 = arith.constant 83 : index
    %71 = memref.load %arg2[%c83] : memref<162xf32, #tpu.memory_space<smem>>
    %72 = vector.broadcast %71 : f32 to vector<2x256xf32>
    %73 = arith.mulf %72, %58 : vector<2x256xf32>
    %74 = arith.addf %49, %73 : vector<2x256xf32>
    %c110 = arith.constant 110 : index
    %75 = memref.load %arg2[%c110] : memref<162xf32, #tpu.memory_space<smem>>
    %76 = vector.broadcast %75 : f32 to vector<2x256xf32>
    %77 = arith.mulf %76, %58 : vector<2x256xf32>
    %78 = arith.addf %53, %77 : vector<2x256xf32>
    %c137 = arith.constant 137 : index
    %79 = memref.load %arg2[%c137] : memref<162xf32, #tpu.memory_space<smem>>
    %80 = vector.broadcast %79 : f32 to vector<2x256xf32>
    %81 = arith.mulf %80, %58 : vector<2x256xf32>
    %82 = arith.addf %57, %81 : vector<2x256xf32>
    %c240_i32 = arith.constant 240 : i32
    %83 = tpu.dynamic_rotate %8 by %c240_i32 dim 1 : vector<2x256xf32>, i32 -> vector<2x256xf32>
    %c3 = arith.constant 3 : index
    %84 = memref.load %arg2[%c3] : memref<162xf32, #tpu.memory_space<smem>>
    %85 = vector.broadcast %84 : f32 to vector<2x256xf32>
    %86 = arith.mulf %85, %83 : vector<2x256xf32>
    %87 = arith.addf %62, %86 : vector<2x256xf32>
    %c30 = arith.constant 30 : index
    %88 = memref.load %arg2[%c30] : memref<162xf32, #tpu.memory_space<smem>>
    %89 = vector.broadcast %88 : f32 to vector<2x256xf32>
    %90 = arith.mulf %89, %83 : vector<2x256xf32>
    %91 = arith.addf %66, %90 : vector<2x256xf32>
    %c57 = arith.constant 57 : index
    %92 = memref.load %arg2[%c57] : memref<162xf32, #tpu.memory_space<smem>>
    %93 = vector.broadcast %92 : f32 to vector<2x256xf32>
    %94 = arith.mulf %93, %83 : vector<2x256xf32>
    %95 = arith.addf %70, %94 : vector<2x256xf32>
    %c84 = arith.constant 84 : index
    %96 = memref.load %arg2[%c84] : memref<162xf32, #tpu.memory_space<smem>>
    %97 = vector.broadcast %96 : f32 to vector<2x256xf32>
    %98 = arith.mulf %97, %83 : vector<2x256xf32>
    %99 = arith.addf %74, %98 : vector<2x256xf32>
    %c111 = arith.constant 111 : index
    %100 = memref.load %arg2[%c111] : memref<162xf32, #tpu.memory_space<smem>>
    %101 = vector.broadcast %100 : f32 to vector<2x256xf32>
    %102 = arith.mulf %101, %83 : vector<2x256xf32>
    %103 = arith.addf %78, %102 : vector<2x256xf32>
    %c138 = arith.constant 138 : index
    %104 = memref.load %arg2[%c138] : memref<162xf32, #tpu.memory_space<smem>>
    %105 = vector.broadcast %104 : f32 to vector<2x256xf32>
    %106 = arith.mulf %105, %83 : vector<2x256xf32>
    %107 = arith.addf %82, %106 : vector<2x256xf32>
    %c239_i32 = arith.constant 239 : i32
    %108 = tpu.dynamic_rotate %8 by %c239_i32 dim 1 : vector<2x256xf32>, i32 -> vector<2x256xf32>
    %c4 = arith.constant 4 : index
    %109 = memref.load %arg2[%c4] : memref<162xf32, #tpu.memory_space<smem>>
    %110 = vector.broadcast %109 : f32 to vector<2x256xf32>
    %111 = arith.mulf %110, %108 : vector<2x256xf32>
    %112 = arith.addf %87, %111 : vector<2x256xf32>
    %c31 = arith.constant 31 : index
    %113 = memref.load %arg2[%c31] : memref<162xf32, #tpu.memory_space<smem>>
    %114 = vector.broadcast %113 : f32 to vector<2x256xf32>
    %115 = arith.mulf %114, %108 : vector<2x256xf32>
    %116 = arith.addf %91, %115 : vector<2x256xf32>
    %c58 = arith.constant 58 : index
    %117 = memref.load %arg2[%c58] : memref<162xf32, #tpu.memory_space<smem>>
    %118 = vector.broadcast %117 : f32 to vector<2x256xf32>
    %119 = arith.mulf %118, %108 : vector<2x256xf32>
    %120 = arith.addf %95, %119 : vector<2x256xf32>
    %c85 = arith.constant 85 : index
    %121 = memref.load %arg2[%c85] : memref<162xf32, #tpu.memory_space<smem>>
    %122 = vector.broadcast %121 : f32 to vector<2x256xf32>
    %123 = arith.mulf %122, %108 : vector<2x256xf32>
    %124 = arith.addf %99, %123 : vector<2x256xf32>
    %c112 = arith.constant 112 : index
    %125 = memref.load %arg2[%c112] : memref<162xf32, #tpu.memory_space<smem>>
    %126 = vector.broadcast %125 : f32 to vector<2x256xf32>
    %127 = arith.mulf %126, %108 : vector<2x256xf32>
    %128 = arith.addf %103, %127 : vector<2x256xf32>
    %c139 = arith.constant 139 : index
    %129 = memref.load %arg2[%c139] : memref<162xf32, #tpu.memory_space<smem>>
    %130 = vector.broadcast %129 : f32 to vector<2x256xf32>
    %131 = arith.mulf %130, %108 : vector<2x256xf32>
    %132 = arith.addf %107, %131 : vector<2x256xf32>
    %c238_i32 = arith.constant 238 : i32
    %133 = tpu.dynamic_rotate %8 by %c238_i32 dim 1 : vector<2x256xf32>, i32 -> vector<2x256xf32>
    %c5 = arith.constant 5 : index
    %134 = memref.load %arg2[%c5] : memref<162xf32, #tpu.memory_space<smem>>
    %135 = vector.broadcast %134 : f32 to vector<2x256xf32>
    %136 = arith.mulf %135, %133 : vector<2x256xf32>
    %137 = arith.addf %112, %136 : vector<2x256xf32>
    %c32 = arith.constant 32 : index
    %138 = memref.load %arg2[%c32] : memref<162xf32, #tpu.memory_space<smem>>
    %139 = vector.broadcast %138 : f32 to vector<2x256xf32>
    %140 = arith.mulf %139, %133 : vector<2x256xf32>
    %141 = arith.addf %116, %140 : vector<2x256xf32>
    %c59 = arith.constant 59 : index
    %142 = memref.load %arg2[%c59] : memref<162xf32, #tpu.memory_space<smem>>
    %143 = vector.broadcast %142 : f32 to vector<2x256xf32>
    %144 = arith.mulf %143, %133 : vector<2x256xf32>
    %145 = arith.addf %120, %144 : vector<2x256xf32>
    %c86 = arith.constant 86 : index
    %146 = memref.load %arg2[%c86] : memref<162xf32, #tpu.memory_space<smem>>
    %147 = vector.broadcast %146 : f32 to vector<2x256xf32>
    %148 = arith.mulf %147, %133 : vector<2x256xf32>
    %149 = arith.addf %124, %148 : vector<2x256xf32>
    %c113 = arith.constant 113 : index
    %150 = memref.load %arg2[%c113] : memref<162xf32, #tpu.memory_space<smem>>
    %151 = vector.broadcast %150 : f32 to vector<2x256xf32>
    %152 = arith.mulf %151, %133 : vector<2x256xf32>
    %153 = arith.addf %128, %152 : vector<2x256xf32>
    %c140 = arith.constant 140 : index
    %154 = memref.load %arg2[%c140] : memref<162xf32, #tpu.memory_space<smem>>
    %155 = vector.broadcast %154 : f32 to vector<2x256xf32>
    %156 = arith.mulf %155, %133 : vector<2x256xf32>
    %157 = arith.addf %132, %156 : vector<2x256xf32>
    %c224_i32 = arith.constant 224 : i32
    %158 = tpu.dynamic_rotate %8 by %c224_i32 dim 1 : vector<2x256xf32>, i32 -> vector<2x256xf32>
    %c6 = arith.constant 6 : index
    %159 = memref.load %arg2[%c6] : memref<162xf32, #tpu.memory_space<smem>>
    %160 = vector.broadcast %159 : f32 to vector<2x256xf32>
    %161 = arith.mulf %160, %158 : vector<2x256xf32>
    %162 = arith.addf %137, %161 : vector<2x256xf32>
    %c33 = arith.constant 33 : index
    %163 = memref.load %arg2[%c33] : memref<162xf32, #tpu.memory_space<smem>>
    %164 = vector.broadcast %163 : f32 to vector<2x256xf32>
    %165 = arith.mulf %164, %158 : vector<2x256xf32>
    %166 = arith.addf %141, %165 : vector<2x256xf32>
    %c60 = arith.constant 60 : index
    %167 = memref.load %arg2[%c60] : memref<162xf32, #tpu.memory_space<smem>>
    %168 = vector.broadcast %167 : f32 to vector<2x256xf32>
    %169 = arith.mulf %168, %158 : vector<2x256xf32>
    %170 = arith.addf %145, %169 : vector<2x256xf32>
    %c87 = arith.constant 87 : index
    %171 = memref.load %arg2[%c87] : memref<162xf32, #tpu.memory_space<smem>>
    %172 = vector.broadcast %171 : f32 to vector<2x256xf32>
    %173 = arith.mulf %172, %158 : vector<2x256xf32>
    %174 = arith.addf %149, %173 : vector<2x256xf32>
    %c114 = arith.constant 114 : index
    %175 = memref.load %arg2[%c114] : memref<162xf32, #tpu.memory_space<smem>>
    %176 = vector.broadcast %175 : f32 to vector<2x256xf32>
    %177 = arith.mulf %176, %158 : vector<2x256xf32>
    %178 = arith.addf %153, %177 : vector<2x256xf32>
    %c141 = arith.constant 141 : index
    %179 = memref.load %arg2[%c141] : memref<162xf32, #tpu.memory_space<smem>>
    %180 = vector.broadcast %179 : f32 to vector<2x256xf32>
    %181 = arith.mulf %180, %158 : vector<2x256xf32>
    %182 = arith.addf %157, %181 : vector<2x256xf32>
    %c223_i32 = arith.constant 223 : i32
    %183 = tpu.dynamic_rotate %8 by %c223_i32 dim 1 : vector<2x256xf32>, i32 -> vector<2x256xf32>
    %c7 = arith.constant 7 : index
    %184 = memref.load %arg2[%c7] : memref<162xf32, #tpu.memory_space<smem>>
    %185 = vector.broadcast %184 : f32 to vector<2x256xf32>
    %186 = arith.mulf %185, %183 : vector<2x256xf32>
    %187 = arith.addf %162, %186 : vector<2x256xf32>
    %c34 = arith.constant 34 : index
    %188 = memref.load %arg2[%c34] : memref<162xf32, #tpu.memory_space<smem>>
    %189 = vector.broadcast %188 : f32 to vector<2x256xf32>
    %190 = arith.mulf %189, %183 : vector<2x256xf32>
    %191 = arith.addf %166, %190 : vector<2x256xf32>
    %c61 = arith.constant 61 : index
    %192 = memref.load %arg2[%c61] : memref<162xf32, #tpu.memory_space<smem>>
    %193 = vector.broadcast %192 : f32 to vector<2x256xf32>
    %194 = arith.mulf %193, %183 : vector<2x256xf32>
    %195 = arith.addf %170, %194 : vector<2x256xf32>
    %c88 = arith.constant 88 : index
    %196 = memref.load %arg2[%c88] : memref<162xf32, #tpu.memory_space<smem>>
    %197 = vector.broadcast %196 : f32 to vector<2x256xf32>
    %198 = arith.mulf %197, %183 : vector<2x256xf32>
    %199 = arith.addf %174, %198 : vector<2x256xf32>
    %c115 = arith.constant 115 : index
    %200 = memref.load %arg2[%c115] : memref<162xf32, #tpu.memory_space<smem>>
    %201 = vector.broadcast %200 : f32 to vector<2x256xf32>
    %202 = arith.mulf %201, %183 : vector<2x256xf32>
    %203 = arith.addf %178, %202 : vector<2x256xf32>
    %c142 = arith.constant 142 : index
    %204 = memref.load %arg2[%c142] : memref<162xf32, #tpu.memory_space<smem>>
    %205 = vector.broadcast %204 : f32 to vector<2x256xf32>
    %206 = arith.mulf %205, %183 : vector<2x256xf32>
    %207 = arith.addf %182, %206 : vector<2x256xf32>
    %c222_i32 = arith.constant 222 : i32
    %208 = tpu.dynamic_rotate %8 by %c222_i32 dim 1 : vector<2x256xf32>, i32 -> vector<2x256xf32>
    %c8 = arith.constant 8 : index
    %209 = memref.load %arg2[%c8] : memref<162xf32, #tpu.memory_space<smem>>
    %210 = vector.broadcast %209 : f32 to vector<2x256xf32>
    %211 = arith.mulf %210, %208 : vector<2x256xf32>
    %212 = arith.addf %187, %211 : vector<2x256xf32>
    %c35 = arith.constant 35 : index
    %213 = memref.load %arg2[%c35] : memref<162xf32, #tpu.memory_space<smem>>
    %214 = vector.broadcast %213 : f32 to vector<2x256xf32>
    %215 = arith.mulf %214, %208 : vector<2x256xf32>
    %216 = arith.addf %191, %215 : vector<2x256xf32>
    %c62 = arith.constant 62 : index
    %217 = memref.load %arg2[%c62] : memref<162xf32, #tpu.memory_space<smem>>
    %218 = vector.broadcast %217 : f32 to vector<2x256xf32>
    %219 = arith.mulf %218, %208 : vector<2x256xf32>
    %220 = arith.addf %195, %219 : vector<2x256xf32>
    %c89 = arith.constant 89 : index
    %221 = memref.load %arg2[%c89] : memref<162xf32, #tpu.memory_space<smem>>
    %222 = vector.broadcast %221 : f32 to vector<2x256xf32>
    %223 = arith.mulf %222, %208 : vector<2x256xf32>
    %224 = arith.addf %199, %223 : vector<2x256xf32>
    %c116 = arith.constant 116 : index
    %225 = memref.load %arg2[%c116] : memref<162xf32, #tpu.memory_space<smem>>
    %226 = vector.broadcast %225 : f32 to vector<2x256xf32>
    %227 = arith.mulf %226, %208 : vector<2x256xf32>
    %228 = arith.addf %203, %227 : vector<2x256xf32>
    %c143 = arith.constant 143 : index
    %229 = memref.load %arg2[%c143] : memref<162xf32, #tpu.memory_space<smem>>
    %230 = vector.broadcast %229 : f32 to vector<2x256xf32>
    %231 = arith.mulf %230, %208 : vector<2x256xf32>
    %232 = arith.addf %207, %231 : vector<2x256xf32>
    %233 = vector.extract_strided_slice %0 {offsets = [0, 1, 0], sizes = [2, 1, 256], strides = [1, 1, 1]} : vector<2x3x256xf32> to vector<2x1x256xf32>
    %234 = vector.shape_cast %233 : vector<2x1x256xf32> to vector<2x256xf32>
    %c9 = arith.constant 9 : index
    %235 = memref.load %arg2[%c9] : memref<162xf32, #tpu.memory_space<smem>>
    %236 = vector.broadcast %235 : f32 to vector<2x256xf32>
    %237 = arith.mulf %236, %234 : vector<2x256xf32>
    %238 = arith.addf %212, %237 : vector<2x256xf32>
    %c36 = arith.constant 36 : index
    %239 = memref.load %arg2[%c36] : memref<162xf32, #tpu.memory_space<smem>>
    %240 = vector.broadcast %239 : f32 to vector<2x256xf32>
    %241 = arith.mulf %240, %234 : vector<2x256xf32>
    %242 = arith.addf %216, %241 : vector<2x256xf32>
    %c63 = arith.constant 63 : index
    %243 = memref.load %arg2[%c63] : memref<162xf32, #tpu.memory_space<smem>>
    %244 = vector.broadcast %243 : f32 to vector<2x256xf32>
    %245 = arith.mulf %244, %234 : vector<2x256xf32>
    %246 = arith.addf %220, %245 : vector<2x256xf32>
    %c90 = arith.constant 90 : index
    %247 = memref.load %arg2[%c90] : memref<162xf32, #tpu.memory_space<smem>>
    %248 = vector.broadcast %247 : f32 to vector<2x256xf32>
    %249 = arith.mulf %248, %234 : vector<2x256xf32>
    %250 = arith.addf %224, %249 : vector<2x256xf32>
    %c117 = arith.constant 117 : index
    %251 = memref.load %arg2[%c117] : memref<162xf32, #tpu.memory_space<smem>>
    %252 = vector.broadcast %251 : f32 to vector<2x256xf32>
    %253 = arith.mulf %252, %234 : vector<2x256xf32>
    %254 = arith.addf %228, %253 : vector<2x256xf32>
    %c144 = arith.constant 144 : index
    %255 = memref.load %arg2[%c144] : memref<162xf32, #tpu.memory_space<smem>>
    %256 = vector.broadcast %255 : f32 to vector<2x256xf32>
    %257 = arith.mulf %256, %234 : vector<2x256xf32>
    %258 = arith.addf %232, %257 : vector<2x256xf32>
    %c255_i32_8 = arith.constant 255 : i32
    %259 = tpu.dynamic_rotate %234 by %c255_i32_8 dim 1 : vector<2x256xf32>, i32 -> vector<2x256xf32>
    %c10 = arith.constant 10 : index
    %260 = memref.load %arg2[%c10] : memref<162xf32, #tpu.memory_space<smem>>
    %261 = vector.broadcast %260 : f32 to vector<2x256xf32>
    %262 = arith.mulf %261, %259 : vector<2x256xf32>
    %263 = arith.addf %238, %262 : vector<2x256xf32>
    %c37 = arith.constant 37 : index
    %264 = memref.load %arg2[%c37] : memref<162xf32, #tpu.memory_space<smem>>
    %265 = vector.broadcast %264 : f32 to vector<2x256xf32>
    %266 = arith.mulf %265, %259 : vector<2x256xf32>
    %267 = arith.addf %242, %266 : vector<2x256xf32>
    %c64 = arith.constant 64 : index
    %268 = memref.load %arg2[%c64] : memref<162xf32, #tpu.memory_space<smem>>
    %269 = vector.broadcast %268 : f32 to vector<2x256xf32>
    %270 = arith.mulf %269, %259 : vector<2x256xf32>
    %271 = arith.addf %246, %270 : vector<2x256xf32>
    %c91 = arith.constant 91 : index
    %272 = memref.load %arg2[%c91] : memref<162xf32, #tpu.memory_space<smem>>
    %273 = vector.broadcast %272 : f32 to vector<2x256xf32>
    %274 = arith.mulf %273, %259 : vector<2x256xf32>
    %275 = arith.addf %250, %274 : vector<2x256xf32>
    %c118 = arith.constant 118 : index
    %276 = memref.load %arg2[%c118] : memref<162xf32, #tpu.memory_space<smem>>
    %277 = vector.broadcast %276 : f32 to vector<2x256xf32>
    %278 = arith.mulf %277, %259 : vector<2x256xf32>
    %279 = arith.addf %254, %278 : vector<2x256xf32>
    %c145 = arith.constant 145 : index
    %280 = memref.load %arg2[%c145] : memref<162xf32, #tpu.memory_space<smem>>
    %281 = vector.broadcast %280 : f32 to vector<2x256xf32>
    %282 = arith.mulf %281, %259 : vector<2x256xf32>
    %283 = arith.addf %258, %282 : vector<2x256xf32>
    %c254_i32_9 = arith.constant 254 : i32
    %284 = tpu.dynamic_rotate %234 by %c254_i32_9 dim 1 : vector<2x256xf32>, i32 -> vector<2x256xf32>
    %c11 = arith.constant 11 : index
    %285 = memref.load %arg2[%c11] : memref<162xf32, #tpu.memory_space<smem>>
    %286 = vector.broadcast %285 : f32 to vector<2x256xf32>
    %287 = arith.mulf %286, %284 : vector<2x256xf32>
    %288 = arith.addf %263, %287 : vector<2x256xf32>
    %c38 = arith.constant 38 : index
    %289 = memref.load %arg2[%c38] : memref<162xf32, #tpu.memory_space<smem>>
    %290 = vector.broadcast %289 : f32 to vector<2x256xf32>
    %291 = arith.mulf %290, %284 : vector<2x256xf32>
    %292 = arith.addf %267, %291 : vector<2x256xf32>
    %c65 = arith.constant 65 : index
    %293 = memref.load %arg2[%c65] : memref<162xf32, #tpu.memory_space<smem>>
    %294 = vector.broadcast %293 : f32 to vector<2x256xf32>
    %295 = arith.mulf %294, %284 : vector<2x256xf32>
    %296 = arith.addf %271, %295 : vector<2x256xf32>
    %c92 = arith.constant 92 : index
    %297 = memref.load %arg2[%c92] : memref<162xf32, #tpu.memory_space<smem>>
    %298 = vector.broadcast %297 : f32 to vector<2x256xf32>
    %299 = arith.mulf %298, %284 : vector<2x256xf32>
    %300 = arith.addf %275, %299 : vector<2x256xf32>
    %c119 = arith.constant 119 : index
    %301 = memref.load %arg2[%c119] : memref<162xf32, #tpu.memory_space<smem>>
    %302 = vector.broadcast %301 : f32 to vector<2x256xf32>
    %303 = arith.mulf %302, %284 : vector<2x256xf32>
    %304 = arith.addf %279, %303 : vector<2x256xf32>
    %c146 = arith.constant 146 : index
    %305 = memref.load %arg2[%c146] : memref<162xf32, #tpu.memory_space<smem>>
    %306 = vector.broadcast %305 : f32 to vector<2x256xf32>
    %307 = arith.mulf %306, %284 : vector<2x256xf32>
    %308 = arith.addf %283, %307 : vector<2x256xf32>
    %c240_i32_10 = arith.constant 240 : i32
    %309 = tpu.dynamic_rotate %234 by %c240_i32_10 dim 1 : vector<2x256xf32>, i32 -> vector<2x256xf32>
    %c12 = arith.constant 12 : index
    %310 = memref.load %arg2[%c12] : memref<162xf32, #tpu.memory_space<smem>>
    %311 = vector.broadcast %310 : f32 to vector<2x256xf32>
    %312 = arith.mulf %311, %309 : vector<2x256xf32>
    %313 = arith.addf %288, %312 : vector<2x256xf32>
    %c39 = arith.constant 39 : index
    %314 = memref.load %arg2[%c39] : memref<162xf32, #tpu.memory_space<smem>>
    %315 = vector.broadcast %314 : f32 to vector<2x256xf32>
    %316 = arith.mulf %315, %309 : vector<2x256xf32>
    %317 = arith.addf %292, %316 : vector<2x256xf32>
    %c66 = arith.constant 66 : index
    %318 = memref.load %arg2[%c66] : memref<162xf32, #tpu.memory_space<smem>>
    %319 = vector.broadcast %318 : f32 to vector<2x256xf32>
    %320 = arith.mulf %319, %309 : vector<2x256xf32>
    %321 = arith.addf %296, %320 : vector<2x256xf32>
    %c93 = arith.constant 93 : index
    %322 = memref.load %arg2[%c93] : memref<162xf32, #tpu.memory_space<smem>>
    %323 = vector.broadcast %322 : f32 to vector<2x256xf32>
    %324 = arith.mulf %323, %309 : vector<2x256xf32>
    %325 = arith.addf %300, %324 : vector<2x256xf32>
    %c120 = arith.constant 120 : index
    %326 = memref.load %arg2[%c120] : memref<162xf32, #tpu.memory_space<smem>>
    %327 = vector.broadcast %326 : f32 to vector<2x256xf32>
    %328 = arith.mulf %327, %309 : vector<2x256xf32>
    %329 = arith.addf %304, %328 : vector<2x256xf32>
    %c147 = arith.constant 147 : index
    %330 = memref.load %arg2[%c147] : memref<162xf32, #tpu.memory_space<smem>>
    %331 = vector.broadcast %330 : f32 to vector<2x256xf32>
    %332 = arith.mulf %331, %309 : vector<2x256xf32>
    %333 = arith.addf %308, %332 : vector<2x256xf32>
    %c239_i32_11 = arith.constant 239 : i32
    %334 = tpu.dynamic_rotate %234 by %c239_i32_11 dim 1 : vector<2x256xf32>, i32 -> vector<2x256xf32>
    %c13 = arith.constant 13 : index
    %335 = memref.load %arg2[%c13] : memref<162xf32, #tpu.memory_space<smem>>
    %336 = vector.broadcast %335 : f32 to vector<2x256xf32>
    %337 = arith.mulf %336, %334 : vector<2x256xf32>
    %338 = arith.addf %313, %337 : vector<2x256xf32>
    %c40 = arith.constant 40 : index
    %339 = memref.load %arg2[%c40] : memref<162xf32, #tpu.memory_space<smem>>
    %340 = vector.broadcast %339 : f32 to vector<2x256xf32>
    %341 = arith.mulf %340, %334 : vector<2x256xf32>
    %342 = arith.addf %317, %341 : vector<2x256xf32>
    %c67 = arith.constant 67 : index
    %343 = memref.load %arg2[%c67] : memref<162xf32, #tpu.memory_space<smem>>
    %344 = vector.broadcast %343 : f32 to vector<2x256xf32>
    %345 = arith.mulf %344, %334 : vector<2x256xf32>
    %346 = arith.addf %321, %345 : vector<2x256xf32>
    %c94 = arith.constant 94 : index
    %347 = memref.load %arg2[%c94] : memref<162xf32, #tpu.memory_space<smem>>
    %348 = vector.broadcast %347 : f32 to vector<2x256xf32>
    %349 = arith.mulf %348, %334 : vector<2x256xf32>
    %350 = arith.addf %325, %349 : vector<2x256xf32>
    %c121 = arith.constant 121 : index
    %351 = memref.load %arg2[%c121] : memref<162xf32, #tpu.memory_space<smem>>
    %352 = vector.broadcast %351 : f32 to vector<2x256xf32>
    %353 = arith.mulf %352, %334 : vector<2x256xf32>
    %354 = arith.addf %329, %353 : vector<2x256xf32>
    %c148 = arith.constant 148 : index
    %355 = memref.load %arg2[%c148] : memref<162xf32, #tpu.memory_space<smem>>
    %356 = vector.broadcast %355 : f32 to vector<2x256xf32>
    %357 = arith.mulf %356, %334 : vector<2x256xf32>
    %358 = arith.addf %333, %357 : vector<2x256xf32>
    %c238_i32_12 = arith.constant 238 : i32
    %359 = tpu.dynamic_rotate %234 by %c238_i32_12 dim 1 : vector<2x256xf32>, i32 -> vector<2x256xf32>
    %c14 = arith.constant 14 : index
    %360 = memref.load %arg2[%c14] : memref<162xf32, #tpu.memory_space<smem>>
    %361 = vector.broadcast %360 : f32 to vector<2x256xf32>
    %362 = arith.mulf %361, %359 : vector<2x256xf32>
    %363 = arith.addf %338, %362 : vector<2x256xf32>
    %c41 = arith.constant 41 : index
    %364 = memref.load %arg2[%c41] : memref<162xf32, #tpu.memory_space<smem>>
    %365 = vector.broadcast %364 : f32 to vector<2x256xf32>
    %366 = arith.mulf %365, %359 : vector<2x256xf32>
    %367 = arith.addf %342, %366 : vector<2x256xf32>
    %c68 = arith.constant 68 : index
    %368 = memref.load %arg2[%c68] : memref<162xf32, #tpu.memory_space<smem>>
    %369 = vector.broadcast %368 : f32 to vector<2x256xf32>
    %370 = arith.mulf %369, %359 : vector<2x256xf32>
    %371 = arith.addf %346, %370 : vector<2x256xf32>
    %c95 = arith.constant 95 : index
    %372 = memref.load %arg2[%c95] : memref<162xf32, #tpu.memory_space<smem>>
    %373 = vector.broadcast %372 : f32 to vector<2x256xf32>
    %374 = arith.mulf %373, %359 : vector<2x256xf32>
    %375 = arith.addf %350, %374 : vector<2x256xf32>
    %c122 = arith.constant 122 : index
    %376 = memref.load %arg2[%c122] : memref<162xf32, #tpu.memory_space<smem>>
    %377 = vector.broadcast %376 : f32 to vector<2x256xf32>
    %378 = arith.mulf %377, %359 : vector<2x256xf32>
    %379 = arith.addf %354, %378 : vector<2x256xf32>
    %c149 = arith.constant 149 : index
    %380 = memref.load %arg2[%c149] : memref<162xf32, #tpu.memory_space<smem>>
    %381 = vector.broadcast %380 : f32 to vector<2x256xf32>
    %382 = arith.mulf %381, %359 : vector<2x256xf32>
    %383 = arith.addf %358, %382 : vector<2x256xf32>
    %c224_i32_13 = arith.constant 224 : i32
    %384 = tpu.dynamic_rotate %234 by %c224_i32_13 dim 1 : vector<2x256xf32>, i32 -> vector<2x256xf32>
    %c15 = arith.constant 15 : index
    %385 = memref.load %arg2[%c15] : memref<162xf32, #tpu.memory_space<smem>>
    %386 = vector.broadcast %385 : f32 to vector<2x256xf32>
    %387 = arith.mulf %386, %384 : vector<2x256xf32>
    %388 = arith.addf %363, %387 : vector<2x256xf32>
    %c42 = arith.constant 42 : index
    %389 = memref.load %arg2[%c42] : memref<162xf32, #tpu.memory_space<smem>>
    %390 = vector.broadcast %389 : f32 to vector<2x256xf32>
    %391 = arith.mulf %390, %384 : vector<2x256xf32>
    %392 = arith.addf %367, %391 : vector<2x256xf32>
    %c69 = arith.constant 69 : index
    %393 = memref.load %arg2[%c69] : memref<162xf32, #tpu.memory_space<smem>>
    %394 = vector.broadcast %393 : f32 to vector<2x256xf32>
    %395 = arith.mulf %394, %384 : vector<2x256xf32>
    %396 = arith.addf %371, %395 : vector<2x256xf32>
    %c96 = arith.constant 96 : index
    %397 = memref.load %arg2[%c96] : memref<162xf32, #tpu.memory_space<smem>>
    %398 = vector.broadcast %397 : f32 to vector<2x256xf32>
    %399 = arith.mulf %398, %384 : vector<2x256xf32>
    %400 = arith.addf %375, %399 : vector<2x256xf32>
    %c123 = arith.constant 123 : index
    %401 = memref.load %arg2[%c123] : memref<162xf32, #tpu.memory_space<smem>>
    %402 = vector.broadcast %401 : f32 to vector<2x256xf32>
    %403 = arith.mulf %402, %384 : vector<2x256xf32>
    %404 = arith.addf %379, %403 : vector<2x256xf32>
    %c150 = arith.constant 150 : index
    %405 = memref.load %arg2[%c150] : memref<162xf32, #tpu.memory_space<smem>>
    %406 = vector.broadcast %405 : f32 to vector<2x256xf32>
    %407 = arith.mulf %406, %384 : vector<2x256xf32>
    %408 = arith.addf %383, %407 : vector<2x256xf32>
    %c223_i32_14 = arith.constant 223 : i32
    %409 = tpu.dynamic_rotate %234 by %c223_i32_14 dim 1 : vector<2x256xf32>, i32 -> vector<2x256xf32>
    %c16 = arith.constant 16 : index
    %410 = memref.load %arg2[%c16] : memref<162xf32, #tpu.memory_space<smem>>
    %411 = vector.broadcast %410 : f32 to vector<2x256xf32>
    %412 = arith.mulf %411, %409 : vector<2x256xf32>
    %413 = arith.addf %388, %412 : vector<2x256xf32>
    %c43 = arith.constant 43 : index
    %414 = memref.load %arg2[%c43] : memref<162xf32, #tpu.memory_space<smem>>
    %415 = vector.broadcast %414 : f32 to vector<2x256xf32>
    %416 = arith.mulf %415, %409 : vector<2x256xf32>
    %417 = arith.addf %392, %416 : vector<2x256xf32>
    %c70 = arith.constant 70 : index
    %418 = memref.load %arg2[%c70] : memref<162xf32, #tpu.memory_space<smem>>
    %419 = vector.broadcast %418 : f32 to vector<2x256xf32>
    %420 = arith.mulf %419, %409 : vector<2x256xf32>
    %421 = arith.addf %396, %420 : vector<2x256xf32>
    %c97 = arith.constant 97 : index
    %422 = memref.load %arg2[%c97] : memref<162xf32, #tpu.memory_space<smem>>
    %423 = vector.broadcast %422 : f32 to vector<2x256xf32>
    %424 = arith.mulf %423, %409 : vector<2x256xf32>
    %425 = arith.addf %400, %424 : vector<2x256xf32>
    %c124 = arith.constant 124 : index
    %426 = memref.load %arg2[%c124] : memref<162xf32, #tpu.memory_space<smem>>
    %427 = vector.broadcast %426 : f32 to vector<2x256xf32>
    %428 = arith.mulf %427, %409 : vector<2x256xf32>
    %429 = arith.addf %404, %428 : vector<2x256xf32>
    %c151 = arith.constant 151 : index
    %430 = memref.load %arg2[%c151] : memref<162xf32, #tpu.memory_space<smem>>
    %431 = vector.broadcast %430 : f32 to vector<2x256xf32>
    %432 = arith.mulf %431, %409 : vector<2x256xf32>
    %433 = arith.addf %408, %432 : vector<2x256xf32>
    %c222_i32_15 = arith.constant 222 : i32
    %434 = tpu.dynamic_rotate %234 by %c222_i32_15 dim 1 : vector<2x256xf32>, i32 -> vector<2x256xf32>
    %c17 = arith.constant 17 : index
    %435 = memref.load %arg2[%c17] : memref<162xf32, #tpu.memory_space<smem>>
    %436 = vector.broadcast %435 : f32 to vector<2x256xf32>
    %437 = arith.mulf %436, %434 : vector<2x256xf32>
    %438 = arith.addf %413, %437 : vector<2x256xf32>
    %c44 = arith.constant 44 : index
    %439 = memref.load %arg2[%c44] : memref<162xf32, #tpu.memory_space<smem>>
    %440 = vector.broadcast %439 : f32 to vector<2x256xf32>
    %441 = arith.mulf %440, %434 : vector<2x256xf32>
    %442 = arith.addf %417, %441 : vector<2x256xf32>
    %c71 = arith.constant 71 : index
    %443 = memref.load %arg2[%c71] : memref<162xf32, #tpu.memory_space<smem>>
    %444 = vector.broadcast %443 : f32 to vector<2x256xf32>
    %445 = arith.mulf %444, %434 : vector<2x256xf32>
    %446 = arith.addf %421, %445 : vector<2x256xf32>
    %c98 = arith.constant 98 : index
    %447 = memref.load %arg2[%c98] : memref<162xf32, #tpu.memory_space<smem>>
    %448 = vector.broadcast %447 : f32 to vector<2x256xf32>
    %449 = arith.mulf %448, %434 : vector<2x256xf32>
    %450 = arith.addf %425, %449 : vector<2x256xf32>
    %c125 = arith.constant 125 : index
    %451 = memref.load %arg2[%c125] : memref<162xf32, #tpu.memory_space<smem>>
    %452 = vector.broadcast %451 : f32 to vector<2x256xf32>
    %453 = arith.mulf %452, %434 : vector<2x256xf32>
    %454 = arith.addf %429, %453 : vector<2x256xf32>
    %c152 = arith.constant 152 : index
    %455 = memref.load %arg2[%c152] : memref<162xf32, #tpu.memory_space<smem>>
    %456 = vector.broadcast %455 : f32 to vector<2x256xf32>
    %457 = arith.mulf %456, %434 : vector<2x256xf32>
    %458 = arith.addf %433, %457 : vector<2x256xf32>
    %459 = vector.extract_strided_slice %0 {offsets = [0, 2, 0], sizes = [2, 1, 256], strides = [1, 1, 1]} : vector<2x3x256xf32> to vector<2x1x256xf32>
    %460 = vector.shape_cast %459 : vector<2x1x256xf32> to vector<2x256xf32>
    %c18 = arith.constant 18 : index
    %461 = memref.load %arg2[%c18] : memref<162xf32, #tpu.memory_space<smem>>
    %462 = vector.broadcast %461 : f32 to vector<2x256xf32>
    %463 = arith.mulf %462, %460 : vector<2x256xf32>
    %464 = arith.addf %438, %463 : vector<2x256xf32>
    %c45 = arith.constant 45 : index
    %465 = memref.load %arg2[%c45] : memref<162xf32, #tpu.memory_space<smem>>
    %466 = vector.broadcast %465 : f32 to vector<2x256xf32>
    %467 = arith.mulf %466, %460 : vector<2x256xf32>
    %468 = arith.addf %442, %467 : vector<2x256xf32>
    %c72 = arith.constant 72 : index
    %469 = memref.load %arg2[%c72] : memref<162xf32, #tpu.memory_space<smem>>
    %470 = vector.broadcast %469 : f32 to vector<2x256xf32>
    %471 = arith.mulf %470, %460 : vector<2x256xf32>
    %472 = arith.addf %446, %471 : vector<2x256xf32>
    %c99 = arith.constant 99 : index
    %473 = memref.load %arg2[%c99] : memref<162xf32, #tpu.memory_space<smem>>
    %474 = vector.broadcast %473 : f32 to vector<2x256xf32>
    %475 = arith.mulf %474, %460 : vector<2x256xf32>
    %476 = arith.addf %450, %475 : vector<2x256xf32>
    %c126 = arith.constant 126 : index
    %477 = memref.load %arg2[%c126] : memref<162xf32, #tpu.memory_space<smem>>
    %478 = vector.broadcast %477 : f32 to vector<2x256xf32>
    %479 = arith.mulf %478, %460 : vector<2x256xf32>
    %480 = arith.addf %454, %479 : vector<2x256xf32>
    %c153 = arith.constant 153 : index
    %481 = memref.load %arg2[%c153] : memref<162xf32, #tpu.memory_space<smem>>
    %482 = vector.broadcast %481 : f32 to vector<2x256xf32>
    %483 = arith.mulf %482, %460 : vector<2x256xf32>
    %484 = arith.addf %458, %483 : vector<2x256xf32>
    %c255_i32_16 = arith.constant 255 : i32
    %485 = tpu.dynamic_rotate %460 by %c255_i32_16 dim 1 : vector<2x256xf32>, i32 -> vector<2x256xf32>
    %c19 = arith.constant 19 : index
    %486 = memref.load %arg2[%c19] : memref<162xf32, #tpu.memory_space<smem>>
    %487 = vector.broadcast %486 : f32 to vector<2x256xf32>
    %488 = arith.mulf %487, %485 : vector<2x256xf32>
    %489 = arith.addf %464, %488 : vector<2x256xf32>
    %c46 = arith.constant 46 : index
    %490 = memref.load %arg2[%c46] : memref<162xf32, #tpu.memory_space<smem>>
    %491 = vector.broadcast %490 : f32 to vector<2x256xf32>
    %492 = arith.mulf %491, %485 : vector<2x256xf32>
    %493 = arith.addf %468, %492 : vector<2x256xf32>
    %c73 = arith.constant 73 : index
    %494 = memref.load %arg2[%c73] : memref<162xf32, #tpu.memory_space<smem>>
    %495 = vector.broadcast %494 : f32 to vector<2x256xf32>
    %496 = arith.mulf %495, %485 : vector<2x256xf32>
    %497 = arith.addf %472, %496 : vector<2x256xf32>
    %c100 = arith.constant 100 : index
    %498 = memref.load %arg2[%c100] : memref<162xf32, #tpu.memory_space<smem>>
    %499 = vector.broadcast %498 : f32 to vector<2x256xf32>
    %500 = arith.mulf %499, %485 : vector<2x256xf32>
    %501 = arith.addf %476, %500 : vector<2x256xf32>
    %c127 = arith.constant 127 : index
    %502 = memref.load %arg2[%c127] : memref<162xf32, #tpu.memory_space<smem>>
    %503 = vector.broadcast %502 : f32 to vector<2x256xf32>
    %504 = arith.mulf %503, %485 : vector<2x256xf32>
    %505 = arith.addf %480, %504 : vector<2x256xf32>
    %c154 = arith.constant 154 : index
    %506 = memref.load %arg2[%c154] : memref<162xf32, #tpu.memory_space<smem>>
    %507 = vector.broadcast %506 : f32 to vector<2x256xf32>
    %508 = arith.mulf %507, %485 : vector<2x256xf32>
    %509 = arith.addf %484, %508 : vector<2x256xf32>
    %c254_i32_17 = arith.constant 254 : i32
    %510 = tpu.dynamic_rotate %460 by %c254_i32_17 dim 1 : vector<2x256xf32>, i32 -> vector<2x256xf32>
    %c20 = arith.constant 20 : index
    %511 = memref.load %arg2[%c20] : memref<162xf32, #tpu.memory_space<smem>>
    %512 = vector.broadcast %511 : f32 to vector<2x256xf32>
    %513 = arith.mulf %512, %510 : vector<2x256xf32>
    %514 = arith.addf %489, %513 : vector<2x256xf32>
    %c47 = arith.constant 47 : index
    %515 = memref.load %arg2[%c47] : memref<162xf32, #tpu.memory_space<smem>>
    %516 = vector.broadcast %515 : f32 to vector<2x256xf32>
    %517 = arith.mulf %516, %510 : vector<2x256xf32>
    %518 = arith.addf %493, %517 : vector<2x256xf32>
    %c74 = arith.constant 74 : index
    %519 = memref.load %arg2[%c74] : memref<162xf32, #tpu.memory_space<smem>>
    %520 = vector.broadcast %519 : f32 to vector<2x256xf32>
    %521 = arith.mulf %520, %510 : vector<2x256xf32>
    %522 = arith.addf %497, %521 : vector<2x256xf32>
    %c101 = arith.constant 101 : index
    %523 = memref.load %arg2[%c101] : memref<162xf32, #tpu.memory_space<smem>>
    %524 = vector.broadcast %523 : f32 to vector<2x256xf32>
    %525 = arith.mulf %524, %510 : vector<2x256xf32>
    %526 = arith.addf %501, %525 : vector<2x256xf32>
    %c128 = arith.constant 128 : index
    %527 = memref.load %arg2[%c128] : memref<162xf32, #tpu.memory_space<smem>>
    %528 = vector.broadcast %527 : f32 to vector<2x256xf32>
    %529 = arith.mulf %528, %510 : vector<2x256xf32>
    %530 = arith.addf %505, %529 : vector<2x256xf32>
    %c155 = arith.constant 155 : index
    %531 = memref.load %arg2[%c155] : memref<162xf32, #tpu.memory_space<smem>>
    %532 = vector.broadcast %531 : f32 to vector<2x256xf32>
    %533 = arith.mulf %532, %510 : vector<2x256xf32>
    %534 = arith.addf %509, %533 : vector<2x256xf32>
    %c240_i32_18 = arith.constant 240 : i32
    %535 = tpu.dynamic_rotate %460 by %c240_i32_18 dim 1 : vector<2x256xf32>, i32 -> vector<2x256xf32>
    %c21 = arith.constant 21 : index
    %536 = memref.load %arg2[%c21] : memref<162xf32, #tpu.memory_space<smem>>
    %537 = vector.broadcast %536 : f32 to vector<2x256xf32>
    %538 = arith.mulf %537, %535 : vector<2x256xf32>
    %539 = arith.addf %514, %538 : vector<2x256xf32>
    %c48 = arith.constant 48 : index
    %540 = memref.load %arg2[%c48] : memref<162xf32, #tpu.memory_space<smem>>
    %541 = vector.broadcast %540 : f32 to vector<2x256xf32>
    %542 = arith.mulf %541, %535 : vector<2x256xf32>
    %543 = arith.addf %518, %542 : vector<2x256xf32>
    %c75 = arith.constant 75 : index
    %544 = memref.load %arg2[%c75] : memref<162xf32, #tpu.memory_space<smem>>
    %545 = vector.broadcast %544 : f32 to vector<2x256xf32>
    %546 = arith.mulf %545, %535 : vector<2x256xf32>
    %547 = arith.addf %522, %546 : vector<2x256xf32>
    %c102 = arith.constant 102 : index
    %548 = memref.load %arg2[%c102] : memref<162xf32, #tpu.memory_space<smem>>
    %549 = vector.broadcast %548 : f32 to vector<2x256xf32>
    %550 = arith.mulf %549, %535 : vector<2x256xf32>
    %551 = arith.addf %526, %550 : vector<2x256xf32>
    %c129 = arith.constant 129 : index
    %552 = memref.load %arg2[%c129] : memref<162xf32, #tpu.memory_space<smem>>
    %553 = vector.broadcast %552 : f32 to vector<2x256xf32>
    %554 = arith.mulf %553, %535 : vector<2x256xf32>
    %555 = arith.addf %530, %554 : vector<2x256xf32>
    %c156 = arith.constant 156 : index
    %556 = memref.load %arg2[%c156] : memref<162xf32, #tpu.memory_space<smem>>
    %557 = vector.broadcast %556 : f32 to vector<2x256xf32>
    %558 = arith.mulf %557, %535 : vector<2x256xf32>
    %559 = arith.addf %534, %558 : vector<2x256xf32>
    %c239_i32_19 = arith.constant 239 : i32
    %560 = tpu.dynamic_rotate %460 by %c239_i32_19 dim 1 : vector<2x256xf32>, i32 -> vector<2x256xf32>
    %c22 = arith.constant 22 : index
    %561 = memref.load %arg2[%c22] : memref<162xf32, #tpu.memory_space<smem>>
    %562 = vector.broadcast %561 : f32 to vector<2x256xf32>
    %563 = arith.mulf %562, %560 : vector<2x256xf32>
    %564 = arith.addf %539, %563 : vector<2x256xf32>
    %c49 = arith.constant 49 : index
    %565 = memref.load %arg2[%c49] : memref<162xf32, #tpu.memory_space<smem>>
    %566 = vector.broadcast %565 : f32 to vector<2x256xf32>
    %567 = arith.mulf %566, %560 : vector<2x256xf32>
    %568 = arith.addf %543, %567 : vector<2x256xf32>
    %c76 = arith.constant 76 : index
    %569 = memref.load %arg2[%c76] : memref<162xf32, #tpu.memory_space<smem>>
    %570 = vector.broadcast %569 : f32 to vector<2x256xf32>
    %571 = arith.mulf %570, %560 : vector<2x256xf32>
    %572 = arith.addf %547, %571 : vector<2x256xf32>
    %c103 = arith.constant 103 : index
    %573 = memref.load %arg2[%c103] : memref<162xf32, #tpu.memory_space<smem>>
    %574 = vector.broadcast %573 : f32 to vector<2x256xf32>
    %575 = arith.mulf %574, %560 : vector<2x256xf32>
    %576 = arith.addf %551, %575 : vector<2x256xf32>
    %c130 = arith.constant 130 : index
    %577 = memref.load %arg2[%c130] : memref<162xf32, #tpu.memory_space<smem>>
    %578 = vector.broadcast %577 : f32 to vector<2x256xf32>
    %579 = arith.mulf %578, %560 : vector<2x256xf32>
    %580 = arith.addf %555, %579 : vector<2x256xf32>
    %c157 = arith.constant 157 : index
    %581 = memref.load %arg2[%c157] : memref<162xf32, #tpu.memory_space<smem>>
    %582 = vector.broadcast %581 : f32 to vector<2x256xf32>
    %583 = arith.mulf %582, %560 : vector<2x256xf32>
    %584 = arith.addf %559, %583 : vector<2x256xf32>
    %c238_i32_20 = arith.constant 238 : i32
    %585 = tpu.dynamic_rotate %460 by %c238_i32_20 dim 1 : vector<2x256xf32>, i32 -> vector<2x256xf32>
    %c23 = arith.constant 23 : index
    %586 = memref.load %arg2[%c23] : memref<162xf32, #tpu.memory_space<smem>>
    %587 = vector.broadcast %586 : f32 to vector<2x256xf32>
    %588 = arith.mulf %587, %585 : vector<2x256xf32>
    %589 = arith.addf %564, %588 : vector<2x256xf32>
    %c50 = arith.constant 50 : index
    %590 = memref.load %arg2[%c50] : memref<162xf32, #tpu.memory_space<smem>>
    %591 = vector.broadcast %590 : f32 to vector<2x256xf32>
    %592 = arith.mulf %591, %585 : vector<2x256xf32>
    %593 = arith.addf %568, %592 : vector<2x256xf32>
    %c77 = arith.constant 77 : index
    %594 = memref.load %arg2[%c77] : memref<162xf32, #tpu.memory_space<smem>>
    %595 = vector.broadcast %594 : f32 to vector<2x256xf32>
    %596 = arith.mulf %595, %585 : vector<2x256xf32>
    %597 = arith.addf %572, %596 : vector<2x256xf32>
    %c104 = arith.constant 104 : index
    %598 = memref.load %arg2[%c104] : memref<162xf32, #tpu.memory_space<smem>>
    %599 = vector.broadcast %598 : f32 to vector<2x256xf32>
    %600 = arith.mulf %599, %585 : vector<2x256xf32>
    %601 = arith.addf %576, %600 : vector<2x256xf32>
    %c131 = arith.constant 131 : index
    %602 = memref.load %arg2[%c131] : memref<162xf32, #tpu.memory_space<smem>>
    %603 = vector.broadcast %602 : f32 to vector<2x256xf32>
    %604 = arith.mulf %603, %585 : vector<2x256xf32>
    %605 = arith.addf %580, %604 : vector<2x256xf32>
    %c158 = arith.constant 158 : index
    %606 = memref.load %arg2[%c158] : memref<162xf32, #tpu.memory_space<smem>>
    %607 = vector.broadcast %606 : f32 to vector<2x256xf32>
    %608 = arith.mulf %607, %585 : vector<2x256xf32>
    %609 = arith.addf %584, %608 : vector<2x256xf32>
    %c224_i32_21 = arith.constant 224 : i32
    %610 = tpu.dynamic_rotate %460 by %c224_i32_21 dim 1 : vector<2x256xf32>, i32 -> vector<2x256xf32>
    %c24 = arith.constant 24 : index
    %611 = memref.load %arg2[%c24] : memref<162xf32, #tpu.memory_space<smem>>
    %612 = vector.broadcast %611 : f32 to vector<2x256xf32>
    %613 = arith.mulf %612, %610 : vector<2x256xf32>
    %614 = arith.addf %589, %613 : vector<2x256xf32>
    %c51 = arith.constant 51 : index
    %615 = memref.load %arg2[%c51] : memref<162xf32, #tpu.memory_space<smem>>
    %616 = vector.broadcast %615 : f32 to vector<2x256xf32>
    %617 = arith.mulf %616, %610 : vector<2x256xf32>
    %618 = arith.addf %593, %617 : vector<2x256xf32>
    %c78 = arith.constant 78 : index
    %619 = memref.load %arg2[%c78] : memref<162xf32, #tpu.memory_space<smem>>
    %620 = vector.broadcast %619 : f32 to vector<2x256xf32>
    %621 = arith.mulf %620, %610 : vector<2x256xf32>
    %622 = arith.addf %597, %621 : vector<2x256xf32>
    %c105 = arith.constant 105 : index
    %623 = memref.load %arg2[%c105] : memref<162xf32, #tpu.memory_space<smem>>
    %624 = vector.broadcast %623 : f32 to vector<2x256xf32>
    %625 = arith.mulf %624, %610 : vector<2x256xf32>
    %626 = arith.addf %601, %625 : vector<2x256xf32>
    %c132 = arith.constant 132 : index
    %627 = memref.load %arg2[%c132] : memref<162xf32, #tpu.memory_space<smem>>
    %628 = vector.broadcast %627 : f32 to vector<2x256xf32>
    %629 = arith.mulf %628, %610 : vector<2x256xf32>
    %630 = arith.addf %605, %629 : vector<2x256xf32>
    %c159 = arith.constant 159 : index
    %631 = memref.load %arg2[%c159] : memref<162xf32, #tpu.memory_space<smem>>
    %632 = vector.broadcast %631 : f32 to vector<2x256xf32>
    %633 = arith.mulf %632, %610 : vector<2x256xf32>
    %634 = arith.addf %609, %633 : vector<2x256xf32>
    %c223_i32_22 = arith.constant 223 : i32
    %635 = tpu.dynamic_rotate %460 by %c223_i32_22 dim 1 : vector<2x256xf32>, i32 -> vector<2x256xf32>
    %c25 = arith.constant 25 : index
    %636 = memref.load %arg2[%c25] : memref<162xf32, #tpu.memory_space<smem>>
    %637 = vector.broadcast %636 : f32 to vector<2x256xf32>
    %638 = arith.mulf %637, %635 : vector<2x256xf32>
    %639 = arith.addf %614, %638 : vector<2x256xf32>
    %c52 = arith.constant 52 : index
    %640 = memref.load %arg2[%c52] : memref<162xf32, #tpu.memory_space<smem>>
    %641 = vector.broadcast %640 : f32 to vector<2x256xf32>
    %642 = arith.mulf %641, %635 : vector<2x256xf32>
    %643 = arith.addf %618, %642 : vector<2x256xf32>
    %c79 = arith.constant 79 : index
    %644 = memref.load %arg2[%c79] : memref<162xf32, #tpu.memory_space<smem>>
    %645 = vector.broadcast %644 : f32 to vector<2x256xf32>
    %646 = arith.mulf %645, %635 : vector<2x256xf32>
    %647 = arith.addf %622, %646 : vector<2x256xf32>
    %c106 = arith.constant 106 : index
    %648 = memref.load %arg2[%c106] : memref<162xf32, #tpu.memory_space<smem>>
    %649 = vector.broadcast %648 : f32 to vector<2x256xf32>
    %650 = arith.mulf %649, %635 : vector<2x256xf32>
    %651 = arith.addf %626, %650 : vector<2x256xf32>
    %c133 = arith.constant 133 : index
    %652 = memref.load %arg2[%c133] : memref<162xf32, #tpu.memory_space<smem>>
    %653 = vector.broadcast %652 : f32 to vector<2x256xf32>
    %654 = arith.mulf %653, %635 : vector<2x256xf32>
    %655 = arith.addf %630, %654 : vector<2x256xf32>
    %c160 = arith.constant 160 : index
    %656 = memref.load %arg2[%c160] : memref<162xf32, #tpu.memory_space<smem>>
    %657 = vector.broadcast %656 : f32 to vector<2x256xf32>
    %658 = arith.mulf %657, %635 : vector<2x256xf32>
    %659 = arith.addf %634, %658 : vector<2x256xf32>
    %c222_i32_23 = arith.constant 222 : i32
    %660 = tpu.dynamic_rotate %460 by %c222_i32_23 dim 1 : vector<2x256xf32>, i32 -> vector<2x256xf32>
    %c26 = arith.constant 26 : index
    %661 = memref.load %arg2[%c26] : memref<162xf32, #tpu.memory_space<smem>>
    %662 = vector.broadcast %661 : f32 to vector<2x256xf32>
    %663 = arith.mulf %662, %660 : vector<2x256xf32>
    %664 = arith.addf %639, %663 : vector<2x256xf32>
    %c53 = arith.constant 53 : index
    %665 = memref.load %arg2[%c53] : memref<162xf32, #tpu.memory_space<smem>>
    %666 = vector.broadcast %665 : f32 to vector<2x256xf32>
    %667 = arith.mulf %666, %660 : vector<2x256xf32>
    %668 = arith.addf %643, %667 : vector<2x256xf32>
    %c80 = arith.constant 80 : index
    %669 = memref.load %arg2[%c80] : memref<162xf32, #tpu.memory_space<smem>>
    %670 = vector.broadcast %669 : f32 to vector<2x256xf32>
    %671 = arith.mulf %670, %660 : vector<2x256xf32>
    %672 = arith.addf %647, %671 : vector<2x256xf32>
    %c107 = arith.constant 107 : index
    %673 = memref.load %arg2[%c107] : memref<162xf32, #tpu.memory_space<smem>>
    %674 = vector.broadcast %673 : f32 to vector<2x256xf32>
    %675 = arith.mulf %674, %660 : vector<2x256xf32>
    %676 = arith.addf %651, %675 : vector<2x256xf32>
    %c134 = arith.constant 134 : index
    %677 = memref.load %arg2[%c134] : memref<162xf32, #tpu.memory_space<smem>>
    %678 = vector.broadcast %677 : f32 to vector<2x256xf32>
    %679 = arith.mulf %678, %660 : vector<2x256xf32>
    %680 = arith.addf %655, %679 : vector<2x256xf32>
    %c161 = arith.constant 161 : index
    %681 = memref.load %arg2[%c161] : memref<162xf32, #tpu.memory_space<smem>>
    %682 = vector.broadcast %681 : f32 to vector<2x256xf32>
    %683 = arith.mulf %682, %660 : vector<2x256xf32>
    %684 = arith.addf %659, %683 : vector<2x256xf32>
    %c0_24 = arith.constant 0 : index
    %685 = memref.load %arg3[%c0_24] : memref<6xf32, #tpu.memory_space<smem>>
    %686 = vector.broadcast %685 : f32 to vector<2x256xf32>
    %687 = arith.addf %664, %686 : vector<2x256xf32>
    %c1_25 = arith.constant 1 : index
    %688 = memref.load %arg3[%c1_25] : memref<6xf32, #tpu.memory_space<smem>>
    %689 = vector.broadcast %688 : f32 to vector<2x256xf32>
    %690 = arith.addf %668, %689 : vector<2x256xf32>
    %c2_26 = arith.constant 2 : index
    %691 = memref.load %arg3[%c2_26] : memref<6xf32, #tpu.memory_space<smem>>
    %692 = vector.broadcast %691 : f32 to vector<2x256xf32>
    %693 = arith.addf %672, %692 : vector<2x256xf32>
    %c3_27 = arith.constant 3 : index
    %694 = memref.load %arg3[%c3_27] : memref<6xf32, #tpu.memory_space<smem>>
    %695 = vector.broadcast %694 : f32 to vector<2x256xf32>
    %696 = arith.addf %676, %695 : vector<2x256xf32>
    %c4_28 = arith.constant 4 : index
    %697 = memref.load %arg3[%c4_28] : memref<6xf32, #tpu.memory_space<smem>>
    %698 = vector.broadcast %697 : f32 to vector<2x256xf32>
    %699 = arith.addf %680, %698 : vector<2x256xf32>
    %c5_29 = arith.constant 5 : index
    %700 = memref.load %arg3[%c5_29] : memref<6xf32, #tpu.memory_space<smem>>
    %701 = vector.broadcast %700 : f32 to vector<2x256xf32>
    %702 = arith.addf %684, %701 : vector<2x256xf32>
    %703 = vector.shape_cast %687 : vector<2x256xf32> to vector<2x1x256xf32>
    %704 = vector.shape_cast %690 : vector<2x256xf32> to vector<2x1x256xf32>
    %705 = vector.shape_cast %693 : vector<2x256xf32> to vector<2x1x256xf32>
    %706 = vector.shape_cast %696 : vector<2x256xf32> to vector<2x1x256xf32>
    %707 = vector.shape_cast %699 : vector<2x256xf32> to vector<2x1x256xf32>
    %708 = vector.shape_cast %702 : vector<2x256xf32> to vector<2x1x256xf32>
    %709 = tpu.concatenate %703, %704, %705, %706, %707, %708 in 1 : vector<2x1x256xf32>, vector<2x1x256xf32>, vector<2x1x256xf32>, vector<2x1x256xf32>, vector<2x1x256xf32>, vector<2x1x256xf32> -> vector<2x6x256xf32>
    %c0_30 = arith.constant 0 : index
    %c0_31 = arith.constant 0 : index
    %c0_32 = arith.constant 0 : index
    %710 = vector.load %arg4[%c0_30, %c0_31, %c0_32] : memref<2x6x256xf32, #tpu.memory_space<vmem>>, vector<2x6x256xf32>
    tpu.vector_store %arg4[%c0_30, %c0_31, %c0_32], %709 {strides = array<i32>} : memref<2x6x256xf32, #tpu.memory_space<vmem>>, vector<2x6x256xf32>,
    return
  }
  func.func @transform_0(%arg0: i32) -> (i32, i32, i32) {
    %c0_i32 = arith.constant 0 : i32
    %c0_i32_0 = arith.constant 0 : i32
    %c0_i32_1 = arith.constant 0 : i32
    return %arg0, %c0_i32, %c0_i32_0 : i32, i32, i32
  }
  func.func @transform_1(%arg0: i32) -> i32 {
    %c0_i32 = arith.constant 0 : i32
    %c0_i32_0 = arith.constant 0 : i32
    return %c0_i32 : i32
  }
  func.func @transform_2(%arg0: i32) -> i32 {
    %c0_i32 = arith.constant 0 : i32
    %c0_i32_0 = arith.constant 0 : i32
    return %c0_i32 : i32
  }
  func.func @transform_3(%arg0: i32) -> (i32, i32, i32) {
    %c0_i32 = arith.constant 0 : i32
    %c0_i32_0 = arith.constant 0 : i32
    %c0_i32_1 = arith.constant 0 : i32
    return %arg0, %c0_i32, %c0_i32_0 : i32, i32, i32
  }
}

</mosaic_0001>

<bundles_post_ra>
// kernel: tpu_custom_call.1
= control target key start
LH: loop header
LB: loop body
LE: loop exit
PB: predicated region body
PF: predicated region fallthrough
CT: control target
= control target key end

     0   :  { %s3917_s0 = inlined_call_operand.vmem [shape: f32[2,3,256], index: 0, kind: input, shape index: {}]   ;;  %s3918_s1 = inlined_call_operand.vmem [shape: f32[162], index: 1, kind: input, shape index: {}]   ;;  %s3919_s2 = inlined_call_operand.vmem [shape: f32[6], index: 2, kind: input, shape index: {}]   ;;  %s3920_s3 = inlined_call_operand.vmem [shape: f32[2,6,256], index: 3, kind: output, shape index: {}]  }
   0x1   :  { %4028 = sst [smem:[#allocation65_spill]] %s3917_s0 }
   0x2   :  { %4029 = sst [smem:[#allocation66_spill]] %s3920_s3 }
   0x3   :  { %8 = vsyncpa [#allocation3], 0  ;;  %s18_s14 = sshll.u32 %s3918_s1, 4  ;;  %s19_s14 = int_to_ptr.vmem [resolvable:$true] %s18_s14 }
   0x4   :  { %9 = vsyncpa [#allocation5], 0  ;;  %s28_s17 = sshll.u32 %s3919_s2, 4  ;;  %s2583_s18 = scalar_lea.vmem %s19_s14, 32  ;;  %s29_s17 = int_to_ptr.vmem [resolvable:$true] %s28_s17 }
   0x5   :  { %p2584_p0 = scmp.ne.s32.totalorder %s19_s14, %s2583_s18  ;;  %p2588_p1 = scmp.lt.s32.totalorder %s19_s14, %s19_s14 }
   0x6   :  { %p2589_p2 = scmp.lt.s32.totalorder %s2583_s18, %s2583_s18 }
   0x8   :  { %p2590_p3 = por %p2589_p2, %p2588_p1 }
   0xa   :  { %p2591_p4 = pnand %p2590_p3, %p2584_p0 }
   0xc   :  { %2594 = shalt.err (!%p2591_p4)
}
   0xd   :  { %s2611_s19 = smov [#allocation2]   ;;  %s2595_s20 = scalar_lea.vmem %s29_s17, 16 }
   0xe   :  { %21 = dma.vmem_to_smem %s19_s14, 32, %s2611_s19, [#allocation3]  }
   0xf   :  { %p2596_p5 = scmp.ne.s32.totalorder %s29_s17, %s2595_s20  ;;  %p2600_p6 = scmp.lt.s32.totalorder %s29_s17, %s29_s17 }
  0x10   :  { %p2601_p7 = scmp.lt.s32.totalorder %s2595_s20, %s2595_s20 }
  0x12   :  { %p2602_p8 = por %p2601_p7, %p2600_p6 }
  0x14   :  { %p2603_p9 = pnand %p2602_p8, %p2596_p5 }
  0x16   :  { %2606 = shalt.err (!%p2603_p9)
}
  0x17   :  { %s2612_s1 = smov [#allocation4]  }
  0x18   :  { %31 = dma.vmem_to_smem %s29_s17, 16, %s2612_s1, [#allocation5]  }
  0x19   :  { %2607 = dma.done.wait [#allocation3], 32  }
  0x1a   :  { %2608 = vsyncadd [#allocation3], 4294967264 }
  0x1b   :  { %2609 = dma.done.wait [#allocation5], 16  }
  0x1c   :  { %2610 = vsyncadd [#allocation5], 4294967280 }
  0x1d   :  { %38 = sfence }
  0x1e   :  { %v79_v0 = vlaneseq  ;;  %v2651_v2 = vld [vmem:[%s3917_s0] sm:$0x77]  ;;  %v2656_v3 = vld [vmem:[%s3917_s0 + $0x8] sm:$0x77]  ;;  %vm95_vm0 = vcmask 1041409   ;;  %s2613_s24 = smov 126  }
  0x1f   :  { %s2614_s25 = smov 127   ;;  %s2615_s26 = smov 112   ;;  %vm2346_vm9 = vcmask 1040384   ;;  %vm2351_vm10 = vcmask 1041408   ;;  %vm2356_vm11 = vcmask 1042432   ;;  %vm2361_vm12 = vcmask 1043456  }
  0x20   :  { %v80_v1 = vshrl.u32 %v79_v0, 7  ;;  %s2616_s27 = smov 111   ;;  %s2617_s28 = smov 110   ;;  %v2827_v28 = vand.u32 127, %v79_v0  ;;  %vm2366_vm13 = vcmask 1044480  }
  0x21   :  { %s3925_s29 = smov 96   ;;  %s3923_s30 = smov 95  }
  0x22   :  { %v2658_v4 = vsub.s32 0, %v80_v1  ;;  %v2660_v5 = vsub.s32 4, %v80_v1  ;;  %v1552_v6 = vsub.s32 6, %v80_v1  ;;  %v1548_v7 = vsub.s32 2, %v80_v1  ;;  %s3921_s4 = smov 94   ;;  %s2728_s5 = sld [smem:[#allocation2 + $0x2]] }
  0x23   :  { %v824_v20 = vsub.s32 5, %v80_v1  ;;  %v820_v21 = vsub.s32 1, %v80_v1  ;;  %s2730_s6 = sld [smem:[#allocation2 + $0x1d]]  ;;  %s2732_s7 = sld [smem:[#allocation2 + $0x38]]  ;;  %vm185_vm1 = vcmp.lt.s32.totalorder %v2827_v28, 126  ;;  %vm106_vm2 = vcmp.lt.s32.totalorder %v2827_v28, 127 }
  0x24   :  { %v82_v8 = vrot.slane %v2651_v2, %v2658_v4  ;;  %v90_v9 = vrot.slane %v2656_v3, %v2658_v4  ;;  %v86_v10 = vrot.slane %v2651_v2, %v2660_v5  ;;  %v94_v11 = vrot.slane %v2656_v3, %v2660_v5  ;;  %s2734_s8 = sld [smem:[#allocation2 + $0x53]]  ;;  %s2736_s9 = sld [smem:[#allocation2 + $0x6e]] }
  0x25   :  { %v1553_v13 = vrot.slane %v2651_v2, %v1552_v6  ;;  %v1561_v14 = vrot.slane %v2656_v3, %v1552_v6  ;;  %v1549_v15 = vrot.slane %v2651_v2, %v1548_v7  ;;  %v1557_v18 = vrot.slane %v2656_v3, %v1548_v7  ;;  %s2738_s10 = sld [smem:[#allocation2 + $0x89]]  ;;  %s2740_s11 = sld [smem:[#allocation2]] }
  0x26   :  { %v96_v12 = vsel %vm95_vm0, %v90_v9, %v82_v8  ;;  %v97_v16 = vsel %vm95_vm0, %v94_v11, %v86_v10  ;;  %v825_v22 = vrot.slane %v2651_v2, %v824_v20  ;;  %v833_v23 = vrot.slane %v2656_v3, %v824_v20  ;;  %s2746_s12 = sld [smem:[#allocation2 + $0x1b]]  ;;  %s2748_s13 = sld [smem:[#allocation2 + $0x36]] }
  0x27   :  { %181 = vrot.lane.b32.xlu1 %v96_v12, %s2613_s24  ;;  %100 = vrot.lane.b32.xlu0 %v96_v12, %s2614_s25  ;;  %v2678_v17 = vsel %vm95_vm0, %v1561_v14, %v1553_v13  ;;  %v2682_v19 = vsel %vm95_vm0, %v1557_v18, %v1549_v15  ;;  %v821_v24 = vrot.slane %v2651_v2, %v820_v21  ;;  %s2750_s14 = sld [smem:[#allocation2 + $0x51]]  ;;  %s2752_s15 = sld [smem:[#allocation2 + $0x6c]]  ;;  %vm264_vm3 = vcmp.lt.s32.totalorder %v2827_v28, 112 }
  0x28   :  { %v829_v25 = vrot.slane %v2656_v3, %v820_v21  ;;  %v835_v26 = vsel %vm95_vm0, %v833_v23, %v825_v22  ;;  %4030 = sst [smem:[#allocation8_spill]] %s2728_s5  ;;  %s2754_s16 = sld [smem:[#allocation2 + $0x87]]  ;;  %v189_v30 = vstv %s2728_s5  ;;  %vm343_vm4 = vcmp.lt.s32.totalorder %v2827_v28, 111 }
  0x29   :  { %4031 = sst [smem:[#allocation9_spill]] %s2730_s6  ;;  %s2758_s18 = sld [smem:[#allocation2 + $0x1c]]  ;;  %v201_v31 = vstv %s2730_s6  ;;  %v213_v32 = vstv %s2732_s7  ;;  %vm422_vm5 = vcmp.lt.s32.totalorder %v2827_v28, 110  ;;  %vm501_vm6 = vcmp.lt.s32.totalorder %v2827_v28, 96 }
  0x2a   :  { %v834_v27 = vsel %vm95_vm0, %v829_v25, %v821_v24  ;;  %4032 = sst [smem:[#allocation10_spill]] %s2732_s7  ;;  %s2756_s17 = sld [smem:[#allocation2 + $0x1]]  ;;  %v225_v33 = vstv %s2734_s8  ;;  %v237_v34 = vstv %s2736_s9  ;;  %vm580_vm7 = vcmp.lt.s32.totalorder %v2827_v28, 95 }
  0x2b   :  { %183 = vrot.lane.b32.xlu1 %v97_v16, %s2613_s24  ;;  %102 = vrot.lane.b32.xlu0 %v97_v16, %s2614_s25  ;;  %4033 = sst [smem:[#allocation11_spill]] %s2734_s8  ;;  %s2760_s19 = sld [smem:[#allocation2 + $0x37]]  ;;  %v42_v29 = vstv %s2740_s11  ;;  %v249_v35 = vstv %s2738_s10  ;;  %vm659_vm8 = vcmp.lt.s32.totalorder %v2827_v28, 94 }
  0x2c   :  { %4034 = sst [smem:[#allocation12_spill]] %s2736_s9  ;;  %s2766_s20 = sld [smem:[#allocation2 + $0x52]]  ;;  %v2845_v36 = vmul.f32 %v42_v29, %v2656_v3  ;;  %v48_v37 = vstv %s2746_s12  ;;  %v54_v39 = vstv %s2748_s13  ;;  %v2858_v41 = vmul.f32 %v42_v29, %v2651_v2 }
  0x2d   :  { %4035 = sst [smem:[#allocation13_spill]] %s2738_s10  ;;  %s2770_s2 = sld [smem:[#allocation2 + $0x88]]  ;;  %v2853_v38 = vmul.f32 %v48_v37, %v2656_v3  ;;  %v60_v40 = vstv %s2750_s14  ;;  %v2869_v42 = vmul.f32 %v54_v39, %v2656_v3  ;;  %v66_v44 = vstv %s2752_s15 }
  0x2e   :  { %s2768_s1 = sld [smem:[#allocation2 + $0x6d]]  ;;  %s2772_s21 = sld [smem:[#allocation2 + $0x3]]  ;;  %v2872_v43 = vmul.f32 %v60_v40, %v2656_v3  ;;  %v72_v45 = vstv %s2754_s16  ;;  %v2881_v46 = vmul.f32 %v66_v44, %v2656_v3  ;;  %v2896_v53 = vmul.f32 %v48_v37, %v2651_v2 }
  0x2f   :  { %262 = vrot.lane.b32.xlu1 %v97_v16, %s2615_s26  ;;  %260 = vrot.lane.b32.xlu0 %v96_v12, %s2615_s26  ;;  %4037 = sst [smem:[#allocation15_spill]] %s2758_s18  ;;  %s2774_s22 = sld [smem:[#allocation2 + $0x1e]]  ;;  %v2884_v47 = vmul.f32 %v72_v45, %v2656_v3  ;;  %v122_v49 = vstv %s2758_s18  ;;  %v2904_v55 = vmul.f32 %v54_v39, %v2651_v2  ;;  %v2907_v56 = vmul.f32 %v60_v40, %v2651_v2 }
  0x30   :  { %4036 = sst [smem:[#allocation14_spill]] %s2756_s17  ;;  %s2776_s23 = sld [smem:[#allocation2 + $0x39]]  ;;  %v110_v48 = vstv %s2756_s17  ;;  %v2910_v57 = vmul.f32 %v66_v44, %v2651_v2  ;;  %v2917_v58 = vmul.f32 %v72_v45, %v2651_v2 }
  0x31   :  { %4038 = sst [smem:[#allocation16_spill]] %s2760_s19  ;;  %s2798_s0 = sld [smem:[#allocation2 + $0x8b]]  ;;  %v134_v50 = vstv %s2760_s19 }
  0x32   :  { %4039 = sst [smem:[#allocation17_spill]] %s2766_s20  ;;  %s2796_s3 = sld [smem:[#allocation2 + $0x70]]  ;;  %v146_v51 = vstv %s2766_s20 }
  0x33   :  { %341 = vrot.lane.b32.xlu1 %v97_v16, %s2616_s27  ;;  %339 = vrot.lane.b32.xlu0 %v96_v12, %s2616_s27  ;;  %4041 = sst [smem:[#allocation19_spill]] %s2770_s2  ;;  %s2848_s11 = sld [smem:[#allocation2 + $0x22]]  ;;  %v170_v54 = vstv %s2770_s2 }
  0x34   :  { %4040 = sst [smem:[#allocation18_spill]] %s2768_s1  ;;  %s2860_s10 = sld [smem:[#allocation2 + $0x58]]  ;;  %v158_v52 = vstv %s2768_s1  ;;  %v268_v59 = vstv %s2772_s21 }
  0x35   :  { %4042 = sst [smem:[#allocation20_spill]] %s2772_s21  ;;  %s2862_s9 = sld [smem:[#allocation2 + $0x73]]  ;;  %v280_v60 = vstv %s2774_s22 }
  0x36   :  { %4043 = sst [smem:[#allocation21_spill]] %s2774_s22  ;;  %s4072_s12 = smov 94   ;;  %v292_v61 = vstv %s2776_s23 }
  0x37   :  { %420 = vrot.lane.b32.xlu1 %v97_v16, %s2617_s28  ;;  %418 = vrot.lane.b32.xlu0 %v96_v12, %s2617_s28  ;;  %4044 = sst [smem:[#allocation22_spill]] %s2776_s23  ;;  %s2878_s14 = sld [smem:[#allocation2 + $0x8]] }
  0x38   :  { %4051 = sst [smem:[#allocation29_spill]] %s2796_s3  ;;  %s2810_s3 = sld [smem:[#allocation2 + $0x56]] }
  0x39   :  { %4052 = sst [smem:[#allocation30_spill]] %s2798_s0  ;;  %s2814_s0 = sld [smem:[#allocation2 + $0x8c]] }
  0x3a   :  { %4068 = sst [smem:[#allocation44_spill]] %s2848_s11  ;;  %s2876_s13 = sld [smem:[#allocation2 + $0x8e]] }
  0x3b   :  { %499 = vrot.lane.b32.xlu1 %v97_v16, %s3925_s29  ;;  %497 = vrot.lane.b32.xlu0 %v96_v12, %s3925_s29  ;;  %4070 = sst [smem:[#allocation46_spill]] %s2860_s10  ;;  %s2890_s8 = sld [smem:[#allocation2 + $0x9]] }
  0x3c   :  { %4071 = sst [smem:[#allocation47_spill]] %s2862_s9  ;;  %s2898_s7 = sld [smem:[#allocation2 + $0x24]] }
  0x3d   :  { %4074 = sst [smem:[#allocation49_spill]] %s2878_s14  ;;  %s2900_s17 = sld [smem:[#allocation2 + $0x3f]] }
  0x3e   :  { %4057 = sst [smem:[#allocation34_spill]] %s2810_s3  ;;  %s2912_s19 = sld [smem:[#allocation2 + $0x3e]] }
  0x3f   :  { %578 = vrot.lane.b32.xlu1 %v97_v16, %s3923_s30  ;;  %576 = vrot.lane.b32.xlu0 %v96_v12, %s3923_s30  ;;  %4059 = sst [smem:[#allocation36_spill]] %s2814_s0  ;;  %s2830_s0 = sld [smem:[#allocation2 + $0x57]] }
  0x40   :  { %4073 = sst [smem:[#allocation48_spill]] %s2876_s13  ;;  %s2914_s5 = sld [smem:[#allocation2 + $0x5a]] }
  0x41   :  { %s2922_s13 = sld [smem:[#allocation2 + $0x59]]  ;;  %s2924_s9 = sld [smem:[#allocation2 + $0x75]]  ;;  %v735_v21 = vstv %s2890_s8 }
  0x42   :  { %s2932_s21 = sld [smem:[#allocation2 + $0x90]]  ;;  %s2940_s16 = sld [smem:[#allocation2 + $0xa]]  ;;  %v749_v24 = vstv %s2898_s7  ;;  %v2985_v44 = vmul.f32 %v735_v21, %v2651_v2  ;;  %v3007_v22 = vmul.f32 %v735_v21, %v2656_v3 }
  0x43   :  { %657 = vrot.lane.b32.xlu1 %v97_v16, %s3921_s4  ;;  %655 = vrot.lane.b32.xlu0 %v96_v12, %s3921_s4  ;;  %s2946_s18 = sld [smem:[#allocation2 + $0x25]]  ;;  %s2948_s20 = sld [smem:[#allocation2 + $0x40]]  ;;  %v763_v25 = vstv %s2900_s17  ;;  %v2994_v29 = vmul.f32 %v749_v24, %v2651_v2 }
  0x44   :  { %s2956_s14 = sld [smem:[#allocation2 + $0x76]]  ;;  %s2962_s2 = sld [smem:[#allocation2 + $0x91]] }
  0x45   :  { %4064 = sst [smem:[#allocation40_spill]] %s2830_s0  ;;  %s2964_s3 = sld [smem:[#allocation2 + $0xb]] }
  0x46   :  { %s2972_s6 = sld [smem:[#allocation2 + $0x41]]  ;;  %v777_v37 = vstv %s2914_s5  ;;  %s2980_s23 = sld [smem:[#allocation2 + $0x77]] }
  0x47   :  { %840 = vrot.lane.b32.xlu1 %v835_v26, %s2614_s25  ;;  %838 = vrot.lane.b32.xlu0 %v834_v27, %s2614_s25  ;;  %4087 = sst [smem:[#allocation51_spill]] %s2924_s9  ;;  %s2938_s9 = sld [smem:[#allocation2 + $0x8f]]  ;;  %v3010_v20 = vmul.f32 %v777_v37, %v2651_v2  ;;  %v3023_v40 = vmul.f32 %v777_v37, %v2656_v3 }
  0x48   :  { %s4100_s10 = sld [smem:[#allocation51_spill]]  ;;  %s2988_s7 = sld [smem:[#allocation2 + $0x92]]  ;;  %v805_v23 = vstv %s2932_s21 }
  0x49   :  { %s2990_s17 = sld [smem:[#allocation2 + $0xc]]  ;;  %s3000_s5 = sld [smem:[#allocation2 + $0x27]]  ;;  %v3040_v37 = vmul.f32 %v805_v23, %v2651_v2  ;;  %v3050_v15 = vmul.f32 %v805_v23, %v2656_v3 }
  0x4a   :  { %4095 = sst [smem:[#allocation55_spill]] %s2956_s14  ;;  %s3028_s21 = sld [smem:[#allocation2 + $0x93]] }
  0x4b   :  { %918 = vrot.lane.b32.xlu1 %v835_v26, %s2613_s24  ;;  %916 = vrot.lane.b32.xlu0 %v834_v27, %s2613_s24  ;;  %4098 = sst [smem:[#allocation56_spill]] %s2962_s2  ;;  %s3030_s0 = sld [smem:[#allocation2 + $0xd]] }
  0x4c   :  { %4099 = sst [smem:[#allocation57_spill]] %s2964_s3  ;;  %s3042_s8 = sld [smem:[#allocation2 + $0x28]] }
  0x4d   :  { %4093 = sst [smem:[#allocation53_spill]] %s2938_s9  ;;  %s3044_s11 = sld [smem:[#allocation2 + $0x43]] }
  0x4e   :  { %4102 = sst [smem:[#allocation51_spill]] %s2972_s6  ;;  %v791_v45 = vstv %s4100_s10  ;;  %s3012_s10 = sld [smem:[#allocation2 + $0x5d]] }
  0x4f   :  { %996 = vrot.lane.b32.xlu1 %v835_v26, %s2615_s26  ;;  %994 = vrot.lane.b32.xlu0 %v834_v27, %s2615_s26  ;;  %4106 = sst [smem:[#allocation59_spill]] %s2988_s7  ;;  %v3026_v21 = vmul.f32 %v791_v45, %v2651_v2  ;;  %v3037_v39 = vmul.f32 %v791_v45, %v2656_v3  ;;  %s3060_s22 = sld [smem:[#allocation2 + $0x94]] }
  0x50   :  { %4107 = sst [smem:[#allocation60_spill]] %s2990_s17  ;;  %s3068_s9 = sld [smem:[#allocation2 + $0x29]] }
  0x51   :  { %s3088_s14 = sld [smem:[#allocation2 + $0x95]]  ;;  %s3094_s2 = sld [smem:[#allocation2 + $0xf]] }
  0x52   :  { %s3096_s3 = sld [smem:[#allocation2 + $0x2a]]  ;;  %s4149_s7 = sld [smem:[#allocation30_spill]] }
  0x53   :  { %1074 = vrot.lane.b32.xlu1 %v835_v26, %s2616_s27  ;;  %1072 = vrot.lane.b32.xlu0 %v834_v27, %s2616_s27 }
  0x55   :  { %4110 = sst [smem:[#allocation61_spill]] %s3060_s22 }
  0x56   :  { %4112 = sst [smem:[#allocation63_spill]] %s3068_s9  ;;  %s4155_s9 = sld [smem:[#allocation34_spill]] }
  0x57   :  { %1152 = vrot.lane.b32.xlu1 %v835_v26, %s2617_s28  ;;  %1150 = vrot.lane.b32.xlu0 %v834_v27, %s2617_s28 }
  0x58   :  { %4113 = sst [smem:[#allocation64_spill]] %s3096_s3 }
  0x5b   :  { %1230 = vrot.lane.b32.xlu1 %v835_v26, %s3925_s29  ;;  %1228 = vrot.lane.b32.xlu0 %v834_v27, %s3925_s29  ;;  %s2794_s29 = sld [smem:[#allocation2 + $0x55]] }
  0x5f   :  { %1308 = vrot.lane.b32.xlu1 %v835_v26, %s3923_s30  ;;  %1306 = vrot.lane.b32.xlu0 %v834_v27, %s3923_s30  ;;  %s2792_s30 = sld [smem:[#allocation2 + $0x3a]] }
  0x61   :  { %4050 = sst [smem:[#allocation28_spill]] %s2794_s29  ;;  %s2812_s29 = sld [smem:[#allocation2 + $0x71]] }
  0x62   :  { %s4138_s6 = sld [smem:[#allocation28_spill]] }
  0x63   :  { %1386 = vrot.lane.b32.xlu1 %v835_v26, %s3921_s4  ;;  %1384 = vrot.lane.b32.xlu0 %v834_v27, %s3921_s4  ;;  %s2790_s4 = sld [smem:[#allocation2 + $0x1f]]  ;;  %v2997_v27 = vmul.f32 %v763_v25, %v2651_v2  ;;  %v3017_v26 = vmul.f32 %v749_v24, %v2656_v3 }
  0x65   :  { %4049 = sst [smem:[#allocation27_spill]] %s2792_s30 }
  0x66   :  { %s2808_s30 = sld [smem:[#allocation2 + $0x3b]] }
  0x67   :  { %1568 = vrot.lane.b32.xlu1 %v2678_v17, %s2614_s25  ;;  %1566 = vrot.lane.b32.xlu0 %v2682_v19, %s2614_s25  ;;  %s2780_s25 = sld [smem:[#allocation2 + $0x6f]]  ;;  %4058 = sst [smem:[#allocation35_spill]] %s2812_s29 }
  0x68   :  { %s2970_s29 = sld [smem:[#allocation2 + $0x26]]  ;;  %s4157_s22 = sld [smem:[#allocation35_spill]] }
  0x69   :  { %4048 = sst [smem:[#allocation26_spill]] %s2790_s4  ;;  %s2818_s4 = sld [smem:[#allocation2 + $0x21]] }
  0x6a   :  { %s4079_s1 = sld [smem:[#allocation26_spill]] }
  0x6b   :  { %1646 = vrot.lane.b32.xlu1 %v2678_v17, %s2613_s24  ;;  %1644 = vrot.lane.b32.xlu0 %v2682_v19, %s2613_s24  ;;  %s2778_s24 = sld [smem:[#allocation2 + $0x54]]  ;;  %4086 = sst [smem:[#allocation26_spill]] %s2922_s13 }
  0x6c   :  { %4056 = sst [smem:[#allocation33_spill]] %s2808_s30  ;;  %s2978_s13 = sld [smem:[#allocation2 + $0x5c]] }
  0x6d   :  { %4046 = sst [smem:[#allocation24_spill]] %s2780_s25  ;;  %s2800_s25 = sld [smem:[#allocation2 + $0x5]] }
  0x6e   :  { %s3052_s30 = sld [smem:[#allocation2 + $0x5e]]  ;;  %s4154_s3 = sld [smem:[#allocation33_spill]] }
  0x6f   :  { %1724 = vrot.lane.b32.xlu1 %v2678_v17, %s2615_s26  ;;  %1722 = vrot.lane.b32.xlu0 %v2682_v19, %s2615_s26  ;;  %s2786_s26 = sld [smem:[#allocation2 + $0x8a]]  ;;  %4061 = sst [smem:[#allocation38_spill]] %s2818_s4 }
  0x70   :  { %s2840_s4 = sld [smem:[#allocation2 + $0x7]] }
  0x71   :  { %4045 = sst [smem:[#allocation23_spill]] %s2778_s24  ;;  %s4054_s24 = smov 96  }
  0x72   :  { %s4076_s15 = sld [smem:[#allocation23_spill]]  ;;  %4105 = sst [smem:[#allocation58_spill]] %s2978_s13 }
  0x73   :  { %1802 = vrot.lane.b32.xlu1 %v2678_v17, %s2616_s27  ;;  %1800 = vrot.lane.b32.xlu0 %v2682_v19, %s2616_s27  ;;  %s2788_s27 = sld [smem:[#allocation2 + $0x4]]  ;;  %4053 = sst [smem:[#allocation31_spill]] %s2800_s25 }
  0x74   :  { %s2816_s25 = sld [smem:[#allocation2 + $0x6]]  ;;  %4081 = sst [smem:[#allocation23_spill]] %s2912_s19 }
  0x75   :  { %s2930_s19 = sld [smem:[#allocation2 + $0x74]]  ;;  %s4139_s13 = sld [smem:[#allocation29_spill]] }
  0x76   :  { %4067 = sst [smem:[#allocation43_spill]] %s2840_s4  ;;  %s3054_s4 = sld [smem:[#allocation2 + $0x79]] }
  0x77   :  { %1880 = vrot.lane.b32.xlu1 %v2678_v17, %s2617_s28  ;;  %1878 = vrot.lane.b32.xlu0 %v2682_v19, %s2617_s28  ;;  %s2806_s28 = sld [smem:[#allocation2 + $0x20]] }
  0x79   :  { %4047 = sst [smem:[#allocation25_spill]] %s2788_s27  ;;  %s4063_s27 = smov 95  }
  0x7a   :  { %4060 = sst [smem:[#allocation37_spill]] %s2816_s25  ;;  %s2832_s25 = sld [smem:[#allocation2 + $0x72]] }
  0x7b   :  { %1958 = vrot.lane.b32.xlu1 %v2678_v17, %s4054_s24  ;;  %1956 = vrot.lane.b32.xlu0 %v2682_v19, %s4054_s24  ;;  %s2820_s24 = sld [smem:[#allocation2 + $0x3c]] }
  0x7c   :  { %4088 = sst [smem:[#allocation52_spill]] %s2930_s19 }
  0x7d   :  { %4055 = sst [smem:[#allocation32_spill]] %s2806_s28  ;;  %s3002_s28 = sld [smem:[#allocation2 + $0x42]] }
  0x7e   :  { %s3078_s19 = sld [smem:[#allocation2 + $0x44]]  ;;  %s4152_s17 = sld [smem:[#allocation32_spill]] }
  0x7f   :  { %2036 = vrot.lane.b32.xlu1 %v2678_v17, %s4063_s27  ;;  %2034 = vrot.lane.b32.xlu0 %v2682_v19, %s4063_s27  ;;  %s2850_s27 = sld [smem:[#allocation2 + $0x3d]] }
  0x80   :  { %4065 = sst [smem:[#allocation41_spill]] %s2832_s25  ;;  %s3080_s25 = sld [smem:[#allocation2 + $0x5f]] }
  0x81   :  { %4062 = sst [smem:[#allocation39_spill]] %s2820_s24  ;;  %s2838_s24 = sld [smem:[#allocation2 + $0x8d]] }
  0x83   :  { %2114 = vrot.lane.b32.xlu1 %v2678_v17, %s4072_s12  ;;  %2112 = vrot.lane.b32.xlu0 %v2682_v19, %s4072_s12  ;;  %s2888_s12 = sld [smem:[#allocation2 + $0x23]]  ;;  %v3020_v19 = vmul.f32 %v763_v25, %v2656_v3 }
  0x85   :  { %4069 = sst [smem:[#allocation45_spill]] %s2850_s27  ;;  %s3014_s27 = sld [smem:[#allocation2 + $0x78]] }
  0x87   :  { %4066 = sst [smem:[#allocation42_spill]] %s2838_s24  ;;  %s3062_s24 = sld [smem:[#allocation2 + $0xe]] }
  0x89   :  { %4075 = sst [smem:[#allocation50_spill]] %s2888_s12  ;;  %s2954_s12 = sld [smem:[#allocation2 + $0x5b]] }
  0x8d   :  { %4111 = sst [smem:[#allocation62_spill]] %s3062_s24  ;;  %s4129_s24 = sld [smem:[#allocation24_spill]] }
  0x8f   :  { %4094 = sst [smem:[#allocation54_spill]] %s2954_s12  ;;  %s3086_s12 = sld [smem:[#allocation2 + $0x7a]] }
  0x99   :  { %v182_v17 = vpop.permute.xlu1 %181  ;;  %v101_v25 = vpop.permute.xlu0 %100 }
  0x9d   :  { %v184_v14 = vpop.permute.xlu1 %183  ;;  %v103_v12 = vpop.permute.xlu0 %102 }
  0x9e   :  { %v186_v13 = vsel %vm185_vm1, %v182_v17, %v184_v14  ;;  %v187_v16 = vsel %vm185_vm1, %v184_v14, %v182_v17  ;;  %v107_v2 = vsel %vm106_vm2, %v101_v25, %v103_v12 }
  0x9f   :  { %v190_v23 = vmul.f32 %v189_v30, %v186_v13  ;;  %v191_v18 = vmul.f32 %v189_v30, %v187_v16  ;;  %v202_v3 = vmul.f32 %v201_v31, %v186_v13  ;;  %v203_v11 = vmul.f32 %v201_v31, %v187_v16 }
  0xa0   :  { %v214_v14 = vmul.f32 %v213_v32, %v186_v13  ;;  %v215_v17 = vmul.f32 %v213_v32, %v187_v16  ;;  %v226_v45 = vmul.f32 %v225_v33, %v186_v13  ;;  %v227_v24 = vmul.f32 %v225_v33, %v187_v16 }
  0xa1   :  { %v108_v30 = vsel %vm106_vm2, %v103_v12, %v101_v25  ;;  %v194_v8 = vcombine.low %v190_v23, %v191_v18  ;;  %v206_v1 = vcombine.low %v202_v3, %v203_v11  ;;  %v238_v33 = vmul.f32 %v237_v34, %v186_v13 }
  0xa2   :  { %v239_v0 = vmul.f32 %v237_v34, %v187_v16  ;;  %v111_v12 = vmul.f32 %v110_v48, %v107_v2  ;;  %v3147_v25 = vcombine.low %v214_v14, %v215_v17  ;;  %v3149_v31 = vcombine.low %v226_v45, %v227_v24 }
  0xa3   :  { %v250_v18 = vmul.f32 %v249_v35, %v186_v13  ;;  %v112_v23 = vmul.f32 %v110_v48, %v108_v30  ;;  %v251_v11 = vmul.f32 %v249_v35, %v187_v16  ;;  %v123_v3 = vmul.f32 %v122_v49, %v107_v2 }
  0xa4   :  { %v124_v34 = vmul.f32 %v122_v49, %v108_v30  ;;  %v135_v32 = vmul.f32 %v134_v50, %v107_v2  ;;  %v195_v14 = vrot.slane %v194_v8, 1  ;;  %v136_v24 = vmul.f32 %v134_v50, %v108_v30 }
  0xa5   :  { %v115_v17 = vcombine.low %v111_v12, %v112_v23  ;;  %v147_v45 = vmul.f32 %v146_v51, %v107_v2  ;;  %v148_v48 = vmul.f32 %v146_v51, %v108_v30  ;;  %v159_v35 = vmul.f32 %v158_v52, %v107_v2 }
  0xa6   :  { %v127_v13 = vcombine.low %v123_v3, %v124_v34  ;;  %v160_v16 = vmul.f32 %v158_v52, %v108_v30  ;;  %v3174_v6 = vcombine.low %v238_v33, %v239_v0  ;;  %v139_v7 = vcombine.low %v135_v32, %v136_v24 }
  0xa7   :  { %v116_v49 = vrot.slane %v115_v17, 1  ;;  %v171_v9 = vmul.f32 %v170_v54, %v107_v2  ;;  %v254_v10 = vcombine.low %v250_v18, %v251_v11  ;;  %v151_v23 = vcombine.low %v147_v45, %v148_v48 }
  0xa8   :  { %v128_v12 = vrot.slane %v127_v13, 1  ;;  %v163_v50 = vcombine.low %v159_v35, %v160_v16  ;;  %v207_v63 = vrot.slane %v206_v1, 1  ;;  %v140_v3 = vrot.slane %v139_v7, 1 }
  0xa9   :  { %v120_v62 = vadd.f32 %v116_v49, %v2845_v36  ;;  %v172_v51 = vmul.f32 %v170_v54, %v108_v30  ;;  %v119_v34 = vadd.f32 %v115_v17, %v2858_v41  ;;  %v152_v0 = vrot.slane %v151_v23, 1  ;;  %v261_v30 = vpop.permute.xlu0 %260 }
  0xaa   :  { %v132_v52 = vadd.f32 %v128_v12, %v2853_v38  ;;  %v164_v33 = vrot.slane %v163_v50, 1  ;;  %v219_v32 = vrot.slane %v3147_v25, 1  ;;  %v131_v2 = vadd.f32 %v127_v13, %v2896_v53  ;;  %v263_v38 = vpop.permute.xlu1 %262 }
  0xab   :  { %v144_v18 = vadd.f32 %v140_v3, %v2869_v42  ;;  %v175_v11 = vcombine.low %v171_v9, %v172_v51  ;;  %v231_v36 = vrot.slane %v3149_v31, 1  ;;  %v243_v24 = vrot.slane %v3174_v6, 1 }
  0xac   :  { %v255_v54 = vrot.slane %v254_v10, 1  ;;  %v143_v41 = vadd.f32 %v139_v7, %v2904_v55  ;;  %v155_v17 = vadd.f32 %v151_v23, %v2907_v56  ;;  %v167_v53 = vadd.f32 %v163_v50, %v2910_v57 }
  0xad   :  { %v176_v42 = vrot.slane %v175_v11, 1  ;;  %v199_v9 = vadd.f32 %v195_v14, %v120_v62  ;;  %v156_v45 = vadd.f32 %v152_v0, %v2872_v43  ;;  %v168_v13 = vadd.f32 %v164_v33, %v2881_v46 }
  0xae   :  { %v211_v55 = vadd.f32 %v207_v63, %v132_v52  ;;  %v198_v7 = vadd.f32 %v194_v8, %v119_v34  ;;  %v179_v48 = vadd.f32 %v175_v11, %v2917_v58  ;;  %v223_v56 = vadd.f32 %v219_v32, %v144_v18  ;;  %v342_v32 = vpop.permute.xlu1 %341 }
  0xaf   :  { %v210_v35 = vadd.f32 %v206_v1, %v131_v2  ;;  %v265_v57 = vsel %vm264_vm3, %v261_v30, %v263_v38  ;;  %v266_v62 = vsel %vm264_vm3, %v263_v38, %v261_v30  ;;  %v180_v63 = vadd.f32 %v176_v42, %v2884_v47  ;;  %v340_v2 = vpop.permute.xlu0 %339 }
  0xb0   :  { %v269_v43 = vmul.f32 %v268_v59, %v265_v57  ;;  %v281_v14 = vmul.f32 %v280_v60, %v265_v57  ;;  %v293_v46 = vmul.f32 %v292_v61, %v265_v57  ;;  %v270_v8 = vmul.f32 %v268_v59, %v266_v62 }
  0xb1   :  { %v282_v58 = vmul.f32 %v280_v60, %v266_v62  ;;  %v294_v1 = vmul.f32 %v292_v61, %v266_v62  ;;  %v4130_v16 = vstv %s4076_s15  ;;  %v4132_v50 = vstv %s4129_s24  ;;  %s4136_s15 = sld [smem:[#allocation25_spill]]  ;;  %s4166_s24 = sld [smem:[#allocation36_spill]] }
  0xb2   :  { %v305_v49 = vmul.f32 %v4130_v16, %v265_v57  ;;  %v4131_v12 = vmov %v4130_v16  ;;  %v317_v3 = vmul.f32 %v4132_v50, %v265_v57  ;;  %v4133_v51 = vmov %v4132_v50 }
  0xb3   :  { %v306_v23 = vmul.f32 %v4131_v12, %v266_v62  ;;  %v318_v34 = vmul.f32 %v4133_v51, %v266_v62  ;;  %v235_v52 = vadd.f32 %v231_v36, %v156_v45  ;;  %v273_v0 = vcombine.low %v269_v43, %v270_v8 }
  0xb4   :  { %v285_v33 = vcombine.low %v281_v14, %v282_v58  ;;  %v297_v47 = vcombine.low %v293_v46, %v294_v1  ;;  %v222_v59 = vadd.f32 %v3147_v25, %v143_v41  ;;  %v4134_v60 = vstv %s2786_s26  ;;  %s4137_s26 = sld [smem:[#allocation27_spill]] }
  0xb5   :  { %v309_v18 = vcombine.low %v305_v49, %v306_v23  ;;  %v329_v11 = vmul.f32 %v4134_v60, %v265_v57  ;;  %v4135_v61 = vmov %v4134_v60  ;;  %v247_v30 = vadd.f32 %v243_v24, %v168_v13 }
  0xb6   :  { %v330_v38 = vmul.f32 %v4135_v61, %v266_v62  ;;  %v234_v42 = vadd.f32 %v3149_v31, %v155_v17  ;;  %v246_v16 = vadd.f32 %v3174_v6, %v167_v53  ;;  %v258_v12 = vadd.f32 %v254_v10, %v179_v48 }
  0xb7   :  { %v259_v36 = vadd.f32 %v255_v54, %v180_v63  ;;  %v274_v45 = vrot.slane %v273_v0, 1  ;;  %v321_v43 = vcombine.low %v317_v3, %v318_v34  ;;  %v344_v25 = vsel %vm343_vm4, %v340_v2, %v342_v32 }
  0xb8   :  { %v277_v41 = vadd.f32 %v273_v0, %v198_v7  ;;  %v286_v24 = vrot.slane %v285_v33, 1  ;;  %v289_v31 = vadd.f32 %v285_v33, %v210_v35  ;;  %v298_v6 = vrot.slane %v297_v47, 1 }
  0xb9   :  { %v301_v10 = vadd.f32 %v297_v47, %v222_v59  ;;  %v310_v17 = vrot.slane %v309_v18, 1  ;;  %v333_v54 = vcombine.low %v329_v11, %v330_v38  ;;  %v345_v53 = vsel %vm343_vm4, %v342_v32, %v340_v2 }
  0xba   :  { %v313_v13 = vadd.f32 %v309_v18, %v234_v42  ;;  %v4140_v48 = vstv %s4136_s15  ;;  %v4142_v7 = vstv %s4079_s1  ;;  %v322_v63 = vrot.slane %v321_v43, 1  ;;  %s4151_s1 = sld [smem:[#allocation31_spill]]  ;;  %s4169_s15 = sld [smem:[#allocation37_spill]] }
  0xbb   :  { %v348_v57 = vmul.f32 %v4140_v48, %v344_v25  ;;  %v4141_v62 = vmov %v4140_v48  ;;  %v360_v46 = vmul.f32 %v4142_v7, %v344_v25  ;;  %v334_v35 = vrot.slane %v333_v54, 1 }
  0xbc   :  { %v349_v14 = vmul.f32 %v4141_v62, %v345_v53  ;;  %v4143_v8 = vmov %v4142_v7  ;;  %v4144_v1 = vstv %s4137_s26  ;;  %v4146_v51 = vstv %s4138_s6  ;;  %v421_v7 = vpop.permute.xlu1 %420  ;;  %s4171_s26 = sld [smem:[#allocation38_spill]]  ;;  %s4172_s6 = sld [smem:[#allocation39_spill]] }
  0xbd   :  { %v361_v58 = vmul.f32 %v4143_v8, %v345_v53  ;;  %v372_v49 = vmul.f32 %v4144_v1, %v344_v25  ;;  %v4145_v50 = vmov %v4144_v1  ;;  %v384_v34 = vmul.f32 %v4146_v51, %v344_v25  ;;  %v419_v8 = vpop.permute.xlu0 %418 }
  0xbe   :  { %v352_v23 = vcombine.low %v348_v57, %v349_v14  ;;  %v373_v3 = vmul.f32 %v4145_v50, %v345_v53  ;;  %v4147_v0 = vmov %v4146_v51  ;;  %v278_v47 = vadd.f32 %v274_v45, %v199_v9 }
  0xbf   :  { %v385_v33 = vmul.f32 %v4147_v0, %v345_v53  ;;  %v364_v32 = vcombine.low %v360_v46, %v361_v58  ;;  %v4148_v2 = vstv %s4139_s13  ;;  %v290_v11 = vadd.f32 %v286_v24, %v211_v55  ;;  %s4173_s13 = sld [smem:[#allocation40_spill]] }
  0xc0   :  { %v396_v59 = vmul.f32 %v4148_v2, %v344_v25  ;;  %v4150_v18 = vmov %v4148_v2  ;;  %v325_v61 = vadd.f32 %v321_v43, %v246_v16  ;;  %v353_v38 = vrot.slane %v352_v23, 1 }
  0xc1   :  { %v397_v60 = vmul.f32 %v4150_v18, %v345_v53  ;;  %v376_v42 = vcombine.low %v372_v49, %v373_v3  ;;  %v302_v48 = vadd.f32 %v298_v6, %v223_v56  ;;  %v314_v62 = vadd.f32 %v310_v17, %v235_v52 }
  0xc2   :  { %v326_v57 = vadd.f32 %v322_v63, %v247_v30  ;;  %v388_v14 = vcombine.low %v384_v34, %v385_v33  ;;  %v337_v1 = vadd.f32 %v333_v54, %v258_v12  ;;  %v338_v9 = vadd.f32 %v334_v35, %v259_v36 }
  0xc3   :  { %v356_v45 = vadd.f32 %v352_v23, %v277_v41  ;;  %v4153_v46 = vstv %s4149_s7  ;;  %v357_v55 = vadd.f32 %v353_v38, %v278_v47  ;;  %v365_v56 = vrot.slane %v364_v32, 1  ;;  %s4176_s7 = sld [smem:[#allocation41_spill]] }
  0xc4   :  { %v408_v58 = vmul.f32 %v4153_v46, %v344_v25  ;;  %v368_v52 = vadd.f32 %v364_v32, %v289_v31  ;;  %v400_v30 = vcombine.low %v396_v59, %v397_v60  ;;  %v377_v16 = vrot.slane %v376_v42, 1 }
  0xc5   :  { %v380_v43 = vadd.f32 %v376_v42, %v301_v10  ;;  %v4156_v12 = vmov %v4153_v46  ;;  %v423_v36 = vsel %vm422_vm5, %v419_v8, %v421_v7  ;;  %v389_v25 = vrot.slane %v388_v14, 1 }
  0xc6   :  { %v409_v24 = vmul.f32 %v4156_v12, %v345_v53  ;;  %v424_v41 = vsel %vm422_vm5, %v421_v7, %v419_v8  ;;  %v4158_v6 = vstv %s4151_s1  ;;  %v4159_v54 = vstv %s4152_s17  ;;  %s4185_s1 = sld [smem:[#allocation42_spill]]  ;;  %s4187_s17 = sld [smem:[#allocation43_spill]] }
  0xc7   :  { %v427_v17 = vmul.f32 %v4158_v6, %v423_v36  ;;  %v439_v63 = vmul.f32 %v4159_v54, %v423_v36  ;;  %v4160_v35 = vmov %v4158_v6  ;;  %v4161_v23 = vmov %v4159_v54 }
  0xc8   :  { %v412_v31 = vcombine.low %v408_v58, %v409_v24  ;;  %v428_v49 = vmul.f32 %v4160_v35, %v424_v41  ;;  %v440_v10 = vmul.f32 %v4161_v23, %v424_v41  ;;  %v4162_v50 = vstv %s4154_s3  ;;  %v500_v35 = vpop.permute.xlu1 %499  ;;  %v498_v23 = vpop.permute.xlu0 %497  ;;  %s4189_s3 = sld [smem:[#allocation44_spill]] }
  0xc9   :  { %v451_v53 = vmul.f32 %v4162_v50, %v423_v36  ;;  %v401_v3 = vrot.slane %v400_v30, 1  ;;  %v4163_v51 = vmov %v4162_v50  ;;  %v4164_v0 = vstv %s4155_s9  ;;  %s4190_s9 = sld [smem:[#allocation45_spill]] }
  0xca   :  { %v452_v34 = vmul.f32 %v4163_v51, %v424_v41  ;;  %v463_v33 = vmul.f32 %v4164_v0, %v423_v36  ;;  %v4165_v47 = vmov %v4164_v0  ;;  %v413_v2 = vrot.slane %v412_v31, 1 }
  0xcb   :  { %v464_v32 = vmul.f32 %v4165_v47, %v424_v41  ;;  %v431_v59 = vcombine.low %v427_v17, %v428_v49  ;;  %v443_v18 = vcombine.low %v439_v63, %v440_v10  ;;  %v4167_v60 = vstv %s4157_s22  ;;  %s4192_s22 = sld [smem:[#allocation46_spill]] }
  0xcc   :  { %v475_v38 = vmul.f32 %v4167_v60, %v423_v36  ;;  %v369_v42 = vadd.f32 %v365_v56, %v290_v11  ;;  %v392_v7 = vadd.f32 %v388_v14, %v313_v13  ;;  %v455_v8 = vcombine.low %v451_v53, %v452_v34 }
  0xcd   :  { %v4168_v46 = vmov %v4167_v60  ;;  %v381_v12 = vadd.f32 %v377_v16, %v302_v48  ;;  %v393_v24 = vadd.f32 %v389_v25, %v314_v62  ;;  %v404_v6 = vadd.f32 %v400_v30, %v325_v61 }
  0xce   :  { %v476_v58 = vmul.f32 %v4168_v46, %v424_v41  ;;  %v467_v54 = vcombine.low %v463_v33, %v464_v32  ;;  %v405_v50 = vadd.f32 %v401_v3, %v326_v57  ;;  %v416_v51 = vadd.f32 %v412_v31, %v337_v1 }
  0xcf   :  { %v417_v17 = vadd.f32 %v413_v2, %v338_v9  ;;  %v4170_v49 = vstv %s4166_s24  ;;  %v432_v11 = vrot.slane %v431_v59, 1  ;;  %v435_v13 = vadd.f32 %v431_v59, %v356_v45  ;;  %s4199_s24 = sld [smem:[#allocation47_spill]] }
  0xd0   :  { %v487_v63 = vmul.f32 %v4170_v49, %v423_v36  ;;  %v444_v14 = vrot.slane %v443_v18, 1  ;;  %v479_v48 = vcombine.low %v475_v38, %v476_v58  ;;  %v447_v61 = vadd.f32 %v443_v18, %v368_v52 }
  0xd1   :  { %v456_v62 = vrot.slane %v455_v8, 1  ;;  %v4174_v57 = vmov %v4170_v49  ;;  %v502_v1 = vsel %vm501_vm6, %v498_v23, %v500_v35  ;;  %v459_v9 = vadd.f32 %v455_v8, %v380_v43 }
  0xd2   :  { %v488_v56 = vmul.f32 %v4174_v57, %v424_v41  ;;  %v468_v30 = vrot.slane %v467_v54, 1  ;;  %v503_v45 = vsel %vm501_vm6, %v500_v35, %v498_v23  ;;  %v4175_v16 = vstv %s4169_s15  ;;  %s4202_s15 = sld [smem:[#allocation48_spill]] }
  0xd3   :  { %v506_v36 = vmul.f32 %v4175_v16, %v502_v1  ;;  %v4177_v31 = vmov %v4175_v16  ;;  %v4178_v52 = vstv %s4171_s26  ;;  %v480_v34 = vrot.slane %v479_v48, 1  ;;  %s4203_s26 = sld [smem:[#allocation49_spill]] }
  0xd4   :  { %v491_v25 = vcombine.low %v487_v63, %v488_v56  ;;  %v507_v10 = vmul.f32 %v4177_v31, %v503_v45  ;;  %v518_v53 = vmul.f32 %v4178_v52, %v502_v1  ;;  %v4179_v3 = vmov %v4178_v52 }
  0xd5   :  { %v519_v41 = vmul.f32 %v4179_v3, %v503_v45  ;;  %v4180_v0 = vstv %s4172_s6  ;;  %v4182_v32 = vstv %s4173_s13  ;;  %v436_v59 = vadd.f32 %v432_v11, %v357_v55  ;;  %v577_v11 = vpop.permute.xlu0 %576  ;;  %s4206_s6 = sld [smem:[#allocation50_spill]]  ;;  %s4207_s13 = sld [smem:[#allocation23_spill]] }
  0xd6   :  { %v530_v33 = vmul.f32 %v4180_v0, %v502_v1  ;;  %v4181_v43 = vmov %v4180_v0  ;;  %v542_v2 = vmul.f32 %v4182_v32, %v502_v1  ;;  %v448_v18 = vadd.f32 %v444_v14, %v369_v42  ;;  %v579_v42 = vpop.permute.xlu1 %578 }
  0xd7   :  { %v531_v47 = vmul.f32 %v4181_v43, %v503_v45  ;;  %v492_v60 = vrot.slane %v491_v25, 1  ;;  %v510_v38 = vcombine.low %v506_v36, %v507_v10  ;;  %v522_v8 = vcombine.low %v518_v53, %v519_v41 }
  0xd8   :  { %v4183_v46 = vmov %v4182_v32  ;;  %v4184_v35 = vstv %s4176_s7  ;;  %v460_v57 = vadd.f32 %v456_v62, %v381_v12  ;;  %v471_v56 = vadd.f32 %v467_v54, %v392_v7  ;;  %s4209_s7 = sld [smem:[#allocation26_spill]] }
  0xd9   :  { %v543_v58 = vmul.f32 %v4183_v46, %v503_v45  ;;  %v554_v23 = vmul.f32 %v4184_v35, %v502_v1  ;;  %v4186_v49 = vmov %v4184_v35  ;;  %v472_v16 = vadd.f32 %v468_v30, %v393_v24 }
  0xda   :  { %v555_v63 = vmul.f32 %v4186_v49, %v503_v45  ;;  %v534_v31 = vcombine.low %v530_v33, %v531_v47  ;;  %v483_v52 = vadd.f32 %v479_v48, %v404_v6  ;;  %v484_v3 = vadd.f32 %v480_v34, %v405_v50 }
  0xdb   :  { %v495_v0 = vadd.f32 %v491_v25, %v416_v51  ;;  %v546_v55 = vcombine.low %v542_v2, %v543_v58  ;;  %v496_v14 = vadd.f32 %v492_v60, %v417_v17  ;;  %v511_v36 = vrot.slane %v510_v38, 1 }
  0xdc   :  { %v558_v10 = vcombine.low %v554_v23, %v555_v63  ;;  %v4188_v53 = vstv %s4185_s1  ;;  %v514_v7 = vadd.f32 %v510_v38, %v435_v13  ;;  %v523_v12 = vrot.slane %v522_v8, 1  ;;  %s4212_s1 = sld [smem:[#allocation52_spill]] }
  0xdd   :  { %v566_v41 = vmul.f32 %v4188_v53, %v502_v1  ;;  %v526_v24 = vadd.f32 %v522_v8, %v447_v61  ;;  %v4191_v6 = vmov %v4188_v53  ;;  %v535_v50 = vrot.slane %v534_v31, 1 }
  0xde   :  { %v567_v54 = vmul.f32 %v4191_v6, %v503_v45  ;;  %v538_v51 = vadd.f32 %v534_v31, %v459_v9  ;;  %v581_v17 = vsel %vm580_vm7, %v577_v11, %v579_v42  ;;  %v582_v48 = vsel %vm580_vm7, %v579_v42, %v577_v11 }
  0xdf   :  { %v547_v62 = vrot.slane %v546_v55, 1  ;;  %v4193_v30 = vstv %s4187_s17  ;;  %v559_v61 = vrot.slane %v558_v10, 1  ;;  %v4195_v33 = vstv %s4189_s3  ;;  %s4219_s17 = sld [smem:[#allocation53_spill]]  ;;  %s4229_s3 = sld [smem:[#allocation54_spill]] }
  0xe0   :  { %v570_v1 = vcombine.low %v566_v41, %v567_v54  ;;  %v585_v25 = vmul.f32 %v4193_v30, %v581_v17  ;;  %v4194_v13 = vmov %v4193_v30  ;;  %v597_v45 = vmul.f32 %v4195_v33, %v581_v17  ;;  %v658_v30 = vpop.permute.xlu1 %657 }
  0xe1   :  { %v586_v34 = vmul.f32 %v4194_v13, %v582_v48  ;;  %v4196_v43 = vmov %v4195_v33  ;;  %v4197_v9 = vstv %s4190_s9  ;;  %v515_v2 = vadd.f32 %v511_v36, %v436_v59  ;;  %s4232_s9 = sld [smem:[#allocation55_spill]] }
  0xe2   :  { %v598_v47 = vmul.f32 %v4196_v43, %v582_v48  ;;  %v609_v32 = vmul.f32 %v4197_v9, %v581_v17  ;;  %v571_v60 = vrot.slane %v570_v1, 1  ;;  %v4198_v8 = vmov %v4197_v9 }
  0xe3   :  { %v589_v38 = vcombine.low %v585_v25, %v586_v34  ;;  %v610_v46 = vmul.f32 %v4198_v8, %v582_v48  ;;  %v527_v58 = vadd.f32 %v523_v12, %v448_v18  ;;  %v4200_v23 = vstv %s4192_s22  ;;  %v656_v25 = vpop.permute.xlu0 %655  ;;  %s4239_s22 = sld [smem:[#allocation56_spill]] }
  0xe4   :  { %v601_v35 = vcombine.low %v597_v45, %v598_v47  ;;  %v621_v49 = vmul.f32 %v4200_v23, %v581_v17  ;;  %v4201_v63 = vmov %v4200_v23  ;;  %v539_v42 = vadd.f32 %v535_v50, %v460_v57 }
  0xe5   :  { %v622_v31 = vmul.f32 %v4201_v63, %v582_v48  ;;  %v550_v11 = vadd.f32 %v546_v55, %v471_v56  ;;  %v562_v53 = vadd.f32 %v558_v10, %v483_v52  ;;  %v590_v41 = vrot.slane %v589_v38, 1 }
  0xe6   :  { %v551_v6 = vadd.f32 %v547_v62, %v472_v16  ;;  %v563_v59 = vadd.f32 %v559_v61, %v484_v3  ;;  %v613_v36 = vcombine.low %v609_v32, %v610_v46  ;;  %v574_v18 = vadd.f32 %v570_v1, %v495_v0 }
  0xe7   :  { %v625_v54 = vcombine.low %v621_v49, %v622_v31  ;;  %v575_v12 = vadd.f32 %v571_v60, %v496_v14  ;;  %v4204_v13 = vstv %s4199_s24  ;;  %v593_v56 = vadd.f32 %v589_v38, %v514_v7  ;;  %s4264_s24 = sld [smem:[#allocation59_spill]] }
  0xe8   :  { %v633_v34 = vmul.f32 %v4204_v13, %v581_v17  ;;  %v4205_v33 = vmov %v4204_v13  ;;  %v602_v52 = vrot.slane %v601_v35, 1  ;;  %v605_v55 = vadd.f32 %v601_v35, %v526_v24 }
  0xe9   :  { %v634_v57 = vmul.f32 %v4205_v33, %v582_v48  ;;  %v4208_v16 = vstv %s4202_s15  ;;  %v594_v10 = vadd.f32 %v590_v41, %v515_v2  ;;  %v660_v0 = vsel %vm659_vm8, %v656_v25, %v658_v30  ;;  %s3590_s15 = sld [smem:[#allocation2 + $0x47]] }
  0xea   :  { %v645_v3 = vmul.f32 %v4208_v16, %v581_v17  ;;  %v4210_v50 = vmov %v4208_v16  ;;  %v661_v14 = vsel %vm659_vm8, %v658_v30, %v656_v25  ;;  %v614_v1 = vrot.slane %v613_v36, 1 }
  0xeb   :  { %v646_v62 = vmul.f32 %v4210_v50, %v582_v48  ;;  %v617_v61 = vadd.f32 %v613_v36, %v538_v51  ;;  %v626_v7 = vrot.slane %v625_v54, 1  ;;  %v4211_v45 = vstv %s4203_s26  ;;  %s3592_s26 = sld [smem:[#allocation2 + $0x62]] }
  0xec   :  { %v664_v24 = vmul.f32 %v4211_v45, %v660_v0  ;;  %v637_v43 = vcombine.low %v633_v34, %v634_v57  ;;  %v4213_v17 = vmov %v4211_v45  ;;  %v4214_v9 = vstv %s4206_s6  ;;  %s3594_s6 = sld [smem:[#allocation2 + $0x7d]] }
  0xed   :  { %v665_v47 = vmul.f32 %v4213_v17, %v661_v14  ;;  %v676_v32 = vmul.f32 %v4214_v9, %v660_v0  ;;  %v4215_v48 = vmov %v4214_v9  ;;  %v649_v60 = vcombine.low %v645_v3, %v646_v62 }
  0xee   :  { %v677_v2 = vmul.f32 %v4215_v48, %v661_v14  ;;  %v4216_v38 = vstv %s4207_s13  ;;  %v4218_v23 = vstv %s4209_s7  ;;  %v606_v49 = vadd.f32 %v602_v52, %v527_v58  ;;  %s3596_s13 = sld [smem:[#allocation2 + $0x98]]  ;;  %s3608_s7 = sld [smem:[#allocation2 + $0x12]] }
  0xef   :  { %v688_v8 = vmul.f32 %v4216_v38, %v660_v0  ;;  %v4217_v46 = vmov %v4216_v38  ;;  %v700_v51 = vmul.f32 %v4218_v23, %v660_v0  ;;  %v629_v63 = vadd.f32 %v625_v54, %v550_v11 }
  0xf0   :  { %v689_v35 = vmul.f32 %v4217_v46, %v661_v14  ;;  %v668_v31 = vcombine.low %v664_v24, %v665_v47  ;;  %v680_v41 = vcombine.low %v676_v32, %v677_v2  ;;  %v4220_v30 = vmov %v4218_v23 }
  0xf1   :  { %v701_v25 = vmul.f32 %v4220_v30, %v661_v14  ;;  %v4221_v13 = vstv %s4212_s1  ;;  %v618_v16 = vadd.f32 %v614_v1, %v539_v42  ;;  %v638_v3 = vrot.slane %v637_v43, 1  ;;  %s3610_s1 = sld [smem:[#allocation2 + $0x2d]] }
  0xf2   :  { %v692_v36 = vcombine.low %v688_v8, %v689_v35  ;;  %v712_v34 = vmul.f32 %v4221_v13, %v660_v0  ;;  %v4222_v33 = vmov %v4221_v13  ;;  %v669_v50 = vrot.slane %v668_v31, 1  ;;  %v841_v13 = vpop.permute.xlu1 %840 }
  0xf3   :  { %v713_v57 = vmul.f32 %v4222_v33, %v661_v14  ;;  %v681_v62 = vrot.slane %v680_v41, 1  ;;  %v630_v45 = vadd.f32 %v626_v7, %v551_v6  ;;  %v650_v17 = vrot.slane %v649_v60, 1 }
  0xf4   :  { %v693_v9 = vrot.slane %v692_v36, 1  ;;  %v704_v58 = vcombine.low %v700_v51, %v701_v25  ;;  %v673_v11 = vadd.f32 %v669_v50, %v594_v10  ;;  %v4223_v24 = vstv %s4219_s17  ;;  %v839_v10 = vpop.permute.xlu0 %838  ;;  %s3612_s17 = sld [smem:[#allocation2 + $0x48]] }
  0xf5   :  { %v685_v54 = vadd.f32 %v681_v62, %v606_v49  ;;  %v716_v52 = vcombine.low %v712_v34, %v713_v57  ;;  %v724_v47 = vmul.f32 %v4223_v24, %v660_v0  ;;  %v672_v32 = vadd.f32 %v668_v31, %v593_v56 }
  0xf6   :  { %v697_v48 = vadd.f32 %v693_v9, %v618_v16  ;;  %v705_v2 = vrot.slane %v704_v58, 1  ;;  %v4224_v38 = vmov %v4223_v24  ;;  %v641_v46 = vadd.f32 %v637_v43, %v562_v53  ;;  %v919_v24 = vpop.permute.xlu1 %918 }
  0xf7   :  { %v725_v8 = vmul.f32 %v4224_v38, %v661_v14  ;;  %v642_v35 = vadd.f32 %v638_v3, %v563_v59  ;;  %v684_v42 = vadd.f32 %v680_v41, %v605_v55  ;;  %v717_v1 = vrot.slane %v716_v52, 1 }
  0xf8   :  { %v653_v23 = vadd.f32 %v649_v60, %v574_v18  ;;  %v654_v30 = vadd.f32 %v650_v17, %v575_v12  ;;  %v696_v6 = vadd.f32 %v692_v36, %v617_v61  ;;  %v708_v51 = vadd.f32 %v704_v58, %v629_v63 }
  0xf9   :  { %v728_v7 = vcombine.low %v724_v47, %v725_v8  ;;  %v720_v0 = vadd.f32 %v716_v52, %v641_v46  ;;  %v4225_v56 = vrot.slane %v3007_v22, 9  ;;  %v4226_v53 = vrot.slane %v3017_v26, 9  ;;  %v917_v47 = vpop.permute.xlu0 %916 }
  0xfa   :  { %v709_v18 = vadd.f32 %v705_v2, %v630_v45  ;;  %v4227_v55 = vrot.slane %v3020_v19, 9  ;;  %v4228_v61 = vrot.slane %v2985_v44, 9  ;;  %v721_v60 = vadd.f32 %v717_v1, %v642_v35 }
  0xfb   :  { %v747_v49 = vadd.f32 %v4225_v56, %v673_v11  ;;  %v3375_v59 = vadd.f32 %v4226_v53, %v685_v54  ;;  %v729_v12 = vrot.slane %v728_v7, 1  ;;  %v4230_v22 = vrot.slane %v2994_v29, 9 }
  0xfc   :  { %v775_v14 = vadd.f32 %v4227_v55, %v697_v48  ;;  %v746_v43 = vadd.f32 %v4228_v61, %v672_v32  ;;  %v842_v26 = vsel %vm106_vm2, %v839_v10, %v841_v13  ;;  %v843_v31 = vsel %vm106_vm2, %v841_v13, %v839_v10 }
  0xfd   :  { %v760_v63 = vadd.f32 %v4230_v22, %v684_v42  ;;  %v732_v41 = vadd.f32 %v728_v7, %v653_v23  ;;  %v4231_v36 = vrot.slane %v2997_v27, 9  ;;  %v4233_v25 = vstv %s2940_s16  ;;  %s4254_s16 = sld [smem:[#allocation58_spill]] }
  0xfe   :  { %v846_v44 = vmul.f32 %v4233_v25, %v842_v26  ;;  %v4234_v34 = vmov %v4233_v25  ;;  %v4235_v57 = vstv %s2946_s18  ;;  %v4237_v50 = vstv %s2948_s20  ;;  %s4248_s18 = sld [smem:[#allocation57_spill]]  ;;  %s4252_s20 = sld [smem:[#allocation51_spill]] }
  0xff   :  { %v774_v19 = vadd.f32 %v4231_v36, %v696_v6  ;;  %v847_v33 = vmul.f32 %v4234_v34, %v843_v31  ;;  %v858_v16 = vmul.f32 %v4235_v57, %v842_v26  ;;  %v4236_v29 = vmov %v4235_v57 }
 0x100   :  { %v859_v3 = vmul.f32 %v4236_v29, %v843_v31  ;;  %v870_v62 = vmul.f32 %v4237_v50, %v842_v26  ;;  %v4238_v45 = vmov %v4237_v50  ;;  %v733_v9 = vadd.f32 %v729_v12, %v654_v30 }
 0x101   :  { %v871_v17 = vmul.f32 %v4238_v45, %v843_v31  ;;  %v850_v58 = vcombine.low %v846_v44, %v847_v33  ;;  %v4240_v11 = vstv %s4229_s3  ;;  %v4242_v32 = vrot.slane %v3010_v20, 9  ;;  %s3614_s3 = sld [smem:[#allocation2 + $0x63]] }
 0x102   :  { %v882_v27 = vmul.f32 %v4240_v11, %v842_v26  ;;  %v4241_v54 = vmov %v4240_v11  ;;  %v862_v2 = vcombine.low %v858_v16, %v859_v3  ;;  %v4243_v38 = vstv %s4232_s9  ;;  %s3617_s9 = sld [smem:[#allocation2 + $0x7e]] }
 0x103   :  { %v883_v52 = vmul.f32 %v4241_v54, %v843_v31  ;;  %v788_v48 = vadd.f32 %v4242_v32, %v708_v51  ;;  %v894_v8 = vmul.f32 %v4243_v38, %v842_v26  ;;  %v4244_v46 = vmov %v4243_v38 }
 0x104   :  { %v895_v35 = vmul.f32 %v4244_v46, %v843_v31  ;;  %v4245_v42 = vrot.slane %v3023_v40, 9  ;;  %v4246_v23 = vrot.slane %v3026_v21, 9  ;;  %v874_v6 = vcombine.low %v870_v62, %v871_v17 }
 0x105   :  { %v886_v7 = vcombine.low %v882_v27, %v883_v52  ;;  %v4247_v13 = vrot.slane %v3037_v39, 9  ;;  %v4249_v20 = vrot.slane %v3040_v37, 9  ;;  %v4250_v56 = vstv %s4239_s22  ;;  %s3619_s22 = sld [smem:[#allocation2 + $0x99]] }
 0x106   :  { %v789_v1 = vadd.f32 %v4245_v42, %v709_v18  ;;  %v802_v30 = vadd.f32 %v4246_v23, %v720_v0  ;;  %v906_v53 = vmul.f32 %v4250_v56, %v842_v26  ;;  %v920_v40 = vsel %vm185_vm1, %v917_v47, %v919_v24 }
 0x107   :  { %v803_v10 = vadd.f32 %v4247_v13, %v721_v60  ;;  %v816_v51 = vadd.f32 %v4249_v20, %v732_v41  ;;  %v4251_v18 = vrot.slane %v3050_v15, 9  ;;  %v851_v0 = vrot.slane %v850_v58, 1 }
 0x108   :  { %v854_v12 = vadd.f32 %v850_v58, %v746_v43  ;;  %v898_v39 = vcombine.low %v894_v8, %v895_v35  ;;  %v863_v55 = vrot.slane %v862_v2, 1  ;;  %v866_v61 = vadd.f32 %v862_v2, %v760_v63 }
 0x109   :  { %v817_v21 = vadd.f32 %v4251_v18, %v733_v9  ;;  %v4253_v37 = vmov %v4250_v56  ;;  %v921_v22 = vsel %vm185_vm1, %v919_v24, %v917_v47  ;;  %v875_v26 = vrot.slane %v874_v6, 1 }
 0x10a   :  { %v907_v60 = vmul.f32 %v4253_v37, %v843_v31  ;;  %v878_v41 = vadd.f32 %v874_v6, %v774_v19  ;;  %v887_v36 = vrot.slane %v886_v7, 1  ;;  %v4255_v15 = vstv %s4248_s18  ;;  %v997_v6 = vpop.permute.xlu1 %996  ;;  %s3752_s18 = sld [smem:[#allocation2 + $0x4d]] }
 0x10b   :  { %v924_v25 = vmul.f32 %v4255_v15, %v920_v40  ;;  %v4256_v44 = vmov %v4255_v15  ;;  %v4257_v33 = vstv %s2970_s29  ;;  %v855_v31 = vadd.f32 %v851_v0, %v747_v49  ;;  %s4266_s29 = sld [smem:[#allocation60_spill]] }
 0x10c   :  { %v910_v43 = vcombine.low %v906_v53, %v907_v60  ;;  %v925_v34 = vmul.f32 %v4256_v44, %v921_v22  ;;  %v936_v57 = vmul.f32 %v4257_v33, %v920_v40  ;;  %v4258_v63 = vmov %v4257_v33 }
 0x10d   :  { %v937_v16 = vmul.f32 %v4258_v63, %v921_v22  ;;  %v899_v29 = vrot.slane %v898_v39, 1  ;;  %v4259_v3 = vstv %s4252_s20  ;;  %v890_v19 = vadd.f32 %v886_v7, %v788_v48  ;;  %v995_v7 = vpop.permute.xlu0 %994  ;;  %s3754_s20 = sld [smem:[#allocation2 + $0x68]] }
 0x10e   :  { %v948_v50 = vmul.f32 %v4259_v3, %v920_v40  ;;  %v4260_v62 = vmov %v4259_v3  ;;  %v911_v17 = vrot.slane %v910_v43, 1  ;;  %v928_v9 = vcombine.low %v924_v25, %v925_v34 }
 0x10f   :  { %v949_v45 = vmul.f32 %v4260_v62, %v921_v22  ;;  %v4261_v58 = vstv %s4254_s16  ;;  %v940_v27 = vcombine.low %v936_v57, %v937_v16  ;;  %v4263_v24 = vstv %s2980_s23  ;;  %s4292_s23 = sld [smem:[#allocation62_spill]] }
 0x110   :  { %v960_v11 = vmul.f32 %v4261_v58, %v920_v40  ;;  %v4262_v54 = vmov %v4261_v58  ;;  %v972_v47 = vmul.f32 %v4263_v24, %v920_v40  ;;  %v4265_v32 = vmov %v4263_v24  ;;  %s4313_s16 = sld [smem:[#allocation65_spill]] }
 0x111   :  { %v961_v52 = vmul.f32 %v4262_v54, %v921_v22  ;;  %v973_v2 = vmul.f32 %v4265_v32, %v921_v22  ;;  %v867_v49 = vadd.f32 %v863_v55, %v3375_v59  ;;  %v879_v38 = vadd.f32 %v875_v26, %v775_v14  ;;  %v1075_v32 = vpop.permute.xlu1 %1074 }
 0x112   :  { %v891_v8 = vadd.f32 %v887_v36, %v789_v1  ;;  %v952_v46 = vcombine.low %v948_v50, %v949_v45  ;;  %v902_v35 = vadd.f32 %v898_v39, %v802_v30  ;;  %v903_v48 = vadd.f32 %v899_v29, %v803_v10 }
 0x113   :  { %v914_v42 = vadd.f32 %v910_v43, %v816_v51  ;;  %v929_v23 = vrot.slane %v928_v9, 1  ;;  %v915_v13 = vadd.f32 %v911_v17, %v817_v21  ;;  %v932_v20 = vadd.f32 %v928_v9, %v854_v12 }
 0x114   :  { %v964_v56 = vcombine.low %v960_v11, %v961_v52  ;;  %v4267_v53 = vstv %s4264_s24  ;;  %v941_v59 = vrot.slane %v940_v27, 1  ;;  %v944_v14 = vadd.f32 %v940_v27, %v866_v61  ;;  %s3636_s24 = sld [smem:[#allocation2 + $0x13]] }
 0x115   :  { %v984_v18 = vmul.f32 %v4267_v53, %v920_v40  ;;  %v976_v1 = vcombine.low %v972_v47, %v973_v2  ;;  %v4268_v0 = vmov %v4267_v53  ;;  %v953_v10 = vrot.slane %v952_v46, 1  ;;  %v1073_v2 = vpop.permute.xlu0 %1072 }
 0x116   :  { %v985_v30 = vmul.f32 %v4268_v0, %v921_v22  ;;  %v956_v51 = vadd.f32 %v952_v46, %v878_v41  ;;  %v998_v39 = vsel %vm264_vm3, %v995_v7, %v997_v6  ;;  %v999_v21 = vsel %vm264_vm3, %v997_v6, %v995_v7 }
 0x117   :  { %v933_v12 = vadd.f32 %v929_v23, %v855_v31  ;;  %v4269_v55 = vstv %s4266_s29  ;;  %v965_v26 = vrot.slane %v964_v56, 1  ;;  %v4271_v22 = vstv %s3000_s5  ;;  %s3572_s5 = sld [smem:[#allocation2 + $0x97]]  ;;  %s3638_s29 = sld [smem:[#allocation2 + $0x2e]] }
 0x118   :  { %v988_v40 = vcombine.low %v984_v18, %v985_v30  ;;  %v1002_v37 = vmul.f32 %v4269_v55, %v998_v39  ;;  %v4270_v61 = vmov %v4269_v55  ;;  %v1014_v36 = vmul.f32 %v4271_v22, %v998_v39 }
 0x119   :  { %v1003_v60 = vmul.f32 %v4270_v61, %v999_v21  ;;  %v4272_v15 = vmov %v4271_v22  ;;  %v4273_v25 = vstv %s3002_s28  ;;  %v977_v44 = vrot.slane %v976_v1, 1  ;;  %s3528_s28 = sld [smem:[#allocation2 + $0x60]] }
 0x11a   :  { %v1015_v41 = vmul.f32 %v4272_v15, %v999_v21  ;;  %v1026_v43 = vmul.f32 %v4273_v25, %v998_v39  ;;  %v989_v34 = vrot.slane %v988_v40, 1  ;;  %v4274_v57 = vmov %v4273_v25 }
 0x11b   :  { %v1006_v33 = vcombine.low %v1002_v37, %v1003_v60  ;;  %v1027_v63 = vmul.f32 %v4274_v57, %v999_v21  ;;  %v4275_v31 = vstv %s3012_s10  ;;  %v4277_v62 = vstv %s3014_s27  ;;  %s3559_s27 = sld [smem:[#allocation2 + $0x10]]  ;;  %s3586_s10 = sld [smem:[#allocation2 + $0x11]] }
 0x11c   :  { %v1018_v16 = vcombine.low %v1014_v36, %v1015_v41  ;;  %v1038_v29 = vmul.f32 %v4275_v31, %v998_v39  ;;  %v4276_v3 = vmov %v4275_v31  ;;  %v1050_v45 = vmul.f32 %v4277_v62, %v998_v39 }
 0x11d   :  { %v1039_v50 = vmul.f32 %v4276_v3, %v999_v21  ;;  %v945_v17 = vadd.f32 %v941_v59, %v867_v49  ;;  %v957_v9 = vadd.f32 %v953_v10, %v879_v38  ;;  %v968_v58 = vadd.f32 %v964_v56, %v890_v19 }
 0x11e   :  { %v980_v11 = vadd.f32 %v976_v1, %v902_v35  ;;  %v1007_v27 = vrot.slane %v1006_v33, 1  ;;  %v1030_v54 = vcombine.low %v1026_v43, %v1027_v63  ;;  %v4278_v24 = vmov %v4277_v62 }
 0x11f   :  { %v1042_v52 = vcombine.low %v1038_v29, %v1039_v50  ;;  %v1051_v47 = vmul.f32 %v4278_v24, %v999_v21  ;;  %v969_v46 = vadd.f32 %v965_v26, %v891_v8  ;;  %v981_v23 = vadd.f32 %v977_v44, %v903_v48  ;;  %v1151_v24 = vpop.permute.xlu0 %1150 }
 0x120   :  { %v992_v6 = vadd.f32 %v988_v40, %v914_v42  ;;  %v4279_v7 = vstv %s3028_s21  ;;  %v993_v49 = vadd.f32 %v989_v34, %v915_v13  ;;  %v1010_v19 = vadd.f32 %v1006_v33, %v932_v20  ;;  %s3588_s21 = sld [smem:[#allocation2 + $0x2c]] }
 0x121   :  { %v1062_v53 = vmul.f32 %v4279_v7, %v998_v39  ;;  %v1019_v38 = vrot.slane %v1018_v16, 1  ;;  %v1054_v35 = vcombine.low %v1050_v45, %v1051_v47  ;;  %v1022_v56 = vadd.f32 %v1018_v16, %v944_v14 }
 0x122   :  { %v4280_v18 = vmov %v4279_v7  ;;  %v1076_v1 = vsel %vm343_vm4, %v1073_v2, %v1075_v32  ;;  %v1077_v8 = vsel %vm343_vm4, %v1075_v32, %v1073_v2  ;;  %v1011_v48 = vadd.f32 %v1007_v27, %v933_v12 }
 0x123   :  { %v1063_v59 = vmul.f32 %v4280_v18, %v999_v21  ;;  %v1031_v42 = vrot.slane %v1030_v54, 1  ;;  %v1043_v0 = vrot.slane %v1042_v52, 1  ;;  %v4281_v13 = vstv %s3030_s0  ;;  %s4290_s0 = sld [smem:[#allocation61_spill]] }
 0x124   :  { %v1080_v20 = vmul.f32 %v4281_v13, %v1076_v1  ;;  %v4282_v10 = vmov %v4281_v13  ;;  %v4283_v39 = vstv %s3042_s8  ;;  %v1034_v37 = vadd.f32 %v1030_v54, %v956_v51  ;;  %v1153_v54 = vpop.permute.xlu1 %1152  ;;  %s3569_s8 = sld [smem:[#allocation2 + $0x7c]] }
 0x125   :  { %v1066_v30 = vcombine.low %v1062_v53, %v1063_v59  ;;  %v1081_v14 = vmul.f32 %v4282_v10, %v1077_v8  ;;  %v1092_v21 = vmul.f32 %v4283_v39, %v1076_v1  ;;  %v4284_v40 = vmov %v4283_v39 }
 0x126   :  { %v1093_v55 = vmul.f32 %v4284_v40, %v1077_v8  ;;  %v1055_v61 = vrot.slane %v1054_v35, 1  ;;  %v4285_v60 = vstv %s3044_s11  ;;  %v1023_v36 = vadd.f32 %v1019_v38, %v945_v17  ;;  %s3534_s11 = sld [smem:[#allocation2 + $0x7b]] }
 0x127   :  { %v1104_v26 = vmul.f32 %v4285_v60, %v1076_v1  ;;  %v4286_v12 = vmov %v4285_v60  ;;  %v1067_v15 = vrot.slane %v1066_v30, 1  ;;  %v1084_v41 = vcombine.low %v1080_v20, %v1081_v14 }
 0x128   :  { %v1105_v22 = vmul.f32 %v4286_v12, %v1077_v8  ;;  %v1096_v25 = vcombine.low %v1092_v21, %v1093_v55  ;;  %v4287_v43 = vstv %s3052_s30  ;;  %v4289_v57 = vstv %s3054_s4  ;;  %s4293_s30 = sld [smem:[#allocation63_spill]]  ;;  %s3524_s4 = sld [smem:[#allocation2 + $0x45]] }
 0x129   :  { %v1116_v44 = vmul.f32 %v4287_v43, %v1076_v1  ;;  %v4288_v34 = vmov %v4287_v43  ;;  %v1128_v63 = vmul.f32 %v4289_v57, %v1076_v1  ;;  %v4291_v16 = vmov %v4289_v57 }
 0x12a   :  { %v1117_v33 = vmul.f32 %v4288_v34, %v1077_v8  ;;  %v1129_v31 = vmul.f32 %v4291_v16, %v1077_v8  ;;  %v1035_v29 = vadd.f32 %v1031_v42, %v957_v9  ;;  %v1046_v51 = vadd.f32 %v1042_v52, %v968_v58 }
 0x12b   :  { %v1047_v3 = vadd.f32 %v1043_v0, %v969_v46  ;;  %v1108_v50 = vcombine.low %v1104_v26, %v1105_v22  ;;  %v1058_v62 = vadd.f32 %v1054_v35, %v980_v11  ;;  %v1059_v45 = vadd.f32 %v1055_v61, %v981_v23 }
 0x12c   :  { %v1070_v17 = vadd.f32 %v1066_v30, %v992_v6  ;;  %v1085_v27 = vrot.slane %v1084_v41, 1  ;;  %v1071_v47 = vadd.f32 %v1067_v15, %v993_v49  ;;  %v1088_v32 = vadd.f32 %v1084_v41, %v1010_v19 }
 0x12d   :  { %v1097_v2 = vrot.slane %v1096_v25, 1  ;;  %v4294_v7 = vstv %s4290_s0  ;;  %v1100_v9 = vadd.f32 %v1096_v25, %v1022_v56  ;;  %v1120_v58 = vcombine.low %v1116_v44, %v1117_v33  ;;  %s3771_s0 = sld [smem:[#allocation2 + $0x33]] }
 0x12e   :  { %v1140_v53 = vmul.f32 %v4294_v7, %v1076_v1  ;;  %v1132_v52 = vcombine.low %v1128_v63, %v1129_v31  ;;  %v4295_v46 = vmov %v4294_v7  ;;  %v1109_v23 = vrot.slane %v1108_v50, 1  ;;  %v1229_v7 = vpop.permute.xlu0 %1228 }
 0x12f   :  { %v1141_v11 = vmul.f32 %v4295_v46, %v1077_v8  ;;  %v1112_v6 = vadd.f32 %v1108_v50, %v1034_v37  ;;  %v1154_v38 = vsel %vm422_vm5, %v1151_v24, %v1153_v54  ;;  %v1155_v49 = vsel %vm422_vm5, %v1153_v54, %v1151_v24 }
 0x130   :  { %v1089_v19 = vadd.f32 %v1085_v27, %v1011_v48  ;;  %v4296_v18 = vstv %s4292_s23  ;;  %v1101_v42 = vadd.f32 %v1097_v2, %v1023_v36  ;;  %v4298_v0 = vstv %s4293_s30  ;;  %s3645_s30 = sld [smem:[#allocation2 + $0x49]]  ;;  %s3774_s23 = sld [smem:[#allocation2 + $0x4e]] }
 0x131   :  { %v1144_v35 = vcombine.low %v1140_v53, %v1141_v11  ;;  %v1158_v59 = vmul.f32 %v4296_v18, %v1154_v38  ;;  %v4297_v56 = vmov %v4296_v18  ;;  %v1170_v8 = vmul.f32 %v4298_v0, %v1154_v38 }
 0x132   :  { %v1159_v1 = vmul.f32 %v4297_v56, %v1155_v49  ;;  %v4299_v13 = vmov %v4298_v0  ;;  %v4300_v30 = vstv %s3078_s19  ;;  %v1121_v14 = vrot.slane %v1120_v58, 1  ;;  %s3542_s19 = sld [smem:[#allocation2 + $0x96]] }
 0x133   :  { %v1171_v20 = vmul.f32 %v4299_v13, %v1155_v49  ;;  %v1182_v10 = vmul.f32 %v4300_v30, %v1154_v38  ;;  %v1133_v39 = vrot.slane %v1132_v52, 1  ;;  %v4301_v21 = vmov %v4300_v30 }
 0x134   :  { %v1162_v48 = vcombine.low %v1158_v59, %v1159_v1  ;;  %v1183_v40 = vmul.f32 %v4301_v21, %v1155_v49  ;;  %v1145_v55 = vrot.slane %v1144_v35, 1  ;;  %v4302_v61 = vstv %s3080_s25  ;;  %s4307_s25 = sld [smem:[#allocation64_spill]] }
 0x135   :  { %v1174_v37 = vcombine.low %v1170_v8, %v1171_v20  ;;  %v1194_v60 = vmul.f32 %v4302_v61, %v1154_v38  ;;  %v4303_v26 = vmov %v4302_v61  ;;  %v1113_v22 = vadd.f32 %v1109_v23, %v1035_v29 }
 0x136   :  { %v1195_v12 = vmul.f32 %v4303_v26, %v1155_v49  ;;  %v1163_v36 = vrot.slane %v1162_v48, 1  ;;  %v1186_v15 = vcombine.low %v1182_v10, %v1183_v40  ;;  %v4304_v41 = vstv %s3086_s12  ;;  %s3565_s12 = sld [smem:[#allocation2 + $0x46]] }
 0x137   :  { %v1206_v25 = vmul.f32 %v4304_v41, %v1154_v38  ;;  %v1124_v43 = vadd.f32 %v1120_v58, %v1046_v51  ;;  %v1175_v44 = vrot.slane %v1174_v37, 1  ;;  %v4305_v33 = vmov %v4304_v41  ;;  %v1231_v51 = vpop.permute.xlu1 %1230 }
 0x138   :  { %v1198_v34 = vcombine.low %v1194_v60, %v1195_v12  ;;  %v1207_v57 = vmul.f32 %v4305_v33, %v1155_v49  ;;  %v1125_v63 = vadd.f32 %v1121_v14, %v1047_v3  ;;  %v1136_v16 = vadd.f32 %v1132_v52, %v1058_v62 }
 0x139   :  { %v1137_v31 = vadd.f32 %v1133_v39, %v1059_v45  ;;  %v4306_v50 = vstv %s3088_s14  ;;  %v1148_v29 = vadd.f32 %v1144_v35, %v1070_v17  ;;  %v1149_v54 = vadd.f32 %v1145_v55, %v1071_v47  ;;  %s3563_s14 = sld [smem:[#allocation2 + $0x2b]] }
 0x13a   :  { %v1218_v27 = vmul.f32 %v4306_v50, %v1154_v38  ;;  %v1166_v24 = vadd.f32 %v1162_v48, %v1088_v32  ;;  %v1178_v2 = vadd.f32 %v1174_v37, %v1100_v9  ;;  %v1167_v53 = vadd.f32 %v1163_v36, %v1089_v19 }
 0x13b   :  { %v1187_v3 = vrot.slane %v1186_v15, 1  ;;  %v1210_v62 = vcombine.low %v1206_v25, %v1207_v57  ;;  %v4308_v45 = vmov %v4306_v50  ;;  %v1179_v52 = vadd.f32 %v1175_v44, %v1101_v42  ;;  %v1309_v57 = vpop.permute.xlu1 %1308  ;;  %v1307_v50 = vpop.permute.xlu0 %1306 }
 0x13c   :  { %v1219_v58 = vmul.f32 %v4308_v45, %v1155_v49  ;;  %v1190_v46 = vadd.f32 %v1186_v15, %v1112_v6  ;;  %v1199_v11 = vrot.slane %v1198_v34, 1  ;;  %v1259_v23 = vstv %s3524_s4  ;;  %s3647_s4 = sld [smem:[#allocation2 + $0x64]] }
 0x13d   :  { %v1271_v47 = vstv %s3528_s28  ;;  %v1232_v32 = vsel %vm501_vm6, %v1229_v7, %v1231_v51  ;;  %v1233_v9 = vsel %vm501_vm6, %v1231_v51, %v1229_v7  ;;  %v1283_v38 = vstv %s3534_s11  ;;  %s3649_s28 = sld [smem:[#allocation2 + $0x7f]]  ;;  %s3651_s11 = sld [smem:[#allocation2 + $0x9a]] }
 0x13e   :  { %v1222_v17 = vcombine.low %v1218_v27, %v1219_v58  ;;  %v4309_v35 = vstv %s3094_s2  ;;  %v4311_v49 = vstv %s4307_s25  ;;  %v1211_v6 = vrot.slane %v1210_v62, 1  ;;  %s3567_s2 = sld [smem:[#allocation2 + $0x61]]  ;;  %s3668_s25 = sld [smem:[#allocation2 + $0x2f]] }
 0x13f   :  { %v1236_v19 = vmul.f32 %v4309_v35, %v1232_v32  ;;  %v4310_v18 = vmov %v4309_v35  ;;  %v1248_v56 = vmul.f32 %v4311_v49, %v1232_v32  ;;  %v4312_v42 = vmov %v4311_v49 }
 0x140   :  { %v1237_v59 = vmul.f32 %v4310_v18, %v1233_v9  ;;  %v1223_v1 = vrot.slane %v1222_v17, 1  ;;  %v1249_v0 = vmul.f32 %v4312_v42, %v1233_v9  ;;  %v1260_v8 = vmul.f32 %v1259_v23, %v1232_v32 }
 0x141   :  { %v1261_v20 = vmul.f32 %v1259_v23, %v1233_v9  ;;  %v1272_v30 = vmul.f32 %v1271_v47, %v1232_v32  ;;  %v1273_v10 = vmul.f32 %v1271_v47, %v1233_v9  ;;  %v1295_v14 = vstv %s3542_s19  ;;  %s3665_s19 = sld [smem:[#allocation2 + $0x14]] }
 0x142   :  { %v1240_v13 = vcombine.low %v1236_v19, %v1237_v59  ;;  %v1252_v39 = vcombine.low %v1248_v56, %v1249_v0  ;;  %v1284_v48 = vmul.f32 %v1283_v38, %v1232_v32  ;;  %v1285_v21 = vmul.f32 %v1283_v38, %v1233_v9 }
 0x143   :  { %v1191_v40 = vadd.f32 %v1187_v3, %v1113_v22  ;;  %v1202_v55 = vadd.f32 %v1198_v34, %v1124_v43  ;;  %v1264_v61 = vcombine.low %v1260_v8, %v1261_v20  ;;  %v1203_v60 = vadd.f32 %v1199_v11, %v1125_v63 }
 0x144   :  { %v1241_v37 = vrot.slane %v1240_v13, 1  ;;  %v1214_v26 = vadd.f32 %v1210_v62, %v1136_v16  ;;  %v1253_v12 = vrot.slane %v1252_v39, 1  ;;  %v1276_v36 = vcombine.low %v1272_v30, %v1273_v10 }
 0x145   :  { %v1215_v15 = vadd.f32 %v1211_v6, %v1137_v31  ;;  %v1226_v41 = vadd.f32 %v1222_v17, %v1148_v29  ;;  %v1227_v25 = vadd.f32 %v1223_v1, %v1149_v54  ;;  %v1296_v44 = vmul.f32 %v1295_v14, %v1232_v32 }
 0x146   :  { %v1244_v33 = vadd.f32 %v1240_v13, %v1166_v24  ;;  %v1245_v22 = vadd.f32 %v1241_v37, %v1167_v53  ;;  %v1256_v43 = vadd.f32 %v1252_v39, %v1178_v2  ;;  %v1288_v34 = vcombine.low %v1284_v48, %v1285_v21 }
 0x147   :  { %v1265_v27 = vrot.slane %v1264_v61, 1  ;;  %v1268_v63 = vadd.f32 %v1264_v61, %v1190_v46  ;;  %v1297_v16 = vmul.f32 %v1295_v14, %v1233_v9  ;;  %v1313_v51 = vstv %s3559_s27  ;;  %s3680_s27 = sld [smem:[#allocation2 + $0x4a]] }
 0x148   :  { %v3575_v7 = vadd.f32 %v1253_v12, %v1179_v52  ;;  %v1277_v31 = vrot.slane %v1276_v36, 1  ;;  %v1325_v29 = vstv %s3563_s14  ;;  %v1337_v3 = vstv %s3565_s12  ;;  %s3682_s14 = sld [smem:[#allocation2 + $0x65]]  ;;  %s3684_s12 = sld [smem:[#allocation2 + $0x80]] }
 0x149   :  { %v1300_v54 = vcombine.low %v1296_v44, %v1297_v16  ;;  %v1349_v62 = vstv %s3567_s2  ;;  %v1361_v45 = vstv %s3569_s8  ;;  %v1310_v24 = vsel %vm580_vm7, %v1307_v50, %v1309_v57  ;;  %s3686_s2 = sld [smem:[#allocation2 + $0x9b]]  ;;  %s3701_s8 = sld [smem:[#allocation2 + $0x15]] }
 0x14a   :  { %v1311_v2 = vsel %vm580_vm7, %v1309_v57, %v1307_v50  ;;  %v1314_v53 = vmul.f32 %v1313_v51, %v1310_v24  ;;  %v1326_v58 = vmul.f32 %v1325_v29, %v1310_v24  ;;  %v1338_v46 = vmul.f32 %v1337_v3, %v1310_v24 }
 0x14b   :  { %v1289_v11 = vrot.slane %v1288_v34, 1  ;;  %v1373_v23 = vstv %s3572_s5  ;;  %v1315_v17 = vmul.f32 %v1313_v51, %v1311_v2  ;;  %v1327_v52 = vmul.f32 %v1325_v29, %v1311_v2  ;;  %s3703_s5 = sld [smem:[#allocation2 + $0x30]] }
 0x14c   :  { %v1301_v47 = vrot.slane %v1300_v54, 1  ;;  %v1339_v32 = vmul.f32 %v1337_v3, %v1311_v2  ;;  %v1350_v9 = vmul.f32 %v1349_v62, %v1310_v24  ;;  %v1351_v38 = vmul.f32 %v1349_v62, %v1311_v2 }
 0x14d   :  { %v1318_v35 = vcombine.low %v1314_v53, %v1315_v17  ;;  %v1330_v19 = vcombine.low %v1326_v58, %v1327_v52  ;;  %v1362_v18 = vmul.f32 %v1361_v45, %v1310_v24  ;;  %v1363_v59 = vmul.f32 %v1361_v45, %v1311_v2 }
 0x14e   :  { %v1342_v49 = vcombine.low %v1338_v46, %v1339_v32  ;;  %v1354_v56 = vcombine.low %v1350_v9, %v1351_v38  ;;  %v1374_v6 = vmul.f32 %v1373_v23, %v1310_v24  ;;  %v1375_v1 = vmul.f32 %v1373_v23, %v1311_v2 }
 0x14f   :  { %v1269_v42 = vadd.f32 %v1265_v27, %v1191_v40  ;;  %v1280_v0 = vadd.f32 %v1276_v36, %v1202_v55  ;;  %v1292_v8 = vadd.f32 %v1288_v34, %v1214_v26  ;;  %v1319_v13 = vrot.slane %v1318_v35, 1  ;;  %v1387_v26 = vpop.permute.xlu1 %1386  ;;  %v1385_v36 = vpop.permute.xlu0 %1384 }
 0x150   :  { %v1281_v20 = vadd.f32 %v1277_v31, %v1203_v60  ;;  %v1293_v30 = vadd.f32 %v1289_v11, %v1215_v15  ;;  %v1304_v10 = vadd.f32 %v1300_v54, %v1226_v41  ;;  %v1305_v14 = vadd.f32 %v1301_v47, %v1227_v25 }
 0x151   :  { %v1322_v39 = vadd.f32 %v1318_v35, %v1244_v33  ;;  %v1331_v48 = vrot.slane %v1330_v19, 1  ;;  %v1366_v21 = vcombine.low %v1362_v18, %v1363_v59  ;;  %v1378_v37 = vcombine.low %v1374_v6, %v1375_v1 }
 0x152   :  { %v1334_v61 = vadd.f32 %v1330_v19, %v1256_v43  ;;  %v1343_v12 = vrot.slane %v1342_v49, 1  ;;  %v1346_v40 = vadd.f32 %v1342_v49, %v1268_v63  ;;  %v1355_v55 = vrot.slane %v1354_v56, 1 }
 0x153   :  { %v1323_v60 = vadd.f32 %v1319_v13, %v1245_v22  ;;  %v1358_v44 = vadd.f32 %v1354_v56, %v1280_v0  ;;  %v1391_v15 = vstv %s3586_s10  ;;  %v1403_v34 = vstv %s3588_s21  ;;  %s3705_s10 = sld [smem:[#allocation2 + $0x4b]]  ;;  %s3707_s21 = sld [smem:[#allocation2 + $0x66]] }
 0x154   :  { %v1367_v41 = vrot.slane %v1366_v21, 1  ;;  %v1379_v25 = vrot.slane %v1378_v37, 1  ;;  %v1415_v33 = vstv %s3590_s15  ;;  %v1427_v57 = vstv %s3592_s26  ;;  %s3709_s15 = sld [smem:[#allocation2 + $0x81]]  ;;  %s3711_s26 = sld [smem:[#allocation2 + $0x9c]] }
 0x155   :  { %v1439_v50 = vstv %s3594_s6  ;;  %v1451_v27 = vstv %s3596_s13  ;;  %v1388_v16 = vsel %vm659_vm8, %v1385_v36, %v1387_v26  ;;  %v1389_v43 = vsel %vm659_vm8, %v1387_v26, %v1385_v36  ;;  %v2582_v26 = vld [vmem:[%s4313_s16] sm:$0x77]  ;;  %s3719_s6 = sld [smem:[#allocation2 + $0x16]]  ;;  %s3728_s13 = sld [smem:[#allocation2 + $0x31]] }
 0x156   :  { %v1392_v63 = vmul.f32 %v1391_v15, %v1388_v16  ;;  %v1393_v51 = vmul.f32 %v1391_v15, %v1389_v43  ;;  %v1404_v31 = vmul.f32 %v1403_v34, %v1388_v16  ;;  %v1405_v29 = vmul.f32 %v1403_v34, %v1389_v43 }
 0x157   :  { %v1416_v22 = vmul.f32 %v1415_v33, %v1388_v16  ;;  %v1417_v3 = vmul.f32 %v1415_v33, %v1389_v43  ;;  %v1428_v54 = vmul.f32 %v1427_v57, %v1388_v16  ;;  %v1429_v62 = vmul.f32 %v1427_v57, %v1389_v43 }
 0x158   :  { %v1396_v45 = vcombine.low %v1392_v63, %v1393_v51  ;;  %v1408_v24 = vcombine.low %v1404_v31, %v1405_v29  ;;  %v1440_v2 = vmul.f32 %v1439_v50, %v1388_v16  ;;  %v1441_v53 = vmul.f32 %v1439_v50, %v1389_v43 }
 0x159   :  { %v1420_v58 = vcombine.low %v1416_v22, %v1417_v3  ;;  %v1432_v46 = vcombine.low %v1428_v54, %v1429_v62  ;;  %v1452_v11 = vmul.f32 %v1451_v27, %v1388_v16  ;;  %v1453_v23 = vmul.f32 %v1451_v27, %v1389_v43 }
 0x15a   :  { %v1335_v17 = vadd.f32 %v1331_v48, %v3575_v7  ;;  %v1347_v52 = vadd.f32 %v1343_v12, %v1269_v42  ;;  %v1359_v47 = vadd.f32 %v1355_v55, %v1281_v20  ;;  %v1397_v32 = vrot.slane %v1396_v45, 1 }
 0x15b   :  { %v1370_v9 = vadd.f32 %v1366_v21, %v1292_v8  ;;  %v1382_v38 = vadd.f32 %v1378_v37, %v1304_v10  ;;  %v1409_v35 = vrot.slane %v1408_v24, 1  ;;  %v1421_v19 = vrot.slane %v1420_v58, 1 }
 0x15c   :  { %v1371_v18 = vadd.f32 %v1367_v41, %v1293_v30  ;;  %v1383_v59 = vadd.f32 %v1379_v25, %v1305_v14  ;;  %v1433_v49 = vrot.slane %v1432_v46, 1  ;;  %v1444_v56 = vcombine.low %v1440_v2, %v1441_v53  ;;  %v2581_v30 = vld [vmem:[%s4313_s16 + $0x8] sm:$0x77]  ;;  %s3756_s16 = sld [smem:[#allocation2 + $0x83]] }
 0x15d   :  { %v3621_v6 = vadd.f32 %v1396_v45, %v1322_v39  ;;  %v3623_v7 = vadd.f32 %v1408_v24, %v1334_v61  ;;  %v3625_v1 = vadd.f32 %v1420_v58, %v1346_v40  ;;  %v1456_v42 = vcombine.low %v1452_v11, %v1453_v23 }
 0x15e   :  { %v1401_v0 = vadd.f32 %v1397_v32, %v1323_v60  ;;  %v3627_v8 = vadd.f32 %v1432_v46, %v1358_v44  ;;  %v1463_v13 = vstv %s3608_s7  ;;  %v1477_v20 = vstv %s3610_s1  ;;  %v1569_v46 = vpop.permute.xlu1 %1568  ;;  %s3730_s7 = sld [smem:[#allocation2 + $0x4c]]  ;;  %s3732_s1 = sld [smem:[#allocation2 + $0x67]] }
 0x15f   :  { %v1413_v10 = vadd.f32 %v1409_v35, %v1335_v17  ;;  %v1425_v48 = vadd.f32 %v1421_v19, %v1347_v52  ;;  %v1465_v14 = vmul.f32 %v2581_v30, %v1463_v13  ;;  %v1479_v39 = vmul.f32 %v2581_v30, %v1477_v20 }
 0x160   :  { %v1437_v21 = vadd.f32 %v1433_v49, %v1359_v47  ;;  %v1445_v37 = vrot.slane %v1444_v56, 1  ;;  %v1491_v61 = vstv %s3612_s17  ;;  %v1505_v12 = vstv %s3614_s3  ;;  %v1567_v47 = vpop.permute.xlu0 %1566  ;;  %s3734_s17 = sld [smem:[#allocation2 + $0x82]]  ;;  %s3736_s3 = sld [smem:[#allocation2 + $0x9d]] }
 0x161   :  { %v3640_v40 = vadd.f32 %v1444_v56, %v1370_v9  ;;  %v1457_v55 = vrot.slane %v1456_v42, 1  ;;  %v1464_v36 = vmul.f32 %v2582_v26, %v1463_v13  ;;  %v1478_v60 = vmul.f32 %v2582_v26, %v1477_v20 }
 0x162   :  { %v2502_v44 = vrot.slane %v1465_v14, 10  ;;  %v2505_v15 = vrot.slane %v1479_v39, 10  ;;  %v1493_v34 = vmul.f32 %v2581_v30, %v1491_v61  ;;  %v1507_v41 = vmul.f32 %v2581_v30, %v1505_v12 }
 0x163   :  { %v1492_v25 = vmul.f32 %v2582_v26, %v1491_v61  ;;  %v1506_v33 = vmul.f32 %v2582_v26, %v1505_v12  ;;  %v1519_v57 = vstv %s3617_s9  ;;  %v1533_v50 = vstv %s3619_s22  ;;  %s3741_s9 = sld [smem:[#allocation2 + $0x17]]  ;;  %s3749_s22 = sld [smem:[#allocation2 + $0x32]] }
 0x164   :  { %v1449_v27 = vadd.f32 %v1445_v37, %v1371_v18  ;;  %v1460_v16 = vadd.f32 %v1456_v42, %v1382_v38  ;;  %v2508_v43 = vrot.slane %v1493_v34, 10  ;;  %v2511_v63 = vrot.slane %v1507_v41, 10 }
 0x165   :  { %v1520_v51 = vmul.f32 %v2582_v26, %v1519_v57  ;;  %v1521_v31 = vmul.f32 %v2581_v30, %v1519_v57  ;;  %v1534_v29 = vmul.f32 %v2582_v26, %v1533_v50  ;;  %v1535_v22 = vmul.f32 %v2581_v30, %v1533_v50 }
 0x166   :  { %v1461_v3 = vadd.f32 %v1457_v55, %v1383_v59  ;;  %v2501_v54 = vrot.slane %v1464_v36, 10  ;;  %v3655_v62 = vadd.f32 %v2502_v44, %v1401_v0  ;;  %v2504_v45 = vrot.slane %v1478_v60, 10 }
 0x167   :  { %v3657_v24 = vadd.f32 %v2505_v15, %v1413_v10  ;;  %v2507_v2 = vrot.slane %v1492_v25, 10  ;;  %v3659_v53 = vadd.f32 %v2508_v43, %v1425_v48  ;;  %v2510_v58 = vrot.slane %v1506_v33, 10 }
 0x168   :  { %v3661_v11 = vadd.f32 %v2511_v63, %v1437_v21  ;;  %v2513_v23 = vrot.slane %v1520_v51, 10  ;;  %v1573_v17 = vstv %s3636_s24  ;;  %v1585_v52 = vstv %s3638_s29  ;;  %s3758_s24 = sld [smem:[#allocation2 + $0x9e]]  ;;  %s3767_s29 = sld [smem:[#allocation2 + $0x18]] }
 0x169   :  { %v2514_v32 = vrot.slane %v1521_v31, 10  ;;  %v2516_v9 = vrot.slane %v1534_v29, 10  ;;  %v2517_v38 = vrot.slane %v1535_v22, 10  ;;  %v1597_v35 = vstv %s3645_s30  ;;  %v1647_v31 = vpop.permute.xlu1 %1646  ;;  %v1645_v29 = vpop.permute.xlu0 %1644  ;;  %s3776_s30 = sld [smem:[#allocation2 + $0x69]] }
 0x16a   :  { %v1609_v19 = vstv %s3647_s4  ;;  %v1621_v18 = vstv %s3649_s28  ;;  %v1633_v59 = vstv %s3651_s11  ;;  %v1474_v49 = vadd.f32 %v2501_v54, %v3621_v6  ;;  %s3778_s4 = sld [smem:[#allocation2 + $0x84]]  ;;  %s3780_s28 = sld [smem:[#allocation2 + $0x9f]] }
 0x16b   :  { %v1488_v56 = vadd.f32 %v2504_v45, %v3623_v7  ;;  %v1502_v42 = vadd.f32 %v2507_v2, %v3625_v1  ;;  %v1570_v0 = vsel %vm106_vm2, %v1567_v47, %v1569_v46  ;;  %v1571_v13 = vsel %vm106_vm2, %v1569_v46, %v1567_v47  ;;  %s3789_s11 = sld [smem:[#allocation2 + $0x19]] }
 0x16c   :  { %v1574_v20 = vmul.f32 %v1573_v17, %v1570_v0  ;;  %v1575_v10 = vmul.f32 %v1573_v17, %v1571_v13  ;;  %v1586_v48 = vmul.f32 %v1585_v52, %v1570_v0  ;;  %v1587_v30 = vmul.f32 %v1585_v52, %v1571_v13 }
 0x16d   :  { %v1598_v14 = vmul.f32 %v1597_v35, %v1570_v0  ;;  %v1599_v6 = vmul.f32 %v1597_v35, %v1571_v13  ;;  %v1610_v39 = vmul.f32 %v1609_v19, %v1570_v0  ;;  %v1611_v7 = vmul.f32 %v1609_v19, %v1571_v13 }
 0x16e   :  { %v1578_v1 = vcombine.low %v1574_v20, %v1575_v10  ;;  %v1590_v21 = vcombine.low %v1586_v48, %v1587_v30  ;;  %v1622_v37 = vmul.f32 %v1621_v18, %v1570_v0  ;;  %v1623_v61 = vmul.f32 %v1621_v18, %v1571_v13 }
 0x16f   :  { %v1602_v12 = vcombine.low %v1598_v14, %v1599_v6  ;;  %v1614_v55 = vcombine.low %v1610_v39, %v1611_v7  ;;  %v1634_v26 = vmul.f32 %v1633_v59, %v1570_v0  ;;  %v1635_v36 = vmul.f32 %v1633_v59, %v1571_v13 }
 0x170   :  { %v1531_v60 = vadd.f32 %v2514_v32, %v1449_v27  ;;  %v1545_v44 = vadd.f32 %v2517_v38, %v1461_v3  ;;  %v1516_v15 = vadd.f32 %v2510_v58, %v3627_v8  ;;  %v1579_v34 = vrot.slane %v1578_v1, 1 }
 0x171   :  { %v1530_v41 = vadd.f32 %v2513_v23, %v3640_v40  ;;  %v1544_v25 = vadd.f32 %v2516_v9, %v1460_v16  ;;  %v1651_v33 = vstv %s3665_s19  ;;  %v1663_v57 = vstv %s3668_s25  ;;  %s3793_s19 = sld [smem:[#allocation2 + $0x34]]  ;;  %s3795_s25 = sld [smem:[#allocation2 + $0x4f]] }
 0x172   :  { %v1582_v50 = vadd.f32 %v1578_v1, %v1474_v49  ;;  %v1591_v43 = vrot.slane %v1590_v21, 1  ;;  %v1626_v63 = vcombine.low %v1622_v37, %v1623_v61  ;;  %v1638_v51 = vcombine.low %v1634_v26, %v1635_v36  ;;  %v1725_v26 = vpop.permute.xlu1 %1724  ;;  %v1723_v36 = vpop.permute.xlu0 %1722 }
 0x173   :  { %v1594_v27 = vadd.f32 %v1590_v21, %v1488_v56  ;;  %v1603_v22 = vrot.slane %v1602_v12, 1  ;;  %v1606_v3 = vadd.f32 %v1602_v12, %v1502_v42  ;;  %v1615_v8 = vrot.slane %v1614_v55, 1 }
 0x174   :  { %v1583_v54 = vadd.f32 %v1579_v34, %v3655_v62  ;;  %v1618_v40 = vadd.f32 %v1614_v55, %v1516_v15  ;;  %v1675_v45 = vstv %s3680_s27  ;;  %v1687_v16 = vstv %s3682_s14  ;;  %s3797_s27 = sld [smem:[#allocation2 + $0x6a]]  ;;  %s3799_s14 = sld [smem:[#allocation2 + $0x85]] }
 0x175   :  { %v1627_v2 = vrot.slane %v1626_v63, 1  ;;  %v1699_v58 = vstv %s3684_s12  ;;  %v1648_v46 = vsel %vm185_vm1, %v1645_v29, %v1647_v31  ;;  %v1649_v23 = vsel %vm185_vm1, %v1647_v31, %v1645_v29  ;;  %s3806_s12 = sld [smem:[#allocation2 + $0xa0]] }
 0x176   :  { %v1639_v17 = vrot.slane %v1638_v51, 1  ;;  %v1711_v52 = vstv %s3686_s2  ;;  %v1652_v47 = vmul.f32 %v1651_v33, %v1648_v46  ;;  %v1653_v32 = vmul.f32 %v1651_v33, %v1649_v23  ;;  %s3817_s2 = sld [smem:[#allocation2 + $0x1a]] }
 0x177   :  { %v1664_v62 = vmul.f32 %v1663_v57, %v1648_v46  ;;  %v1665_v9 = vmul.f32 %v1663_v57, %v1649_v23  ;;  %v1676_v38 = vmul.f32 %v1675_v45, %v1648_v46  ;;  %v1677_v35 = vmul.f32 %v1675_v45, %v1649_v23 }
 0x178   :  { %v1656_v19 = vcombine.low %v1652_v47, %v1653_v32  ;;  %v1688_v18 = vmul.f32 %v1687_v16, %v1648_v46  ;;  %v1689_v59 = vmul.f32 %v1687_v16, %v1649_v23  ;;  %v1700_v49 = vmul.f32 %v1699_v58, %v1648_v46 }
 0x179   :  { %v1668_v56 = vcombine.low %v1664_v62, %v1665_v9  ;;  %v1680_v42 = vcombine.low %v1676_v38, %v1677_v35  ;;  %v1701_v0 = vmul.f32 %v1699_v58, %v1649_v23  ;;  %v1712_v13 = vmul.f32 %v1711_v52, %v1648_v46 }
 0x17a   :  { %v1595_v20 = vadd.f32 %v1591_v43, %v3657_v24  ;;  %v1607_v10 = vadd.f32 %v1603_v22, %v3659_v53  ;;  %v1657_v48 = vrot.slane %v1656_v19, 1  ;;  %v1713_v30 = vmul.f32 %v1711_v52, %v1649_v23 }
 0x17b   :  { %v1619_v14 = vadd.f32 %v1615_v8, %v3661_v11  ;;  %v1630_v6 = vadd.f32 %v1626_v63, %v1530_v41  ;;  %v1642_v39 = vadd.f32 %v1638_v51, %v1544_v25  ;;  %v1692_v7 = vcombine.low %v1688_v18, %v1689_v59 }
 0x17c   :  { %v1631_v1 = vadd.f32 %v1627_v2, %v1531_v60  ;;  %v1643_v21 = vadd.f32 %v1639_v17, %v1545_v44  ;;  %v1660_v37 = vadd.f32 %v1656_v19, %v1582_v50  ;;  %v1704_v61 = vcombine.low %v1700_v49, %v1701_v0 }
 0x17d   :  { %v1669_v12 = vrot.slane %v1668_v56, 1  ;;  %v1672_v55 = vadd.f32 %v1668_v56, %v1594_v27  ;;  %v1681_v24 = vrot.slane %v1680_v42, 1  ;;  %v1716_v53 = vcombine.low %v1712_v13, %v1713_v30 }
 0x17e   :  { %v1661_v11 = vadd.f32 %v1657_v48, %v1583_v54  ;;  %v1684_v15 = vadd.f32 %v1680_v42, %v1606_v3  ;;  %v1729_v34 = vstv %s3701_s8  ;;  %v1741_v41 = vstv %s3703_s5  ;;  %v1801_v48 = vpop.permute.xlu0 %1800  ;;  %s3822_s8 = sld [smem:[#allocation2 + $0x35]]  ;;  %s3824_s5 = sld [smem:[#allocation2 + $0x50]] }
 0x17f   :  { %v1693_v25 = vrot.slane %v1692_v7, 1  ;;  %v1696_v33 = vadd.f32 %v1692_v7, %v1618_v40  ;;  %v1705_v60 = vrot.slane %v1704_v61, 1  ;;  %v1753_v44 = vstv %s3705_s10  ;;  %s3826_s10 = sld [smem:[#allocation2 + $0x6b]] }
 0x180   :  { %v1717_v57 = vrot.slane %v1716_v53, 1  ;;  %v1765_v50 = vstv %s3707_s21  ;;  %v1777_v43 = vstv %s3709_s15  ;;  %v1726_v63 = vsel %vm264_vm3, %v1723_v36, %v1725_v26  ;;  %s3828_s21 = sld [smem:[#allocation2 + $0x86]]  ;;  %s3830_s15 = sld [smem:[#allocation2 + $0xa1]] }
 0x181   :  { %v1789_v51 = vstv %s3711_s26  ;;  %v1727_v31 = vsel %vm264_vm3, %v1725_v26, %v1723_v36  ;;  %v1730_v29 = vmul.f32 %v1729_v34, %v1726_v63  ;;  %v1742_v27 = vmul.f32 %v1741_v41, %v1726_v63  ;;  %s3832_s26 = sld [smem:[#allocation4]] }
 0x182   :  { %v1731_v22 = vmul.f32 %v1729_v34, %v1727_v31  ;;  %v1743_v3 = vmul.f32 %v1741_v41, %v1727_v31  ;;  %v1754_v8 = vmul.f32 %v1753_v44, %v1726_v63  ;;  %v1755_v54 = vmul.f32 %v1753_v44, %v1727_v31 }
 0x183   :  { %v1766_v40 = vmul.f32 %v1765_v50, %v1726_v63  ;;  %v1767_v45 = vmul.f32 %v1765_v50, %v1727_v31  ;;  %v1778_v16 = vmul.f32 %v1777_v43, %v1726_v63  ;;  %v1779_v2 = vmul.f32 %v1777_v43, %v1727_v31 }
 0x184   :  { %v1673_v58 = vadd.f32 %v1669_v12, %v1595_v20  ;;  %v1734_v46 = vcombine.low %v1730_v29, %v1731_v22  ;;  %v1746_v23 = vcombine.low %v1742_v27, %v1743_v3  ;;  %v1758_v17 = vcombine.low %v1754_v8, %v1755_v54 }
 0x185   :  { %v1685_v52 = vadd.f32 %v1681_v24, %v1607_v10  ;;  %v1770_v47 = vcombine.low %v1766_v40, %v1767_v45  ;;  %v1790_v32 = vmul.f32 %v1789_v51, %v1726_v63  ;;  %v1791_v62 = vmul.f32 %v1789_v51, %v1727_v31  ;;  %v1803_v10 = vpop.permute.xlu1 %1802 }
 0x186   :  { %v1697_v9 = vadd.f32 %v1693_v25, %v1619_v14  ;;  %v1708_v38 = vadd.f32 %v1704_v61, %v1630_v6  ;;  %v1735_v35 = vrot.slane %v1734_v46, 1  ;;  %v1782_v19 = vcombine.low %v1778_v16, %v1779_v2 }
 0x187   :  { %v1709_v18 = vadd.f32 %v1705_v60, %v1631_v1  ;;  %v1720_v59 = vadd.f32 %v1716_v53, %v1642_v39  ;;  %v1721_v49 = vadd.f32 %v1717_v57, %v1643_v21  ;;  %v1807_v56 = vstv %s3719_s6  ;;  %s3834_s6 = sld [smem:[#allocation4 + $0x1]] }
 0x188   :  { %v1738_v42 = vadd.f32 %v1734_v46, %v1660_v37  ;;  %v1747_v0 = vrot.slane %v1746_v23, 1  ;;  %v1750_v13 = vadd.f32 %v1746_v23, %v1672_v55  ;;  %v1759_v20 = vrot.slane %v1758_v17, 1 }
 0x189   :  { %v1762_v30 = vadd.f32 %v1758_v17, %v1684_v15  ;;  %v1771_v7 = vrot.slane %v1770_v47, 1  ;;  %v1794_v14 = vcombine.low %v1790_v32, %v1791_v62  ;;  %v1819_v6 = vstv %s3728_s13  ;;  %v1881_v32 = vpop.permute.xlu1 %1880  ;;  %v1879_v62 = vpop.permute.xlu0 %1878  ;;  %s3836_s13 = sld [smem:[#allocation4 + $0x2]] }
 0x18a   :  { %v1739_v61 = vadd.f32 %v1735_v35, %v1661_v11  ;;  %v1774_v12 = vadd.f32 %v1770_v47, %v1696_v33  ;;  %v1783_v1 = vrot.slane %v1782_v19, 1  ;;  %v1831_v39 = vstv %s3730_s7  ;;  %s3838_s7 = sld [smem:[#allocation4 + $0x3]] }
 0x18b   :  { %v1795_v21 = vrot.slane %v1794_v14, 1  ;;  %v1843_v37 = vstv %s3732_s1  ;;  %v1855_v24 = vstv %s3734_s17  ;;  %v1804_v55 = vsel %vm343_vm4, %v1801_v48, %v1803_v10  ;;  %s3840_s1 = sld [smem:[#allocation4 + $0x4]]  ;;  %s3844_s17 = sld [smem:[#allocation4 + $0x5]] }
 0x18c   :  { %v1805_v53 = vsel %vm343_vm4, %v1803_v10, %v1801_v48  ;;  %v1808_v26 = vmul.f32 %v1807_v56, %v1804_v55  ;;  %v1820_v36 = vmul.f32 %v1819_v6, %v1804_v55  ;;  %v1832_v15 = vmul.f32 %v1831_v39, %v1804_v55 }
 0x18d   :  { %v1867_v11 = vstv %s3736_s3  ;;  %v1809_v34 = vmul.f32 %v1807_v56, %v1805_v53  ;;  %v1821_v41 = vmul.f32 %v1819_v6, %v1805_v53  ;;  %v1833_v25 = vmul.f32 %v1831_v39, %v1805_v53 }
 0x18e   :  { %v1844_v33 = vmul.f32 %v1843_v37, %v1804_v55  ;;  %v1845_v60 = vmul.f32 %v1843_v37, %v1805_v53  ;;  %v1856_v44 = vmul.f32 %v1855_v24, %v1804_v55  ;;  %v1857_v57 = vmul.f32 %v1855_v24, %v1805_v53 }
 0x18f   :  { %v1751_v50 = vadd.f32 %v1747_v0, %v1673_v58  ;;  %v1812_v43 = vcombine.low %v1808_v26, %v1809_v34  ;;  %v1824_v63 = vcombine.low %v1820_v36, %v1821_v41  ;;  %v1836_v51 = vcombine.low %v1832_v15, %v1833_v25 }
 0x190   :  { %v1786_v31 = vadd.f32 %v1782_v19, %v1708_v38  ;;  %v1848_v29 = vcombine.low %v1844_v33, %v1845_v60  ;;  %v1868_v27 = vmul.f32 %v1867_v11, %v1804_v55  ;;  %v1869_v22 = vmul.f32 %v1867_v11, %v1805_v53 }
 0x191   :  { %v1763_v3 = vadd.f32 %v1759_v20, %v1685_v52  ;;  %v1775_v8 = vadd.f32 %v1771_v7, %v1697_v9  ;;  %v1813_v54 = vrot.slane %v1812_v43, 1  ;;  %v1860_v40 = vcombine.low %v1856_v44, %v1857_v57 }
 0x192   :  { %v1787_v45 = vadd.f32 %v1783_v1, %v1709_v18  ;;  %v1798_v16 = vadd.f32 %v1794_v14, %v1720_v59  ;;  %v1799_v2 = vadd.f32 %v1795_v21, %v1721_v49  ;;  %v1885_v58 = vstv %s3741_s9 }
 0x193   :  { %v1816_v46 = vadd.f32 %v1812_v43, %v1738_v42  ;;  %v1825_v23 = vrot.slane %v1824_v63, 1  ;;  %v1828_v17 = vadd.f32 %v1824_v63, %v1750_v13  ;;  %v1837_v47 = vrot.slane %v1836_v51, 1 }
 0x194   :  { %v1840_v38 = vadd.f32 %v1836_v51, %v1762_v30  ;;  %v1849_v35 = vrot.slane %v1848_v29, 1  ;;  %v1872_v52 = vcombine.low %v1868_v27, %v1869_v22  ;;  %v1897_v9 = vstv %s3749_s22  ;;  %v1957_v27 = vpop.permute.xlu0 %1956  ;;  %s4314_s22 = sld [smem:[#allocation66_spill]] }
 0x195   :  { %v1817_v19 = vadd.f32 %v1813_v54, %v1739_v61  ;;  %v1852_v56 = vadd.f32 %v1848_v29, %v1774_v12  ;;  %v1861_v18 = vrot.slane %v1860_v40, 1  ;;  %v1909_v59 = vstv %s3752_s18 }
 0x196   :  { %v1873_v0 = vrot.slane %v1872_v52, 1  ;;  %v1921_v49 = vstv %s3754_s20  ;;  %v1933_v20 = vstv %s3756_s16  ;;  %v1882_v42 = vsel %vm422_vm5, %v1879_v62, %v1881_v32 }
 0x197   :  { %v1883_v13 = vsel %vm422_vm5, %v1881_v32, %v1879_v62  ;;  %v1886_v10 = vmul.f32 %v1885_v58, %v1882_v42  ;;  %v1898_v48 = vmul.f32 %v1897_v9, %v1882_v42  ;;  %v1910_v30 = vmul.f32 %v1909_v59, %v1882_v42 }
 0x198   :  { %v1945_v7 = vstv %s3758_s24  ;;  %v1887_v14 = vmul.f32 %v1885_v58, %v1883_v13  ;;  %v1899_v6 = vmul.f32 %v1897_v9, %v1883_v13  ;;  %v1911_v61 = vmul.f32 %v1909_v59, %v1883_v13 }
 0x199   :  { %v1922_v12 = vmul.f32 %v1921_v49, %v1882_v42  ;;  %v1923_v1 = vmul.f32 %v1921_v49, %v1883_v13  ;;  %v1934_v39 = vmul.f32 %v1933_v20, %v1882_v42  ;;  %v1935_v21 = vmul.f32 %v1933_v20, %v1883_v13 }
 0x19a   :  { %v1829_v37 = vadd.f32 %v1825_v23, %v1751_v50  ;;  %v1890_v24 = vcombine.low %v1886_v10, %v1887_v14  ;;  %v1902_v55 = vcombine.low %v1898_v48, %v1899_v6  ;;  %v1914_v53 = vcombine.low %v1910_v30, %v1911_v61 }
 0x19b   :  { %v1864_v26 = vadd.f32 %v1860_v40, %v1786_v31  ;;  %v1926_v36 = vcombine.low %v1922_v12, %v1923_v1  ;;  %v1946_v15 = vmul.f32 %v1945_v7, %v1882_v42  ;;  %v1947_v11 = vmul.f32 %v1945_v7, %v1883_v13  ;;  %v1959_v31 = vpop.permute.xlu1 %1958 }
 0x19c   :  { %v1841_v34 = vadd.f32 %v1837_v47, %v1763_v3  ;;  %v1853_v41 = vadd.f32 %v1849_v35, %v1775_v8  ;;  %v1891_v25 = vrot.slane %v1890_v24, 1  ;;  %v1903_v33 = vrot.slane %v1902_v55, 1 }
 0x19d   :  { %v1865_v60 = vadd.f32 %v1861_v18, %v1787_v45  ;;  %v1876_v44 = vadd.f32 %v1872_v52, %v1798_v16  ;;  %v1877_v57 = vadd.f32 %v1873_v0, %v1799_v2  ;;  %v1938_v43 = vcombine.low %v1934_v39, %v1935_v21 }
 0x19e   :  { %v1894_v50 = vadd.f32 %v1890_v24, %v1816_v46  ;;  %v1906_v63 = vadd.f32 %v1902_v55, %v1828_v17  ;;  %v1915_v51 = vrot.slane %v1914_v53, 1  ;;  %v1963_v29 = vstv %s3767_s29 }
 0x19f   :  { %v1918_v22 = vadd.f32 %v1914_v53, %v1840_v38  ;;  %v1927_v3 = vrot.slane %v1926_v36, 1  ;;  %v1950_v8 = vcombine.low %v1946_v15, %v1947_v11  ;;  %v1975_v54 = vstv %s3771_s0  ;;  %v2035_v15 = vpop.permute.xlu0 %2034 }
 0x1a0   :  { %v1895_v40 = vadd.f32 %v1891_v25, %v1817_v19  ;;  %v1907_v45 = vadd.f32 %v1903_v33, %v1829_v37  ;;  %v1930_v16 = vadd.f32 %v1926_v36, %v1852_v56  ;;  %v1987_v2 = vstv %s3774_s23 }
 0x1a1   :  { %v1939_v58 = vrot.slane %v1938_v43, 1  ;;  %v1999_v23 = vstv %s3776_s30  ;;  %v2011_v47 = vstv %s3778_s4  ;;  %v1960_v46 = vsel %vm501_vm6, %v1957_v27, %v1959_v31 }
 0x1a2   :  { %v1961_v17 = vsel %vm501_vm6, %v1959_v31, %v1957_v27  ;;  %v1964_v32 = vmul.f32 %v1963_v29, %v1960_v46  ;;  %v1976_v62 = vmul.f32 %v1975_v54, %v1960_v46  ;;  %v1988_v38 = vmul.f32 %v1987_v2, %v1960_v46 }
 0x1a3   :  { %v1951_v35 = vrot.slane %v1950_v8, 1  ;;  %v1965_v52 = vmul.f32 %v1963_v29, %v1961_v17  ;;  %v1977_v9 = vmul.f32 %v1975_v54, %v1961_v17  ;;  %v1989_v19 = vmul.f32 %v1987_v2, %v1961_v17 }
 0x1a4   :  { %v2000_v56 = vmul.f32 %v1999_v23, %v1960_v46  ;;  %v2001_v18 = vmul.f32 %v1999_v23, %v1961_v17  ;;  %v2012_v59 = vmul.f32 %v2011_v47, %v1960_v46  ;;  %v2013_v0 = vmul.f32 %v2011_v47, %v1961_v17 }
 0x1a5   :  { %v2023_v49 = vstv %s3780_s28  ;;  %v1968_v20 = vcombine.low %v1964_v32, %v1965_v52  ;;  %v1980_v42 = vcombine.low %v1976_v62, %v1977_v9  ;;  %v1992_v13 = vcombine.low %v1988_v38, %v1989_v19 }
 0x1a6   :  { %v1919_v10 = vadd.f32 %v1915_v51, %v1841_v34  ;;  %v3802_v48 = vadd.f32 %v1927_v3, %v1853_v41  ;;  %v1942_v30 = vadd.f32 %v1938_v43, %v1864_v26  ;;  %v3804_v7 = vcombine.low %v2000_v56, %v2001_v18  ;;  %v2037_v26 = vpop.permute.xlu1 %2036 }
 0x1a7   :  { %v1943_v14 = vadd.f32 %v1939_v58, %v1865_v60  ;;  %v1969_v6 = vrot.slane %v1968_v20, 1  ;;  %v1981_v61 = vrot.slane %v1980_v42, 1  ;;  %v2016_v12 = vcombine.low %v2012_v59, %v2013_v0 }
 0x1a8   :  { %v1954_v1 = vadd.f32 %v1950_v8, %v1876_v44  ;;  %v1955_v39 = vadd.f32 %v1951_v35, %v1877_v57  ;;  %v2024_v21 = vmul.f32 %v2023_v49, %v1960_v46  ;;  %v2025_v37 = vmul.f32 %v2023_v49, %v1961_v17 }
 0x1a9   :  { %v1972_v24 = vadd.f32 %v1968_v20, %v1894_v50  ;;  %v1984_v55 = vadd.f32 %v1980_v42, %v1906_v63  ;;  %v1993_v53 = vrot.slane %v1992_v13, 1  ;;  %v2041_v36 = vstv %s3789_s11 }
 0x1aa   :  { %v1996_v11 = vadd.f32 %v1992_v13, %v1918_v22  ;;  %v2005_v34 = vrot.slane %v3804_v7, 1  ;;  %v2008_v41 = vadd.f32 %v3804_v7, %v1930_v16  ;;  %v2053_v25 = vstv %s3793_s19 }
 0x1ab   :  { %v1973_v33 = vadd.f32 %v1969_v6, %v1895_v40  ;;  %v1985_v60 = vadd.f32 %v1981_v61, %v1907_v45  ;;  %v2017_v44 = vrot.slane %v2016_v12, 1  ;;  %v2065_v57 = vstv %s3795_s25 }
 0x1ac   :  { %v2028_v43 = vcombine.low %v2024_v21, %v2025_v37  ;;  %v2077_v51 = vstv %s3797_s27  ;;  %v2089_v50 = vstv %s3799_s14  ;;  %v2038_v63 = vsel %vm580_vm7, %v2035_v15, %v2037_v26 }
 0x1ad   :  { %v2039_v31 = vsel %vm580_vm7, %v2037_v26, %v2035_v15  ;;  %v2042_v29 = vmul.f32 %v2041_v36, %v2038_v63  ;;  %v2054_v27 = vmul.f32 %v2053_v25, %v2038_v63  ;;  %v2066_v22 = vmul.f32 %v2065_v57, %v2038_v63 }
 0x1ae   :  { %v2101_v3 = vstv %s3806_s12  ;;  %v2043_v8 = vmul.f32 %v2041_v36, %v2039_v31  ;;  %v2055_v54 = vmul.f32 %v2053_v25, %v2039_v31  ;;  %v2067_v40 = vmul.f32 %v2065_v57, %v2039_v31 }
 0x1af   :  { %v2078_v45 = vmul.f32 %v2077_v51, %v2038_v63  ;;  %v2079_v16 = vmul.f32 %v2077_v51, %v2039_v31  ;;  %v2090_v2 = vmul.f32 %v2089_v50, %v2038_v63  ;;  %v2091_v58 = vmul.f32 %v2089_v50, %v2039_v31 }
 0x1b0   :  { %v2029_v23 = vrot.slane %v2028_v43, 1  ;;  %v2046_v47 = vcombine.low %v2042_v29, %v2043_v8  ;;  %v2058_v46 = vcombine.low %v2054_v27, %v2055_v54  ;;  %v2070_v17 = vcombine.low %v2066_v22, %v2067_v40 }
 0x1b1   :  { %v2082_v32 = vcombine.low %v2078_v45, %v2079_v16  ;;  %v2094_v62 = vcombine.low %v2090_v2, %v2091_v58  ;;  %v2102_v38 = vmul.f32 %v2101_v3, %v2038_v63  ;;  %v2103_v35 = vmul.f32 %v2101_v3, %v2039_v31 }
 0x1b2   :  { %v1997_v52 = vadd.f32 %v1993_v53, %v1919_v10  ;;  %v2020_v9 = vadd.f32 %v2016_v12, %v1942_v30  ;;  %v2047_v19 = vrot.slane %v2046_v47, 1  ;;  %v2059_v56 = vrot.slane %v2058_v46, 1  ;;  %v2113_v53 = vpop.permute.xlu0 %2112 }
 0x1b3   :  { %v2009_v18 = vadd.f32 %v2005_v34, %v3802_v48  ;;  %v2021_v59 = vadd.f32 %v2017_v44, %v1943_v14  ;;  %v2071_v0 = vrot.slane %v2070_v17, 1  ;;  %v2083_v49 = vrot.slane %v2082_v32, 1 }
 0x1b4   :  { %v2032_v20 = vadd.f32 %v2028_v43, %v1954_v1  ;;  %v2033_v42 = vadd.f32 %v2029_v23, %v1955_v39  ;;  %v2095_v13 = vrot.slane %v2094_v62, 1  ;;  %v2119_v7 = vstv %s3817_s2 }
 0x1b5   :  { %v2050_v6 = vadd.f32 %v2046_v47, %v1972_v24  ;;  %v2062_v10 = vadd.f32 %v2058_v46, %v1984_v55  ;;  %v2074_v30 = vadd.f32 %v2070_v17, %v1996_v11  ;;  %v2106_v61 = vcombine.low %v2102_v38, %v2103_v35  ;;  %v2115_v24 = vpop.permute.xlu1 %2114 }
 0x1b6   :  { %v2051_v12 = vadd.f32 %v2047_v19, %v1973_v33  ;;  %v2063_v21 = vadd.f32 %v2059_v56, %v1985_v60  ;;  %v2086_v48 = vadd.f32 %v2082_v32, %v2008_v41  ;;  %v2098_v14 = vadd.f32 %v2094_v62, %v2020_v9 }
 0x1b7   :  { %v2075_v1 = vadd.f32 %v2071_v0, %v1997_v52  ;;  %v2087_v39 = vadd.f32 %v2083_v49, %v2009_v18  ;;  %v2099_v37 = vadd.f32 %v2095_v13, %v2021_v59  ;;  %v2131_v55 = vstv %s3822_s8 }
 0x1b8   :  { %v2107_v26 = vrot.slane %v2106_v61, 1  ;;  %v2143_v36 = vstv %s3824_s5  ;;  %v2155_v15 = vstv %s3826_s10  ;;  %v2167_v11 = vstv %s3828_s21 }
 0x1b9   :  { %v2110_v34 = vadd.f32 %v2106_v61, %v2032_v20  ;;  %v2179_v25 = vstv %s3830_s15  ;;  %v2191_v41 = vstv %s3832_s26  ;;  %v2195_v33 = vstv %s3834_s6 }
 0x1ba   :  { %v2199_v60 = vstv %s3836_s13  ;;  %v2203_v44 = vstv %s3838_s7  ;;  %v2207_v57 = vstv %s3840_s1  ;;  %v2116_v43 = vsel %vm659_vm8, %v2113_v53, %v2115_v24 }
 0x1bb   :  { %v2117_v51 = vsel %vm659_vm8, %v2115_v24, %v2113_v53  ;;  %v2120_v50 = vmul.f32 %v2119_v7, %v2116_v43  ;;  %v2132_v63 = vmul.f32 %v2131_v55, %v2116_v43  ;;  %v2144_v31 = vmul.f32 %v2143_v36, %v2116_v43 }
 0x1bc   :  { %v2121_v29 = vmul.f32 %v2119_v7, %v2117_v51  ;;  %v2133_v27 = vmul.f32 %v2131_v55, %v2117_v51  ;;  %v2145_v22 = vmul.f32 %v2143_v36, %v2117_v51  ;;  %v2156_v3 = vmul.f32 %v2155_v15, %v2116_v43 }
 0x1bd   :  { %v2111_v8 = vadd.f32 %v2107_v26, %v2033_v42  ;;  %v2157_v54 = vmul.f32 %v2155_v15, %v2117_v51  ;;  %v2168_v40 = vmul.f32 %v2167_v11, %v2116_v43  ;;  %v2169_v45 = vmul.f32 %v2167_v11, %v2117_v51 }
 0x1be   :  { %v2211_v16 = vstv %s3844_s17  ;;  %v2124_v2 = vcombine.low %v2120_v50, %v2121_v29  ;;  %v2136_v58 = vcombine.low %v2132_v63, %v2133_v27  ;;  %v2148_v23 = vcombine.low %v2144_v31, %v2145_v22 }
 0x1bf   :  { %v2160_v47 = vcombine.low %v2156_v3, %v2157_v54  ;;  %v2172_v46 = vcombine.low %v2168_v40, %v2169_v45  ;;  %v2180_v17 = vmul.f32 %v2179_v25, %v2116_v43  ;;  %v2181_v28 = vmul.f32 %v2179_v25, %v2117_v51 }
 0x1c0   :  { %v2125_v32 = vrot.slane %v2124_v2, 1  ;;  %v2128_v62 = vadd.f32 %v2124_v2, %v2050_v6  ;;  %v2137_v38 = vrot.slane %v2136_v58, 1  ;;  %v2140_v35 = vadd.f32 %v2136_v58, %v2062_v10 }
 0x1c1   :  { %v2149_v52 = vrot.slane %v2148_v23, 1  ;;  %v2152_v9 = vadd.f32 %v2148_v23, %v2074_v30  ;;  %v2161_v19 = vrot.slane %v2160_v47, 1  ;;  %v2164_v56 = vadd.f32 %v2160_v47, %v2086_v48 }
 0x1c2   :  { %v2129_v18 = vadd.f32 %v2125_v32, %v2051_v12  ;;  %v2141_v59 = vadd.f32 %v2137_v38, %v2063_v21  ;;  %v2173_v0 = vrot.slane %v2172_v46, 1  ;;  %v2176_v49 = vadd.f32 %v2172_v46, %v2098_v14 }
 0x1c3   :  { %v2153_v20 = vadd.f32 %v2149_v52, %v2075_v1  ;;  %v2165_v42 = vadd.f32 %v2161_v19, %v2087_v39  ;;  %v2184_v13 = vcombine.low %v2180_v17, %v2181_v28  ;;  %v2192_v7 = vadd.f32 %v2191_v41, %v2128_v62 }
 0x1c4   :  { %v2177_v61 = vadd.f32 %v2173_v0, %v2099_v37  ;;  %v2193_v24 = vadd.f32 %v2191_v41, %v2129_v18  ;;  %v2196_v6 = vadd.f32 %v2195_v33, %v2140_v35  ;;  %v2197_v55 = vadd.f32 %v2195_v33, %v2141_v59 }
 0x1c5   :  { %v2185_v10 = vrot.slane %v2184_v13, 1  ;;  %v2188_v30 = vadd.f32 %v2184_v13, %v2110_v34  ;;  %v2200_v53 = vadd.f32 %v2199_v60, %v2152_v9  ;;  %v2201_v48 = vadd.f32 %v2199_v60, %v2153_v20 }
 0x1c6   :  { %v2204_v12 = vadd.f32 %v2203_v44, %v2164_v56  ;;  %v2205_v21 = vadd.f32 %v2203_v44, %v2165_v42  ;;  %v2208_v26 = vadd.f32 %v2207_v57, %v2176_v49  ;;  %v2209_v14 = vadd.f32 %v2207_v57, %v2177_v61 }
 0x1c7   :  { %v2189_v36 = vadd.f32 %v2185_v10, %v2111_v8  ;;  %v2212_v1 = vadd.f32 %v2211_v16, %v2188_v30  ;;  %v2219_v39 = vrot.slane %v2192_v7, %v2658_v4  ;;  %v2223_v15 = vrot.slane %v2192_v7, %v2660_v5 }
 0x1c8   :  { %v2227_v37 = vrot.slane %v2193_v24, %v2658_v4  ;;  %v2231_v11 = vrot.slane %v2193_v24, %v2660_v5  ;;  %v2241_v25 = vrot.slane %v2196_v6, %v2658_v4  ;;  %v2245_v34 = vrot.slane %v2196_v6, %v2660_v5 }
 0x1c9   :  { %v2213_v41 = vadd.f32 %v2211_v16, %v2189_v36  ;;  %v2249_v33 = vrot.slane %v2197_v55, %v2658_v4  ;;  %v2253_v60 = vrot.slane %v2197_v55, %v2660_v5  ;;  %v2263_v44 = vrot.slane %v2200_v53, %v2658_v4 }
 0x1ca   :  { %v2267_v57 = vrot.slane %v2200_v53, %v2660_v5  ;;  %v2271_v43 = vrot.slane %v2201_v48, %v2658_v4  ;;  %v2275_v51 = vrot.slane %v2201_v48, %v2660_v5  ;;  %v2285_v50 = vrot.slane %v2204_v12, %v2658_v4 }
 0x1cb   :  { %v2289_v63 = vrot.slane %v2204_v12, %v2660_v5  ;;  %v2293_v31 = vrot.slane %v2205_v21, %v2658_v4  ;;  %v2297_v29 = vrot.slane %v2205_v21, %v2660_v5  ;;  %v2307_v27 = vrot.slane %v2208_v26, %v2658_v4 }
 0x1cc   :  { %v2311_v22 = vrot.slane %v2208_v26, %v2660_v5  ;;  %v2315_v3 = vrot.slane %v2209_v14, %v2658_v4  ;;  %v2319_v8 = vrot.slane %v2209_v14, %v2660_v5  ;;  %v2329_v54 = vrot.slane %v2212_v1, %v2658_v4 }
 0x1cd   :  { %v2333_v40 = vrot.slane %v2212_v1, %v2660_v5  ;;  %v2337_v45 = vrot.slane %v2213_v41, %v2658_v4  ;;  %v2341_v16 = vrot.slane %v2213_v41, %v2660_v5  ;;  %v2347_v2 = vsel %vm2346_vm9, %v2219_v39, %v2241_v25 }
 0x1ce   :  { %v2348_v58 = vsel %vm2346_vm9, %v2223_v15, %v2245_v34  ;;  %v2349_v23 = vsel %vm2346_vm9, %v2227_v37, %v2249_v33  ;;  %v2350_v47 = vsel %vm2346_vm9, %v2231_v11, %v2253_v60  ;;  %v2352_v46 = vsel %vm2351_vm10, %v2347_v2, %v2263_v44 }
 0x1cf   :  { %v2353_v17 = vsel %vm2351_vm10, %v2348_v58, %v2267_v57  ;;  %v2354_v28 = vsel %vm2351_vm10, %v2349_v23, %v2271_v43  ;;  %v2355_v32 = vsel %vm2351_vm10, %v2350_v47, %v2275_v51  ;;  %v2357_v4 = vsel %vm2356_vm11, %v2352_v46, %v2285_v50 }
 0x1d0   :  { %v2358_v5 = vsel %vm2356_vm11, %v2353_v17, %v2289_v63  ;;  %v2359_v62 = vsel %vm2356_vm11, %v2354_v28, %v2293_v31  ;;  %v2360_v38 = vsel %vm2356_vm11, %v2355_v32, %v2297_v29  ;;  %v2362_v35 = vsel %vm2361_vm12, %v2357_v4, %v2307_v27 }
 0x1d1   :  { %v2363_v52 = vsel %vm2361_vm12, %v2358_v5, %v2311_v22  ;;  %v2364_v9 = vsel %vm2361_vm12, %v2359_v62, %v2315_v3  ;;  %v2365_v19 = vsel %vm2361_vm12, %v2360_v38, %v2319_v8  ;;  %v2367_v56 = vsel %vm2366_vm13, %v2362_v35, %v2329_v54 }
 0x1d2   :  { %v2368_v18 = vsel %vm2366_vm13, %v2363_v52, %v2333_v40  ;;  %v2369_v59 = vsel %vm2366_vm13, %v2364_v9, %v2337_v45  ;;  %v2370_v0 = vsel %vm2366_vm13, %v2365_v19, %v2341_v16  ;;  %2371 = vst [vmem:[%s4314_s22] sm:$0x3f] %v2367_v56 }
 0x1d3   :  { %2372 = vst [vmem:[%s4314_s22 + $0x8] sm:$0x3f] %v2368_v18  ;;  %2373 = vst [vmem:[%s4314_s22 + $0x10] sm:$0x3f] %v2369_v59 }
 0x1d4   :  { %2374 = vst [vmem:[%s4314_s22 + $0x18] sm:$0x3f] %v2370_v0 }
 0x1d5   :  { %2379 = vsyncpa [#allocation3], 1 }
 0x1d6   :  { %2380 = vsyncpa [#allocation5], 1 }

</bundles_post_ra>
